<compile_context>
chip_gen: v6e
topology: v6e:2x2x1
jax: 0.10.0
libtpu: 0.0.40
codegen_flags: <defaults>
</compile_context>

<pallas_src>
import jax
import jax.numpy as jnp
from jax import lax
from jax.experimental import pallas as pl
from jax.experimental.pallas import tpu as pltpu


def basic_block_kernel(x_ref, w1_ref, w2_ref, s1_ref, b1_ref, s2_ref, b2_ref,
                       out_ref, xpad_ref, ypad_ref, pat_ref):
    """One batch element per grid step.

    x_ref  : (1, H, W, C)       unpadded input tile, bf16 (NHWC)
    w*_ref : (9*C, C)           im2col conv weights, bf16 (rows = (dy, dx, cin))
    s*_ref : (1, C)             folded BN scale, f32
    b*_ref : (1, C)             folded BN shift, f32
    out_ref: (1, H, W, C)       f32 output tile
    xpad_ref, ypad_ref : (H+2, W+2, C) f32 halo scratches
    pat_ref: (H, W, 9*C)        f32 im2col patch scratch (reused by both convs)
    """
    _, H, W, C = x_ref.shape

    # Re-zero only the 1-pixel halo border of the padded scratches.  The
    # interior is fully overwritten below; redoing the border each step is
    # ~100x less data than a full zero-fill and is safe under megacore grid
    # partitioning (no reliance on program_id == 0 having run on this core).
    zrow = jnp.zeros((1, W + 2, C), jnp.float32)
    zcol = jnp.zeros((H + 2, 1, C), jnp.float32)
    for pad_ref in (xpad_ref, ypad_ref):
        pad_ref[0:1, :, :] = zrow
        pad_ref[H + 1:H + 2, :, :] = zrow
        pad_ref[:, 0:1, :] = zcol
        pad_ref[:, W + 1:W + 2, :] = zcol

    # Input tile (also the residual identity), upcast once to f32.
    x = x_ref[0].astype(jnp.float32)                       # (H, W, C)
    xpad_ref[1:1 + H, 1:1 + W, :] = x

    # ---- conv1: single im2col matmul (H, W, 9C) @ (9C, C), f32 accumulation --
    for dy in range(3):
        for dx in range(3):
            t = dy * 3 + dx
            pat_ref[:, :, t * C:(t + 1) * C] = xpad_ref[dy:dy + H, dx:dx + W, :]
    acc1 = jnp.dot(pat_ref[...].astype(jnp.bfloat16), w1_ref[...],
                   preferred_element_type=jnp.float32)     # (H, W, C) f32

    # BN1 (folded, inference) + ReLU in f32
    y = jnp.maximum(acc1 * s1_ref[...] + b1_ref[...], 0.0)

    # ---- conv2: same im2col structure on the padded intermediate ------------
    ypad_ref[1:1 + H, 1:1 + W, :] = y
    for dy in range(3):
        for dx in range(3):
            t = dy * 3 + dx
            pat_ref[:, :, t * C:(t + 1) * C] = ypad_ref[dy:dy + H, dx:dx + W, :]
    acc2 = jnp.dot(pat_ref[...].astype(jnp.bfloat16), w2_ref[...],
                   preferred_element_type=jnp.float32)     # (H, W, C) f32

    # BN2 + residual add + ReLU
    out_ref[0] = jnp.maximum(acc2 * s2_ref[...] + b2_ref[...] + x, 0.0)


@jax.jit
def basic_block_forward(x_nchw, w1_oihw, w2_oihw, scale1, shift1, scale2, shift2):
    """PyTorch-convention NCHW in / NCHW out (identity path => Cin == Cout)."""
    N, C, H, W = x_nchw.shape
    assert w1_oihw.shape == (C, C, 3, 3) and w2_oihw.shape == (C, C, 3, 3), (
        "identity residual path requires in_channels == out_channels")

    # NHWC, bf16 activations (MXU-native).  No HBM-side spatial padding.
    x = jnp.transpose(x_nchw, (0, 2, 3, 1)).astype(jnp.bfloat16)

    # Fold the 3x3 taps into the contraction dim: OIHW -> HWIO -> (9*Cin, Cout)
    w1 = jnp.transpose(w1_oihw, (2, 3, 1, 0)).reshape(9 * C, C).astype(jnp.bfloat16)
    w2 = jnp.transpose(w2_oihw, (2, 3, 1, 0)).reshape(9 * C, C).astype(jnp.bfloat16)

    s1 = scale1.reshape(1, C).astype(jnp.float32)
    b1 = shift1.reshape(1, C).astype(jnp.float32)
    s2 = scale2.reshape(1, C).astype(jnp.float32)
    b2 = shift2.reshape(1, C).astype(jnp.float32)

    out_nhwc = pl.pallas_call(
        basic_block_kernel,
        out_shape=jax.ShapeDtypeStruct((N, H, W, C), jnp.float32),
        grid=(N,),
        in_specs=[
            pl.BlockSpec((1, H, W, C), lambda n: (n, 0, 0, 0)),
            pl.BlockSpec((9 * C, C), lambda n: (0, 0)),
            pl.BlockSpec((9 * C, C), lambda n: (0, 0)),
            pl.BlockSpec((1, C), lambda n: (0, 0)),
            pl.BlockSpec((1, C), lambda n: (0, 0)),
            pl.BlockSpec((1, C), lambda n: (0, 0)),
            pl.BlockSpec((1, C), lambda n: (0, 0)),
        ],
        out_specs=pl.BlockSpec((1, H, W, C), lambda n: (n, 0, 0, 0)),
        scratch_shapes=[
            pltpu.VMEM((H + 2, W + 2, C), jnp.float32),   # padded input halo
            pltpu.VMEM((H + 2, W + 2, C), jnp.float32),   # padded conv1 output
            pltpu.VMEM((H, W, 9 * C), jnp.float32),       # im2col patch matrix
        ],
        compiler_params=pltpu.CompilerParams(
            dimension_semantics=("parallel",),
            vmem_limit_bytes=64 * 1024 * 1024,
        ),
    )(x, w1, w2, s1, b1, s2, b2)

    return jnp.transpose(out_nhwc, (0, 3, 1, 2))          # back to NCHW


def reference_forward(x_nchw, w1, w2, s1, b1, s2, b2):
    """Pure-JAX reference (lax conv) mirroring the kernel's bf16-in/f32-acc."""
    dn = ('NCHW', 'OIHW', 'NCHW')
    xb = x_nchw.astype(jnp.bfloat16)
    y = lax.conv_general_dilated(xb, w1.astype(jnp.bfloat16), (1, 1), 'SAME',
                                 dimension_numbers=dn,
                                 preferred_element_type=jnp.float32)
    y = y * s1[None, :, None, None] + b1[None, :, None, None]
    y = jnp.maximum(y, 0.0)
    z = lax.conv_general_dilated(y.astype(jnp.bfloat16), w2.astype(jnp.bfloat16),
                                 (1, 1), 'SAME', dimension_numbers=dn,
                                 preferred_element_type=jnp.float32)
    z = z * s2[None, :, None, None] + b2[None, :, None, None]
    return jnp.maximum(z + xb.astype(jnp.float32), 0.0)


if __name__ == "__main__":
    # Small shapes consistent with BasicBlock(in_channels=4, out_channels=4)
    N, C, H, W = 2, 4, 16, 16
    key = jax.random.PRNGKey(0)
    kx, kw1, kw2, kg1, kb1, kg2, kb2 = jax.random.split(key, 7)

    x = jax.random.normal(kx, (N, C, H, W), jnp.float32)

    # Conv weights in PyTorch OIHW layout, kernel_size=3, bias=False.
    w1 = jax.random.normal(kw1, (C, C, 3, 3), jnp.float32) * 0.1
    w2 = jax.random.normal(kw2, (C, C, 3, 3), jnp.float32) * 0.1

    # BatchNorm params: gamma/beta random (deterministic), fresh running stats.
    eps = 1e-5
    gamma1 = 1.0 + 0.1 * jax.random.normal(kg1, (C,), jnp.float32)
    beta1 = 0.1 * jax.random.normal(kb1, (C,), jnp.float32)
    gamma2 = 1.0 + 0.1 * jax.random.normal(kg2, (C,), jnp.float32)
    beta2 = 0.1 * jax.random.normal(kb2, (C,), jnp.float32)
    run_mean = jnp.zeros((C,), jnp.float32)
    run_var = jnp.ones((C,), jnp.float32)

    # Fold BN into scale/shift (inference form).
    scale1 = gamma1 / jnp.sqrt(run_var + eps)
    shift1 = beta1 - run_mean * scale1
    scale2 = gamma2 / jnp.sqrt(run_var + eps)
    shift2 = beta2 - run_mean * scale2

    out = basic_block_forward(x, w1, w2, scale1, shift1, scale2, shift2)
    out = jax.block_until_ready(out)

    ref = reference_forward(x, w1, w2, scale1, shift1, scale2, shift2)
    ref = jax.block_until_ready(ref)

    assert out.shape == (N, C, H, W), out.shape
    max_err = float(jnp.max(jnp.abs(out - ref)))
    assert max_err < 5e-3, f"mismatch vs reference, max abs err = {max_err}"

    print("KERNEL_OK")
</pallas_src>

<mosaic_0001>
module attributes {stable_mosaic.version = 11 : i64} {
  func.func @basic_block_kernel(%arg0: i32, %arg1: memref<1x16x16x4xbf16, #tpu.memory_space<vmem>>, %arg2: memref<36x4xbf16, #tpu.memory_space<vmem>>, %arg3: memref<36x4xbf16, #tpu.memory_space<vmem>>, %arg4: memref<1x4xf32, #tpu.memory_space<vmem>>, %arg5: memref<1x4xf32, #tpu.memory_space<vmem>>, %arg6: memref<1x4xf32, #tpu.memory_space<vmem>>, %arg7: memref<1x4xf32, #tpu.memory_space<vmem>>, %arg8: memref<1x16x16x4xf32, #tpu.memory_space<vmem>>, %arg9: memref<18x18x4xf32, #tpu.memory_space<vmem>>, %arg10: memref<18x18x4xf32, #tpu.memory_space<vmem>>, %arg11: memref<16x16x36xf32, #tpu.memory_space<vmem>>) attributes {dimension_semantics = [#tpu.dimension_semantics<parallel>], iteration_bounds = array<i64: 2>, scalar_prefetch = 0 : i64, scratch_operands = 3 : i64, tpu.core_type = #tpu.core_type<tc>, window_params = [{transform_indices = @transform_0, window_bounds = array<i64: 1, 16, 16, 4>}, {pipeline_mode = #tpu.pipeline_mode<synchronous>, transform_indices = @transform_1, window_bounds = array<i64: 36, 4>}, {pipeline_mode = #tpu.pipeline_mode<synchronous>, transform_indices = @transform_2, window_bounds = array<i64: 36, 4>}, {pipeline_mode = #tpu.pipeline_mode<synchronous>, transform_indices = @transform_3, window_bounds = array<i64: 1, 4>}, {pipeline_mode = #tpu.pipeline_mode<synchronous>, transform_indices = @transform_4, window_bounds = array<i64: 1, 4>}, {pipeline_mode = #tpu.pipeline_mode<synchronous>, transform_indices = @transform_5, window_bounds = array<i64: 1, 4>}, {pipeline_mode = #tpu.pipeline_mode<synchronous>, transform_indices = @transform_6, window_bounds = array<i64: 1, 4>}, {transform_indices = @transform_7, window_bounds = array<i64: 1, 16, 16, 4>}]} {
    %cst = arith.constant 0.000000e+00 : f32
    %0 = vector.broadcast %cst : f32 to vector<1x18x4xf32>
    %cst_0 = arith.constant 0.000000e+00 : f32
    %1 = vector.broadcast %cst_0 : f32 to vector<18x1x4xf32>
    %c0 = arith.constant 0 : index
    %c0_1 = arith.constant 0 : index
    %c0_2 = arith.constant 0 : index
    %2 = vector.load %arg9[%c0, %c0_1, %c0_2] : memref<18x18x4xf32, #tpu.memory_space<vmem>>, vector<1x18x4xf32>
    tpu.vector_store %arg9[%c0, %c0_1, %c0_2], %0 {strides = array<i32>} : memref<18x18x4xf32, #tpu.memory_space<vmem>>, vector<1x18x4xf32>,
    %c17 = arith.constant 17 : index
    %c0_3 = arith.constant 0 : index
    %c0_4 = arith.constant 0 : index
    %3 = vector.load %arg9[%c17, %c0_3, %c0_4] : memref<18x18x4xf32, #tpu.memory_space<vmem>>, vector<1x18x4xf32>
    tpu.vector_store %arg9[%c17, %c0_3, %c0_4], %0 {strides = array<i32>} : memref<18x18x4xf32, #tpu.memory_space<vmem>>, vector<1x18x4xf32>,
    %c0_5 = arith.constant 0 : index
    %c0_6 = arith.constant 0 : index
    %c0_7 = arith.constant 0 : index
    %4 = vector.load %arg9[%c0_5, %c0_6, %c0_7] : memref<18x18x4xf32, #tpu.memory_space<vmem>>, vector<18x1x4xf32>
    tpu.vector_store %arg9[%c0_5, %c0_6, %c0_7], %1 {strides = array<i32>} : memref<18x18x4xf32, #tpu.memory_space<vmem>>, vector<18x1x4xf32>,
    %c0_8 = arith.constant 0 : index
    %c17_9 = arith.constant 17 : index
    %c0_10 = arith.constant 0 : index
    %5 = vector.load %arg9[%c0_8, %c17_9, %c0_10] : memref<18x18x4xf32, #tpu.memory_space<vmem>>, vector<18x1x4xf32>
    tpu.vector_store %arg9[%c0_8, %c17_9, %c0_10], %1 {strides = array<i32>} : memref<18x18x4xf32, #tpu.memory_space<vmem>>, vector<18x1x4xf32>,
    %c0_11 = arith.constant 0 : index
    %c0_12 = arith.constant 0 : index
    %c0_13 = arith.constant 0 : index
    %6 = vector.load %arg10[%c0_11, %c0_12, %c0_13] : memref<18x18x4xf32, #tpu.memory_space<vmem>>, vector<1x18x4xf32>
    tpu.vector_store %arg10[%c0_11, %c0_12, %c0_13], %0 {strides = array<i32>} : memref<18x18x4xf32, #tpu.memory_space<vmem>>, vector<1x18x4xf32>,
    %c17_14 = arith.constant 17 : index
    %c0_15 = arith.constant 0 : index
    %c0_16 = arith.constant 0 : index
    %7 = vector.load %arg10[%c17_14, %c0_15, %c0_16] : memref<18x18x4xf32, #tpu.memory_space<vmem>>, vector<1x18x4xf32>
    tpu.vector_store %arg10[%c17_14, %c0_15, %c0_16], %0 {strides = array<i32>} : memref<18x18x4xf32, #tpu.memory_space<vmem>>, vector<1x18x4xf32>,
    %c0_17 = arith.constant 0 : index
    %c0_18 = arith.constant 0 : index
    %c0_19 = arith.constant 0 : index
    %8 = vector.load %arg10[%c0_17, %c0_18, %c0_19] : memref<18x18x4xf32, #tpu.memory_space<vmem>>, vector<18x1x4xf32>
    tpu.vector_store %arg10[%c0_17, %c0_18, %c0_19], %1 {strides = array<i32>} : memref<18x18x4xf32, #tpu.memory_space<vmem>>, vector<18x1x4xf32>,
    %c0_20 = arith.constant 0 : index
    %c17_21 = arith.constant 17 : index
    %c0_22 = arith.constant 0 : index
    %9 = vector.load %arg10[%c0_20, %c17_21, %c0_22] : memref<18x18x4xf32, #tpu.memory_space<vmem>>, vector<18x1x4xf32>
    tpu.vector_store %arg10[%c0_20, %c17_21, %c0_22], %1 {strides = array<i32>} : memref<18x18x4xf32, #tpu.memory_space<vmem>>, vector<18x1x4xf32>,
    %c0_23 = arith.constant 0 : index
    %c0_24 = arith.constant 0 : index
    %c0_25 = arith.constant 0 : index
    %c0_26 = arith.constant 0 : index
    %10 = vector.load %arg1[%c0_23, %c0_24, %c0_25, %c0_26] : memref<1x16x16x4xbf16, #tpu.memory_space<vmem>>, vector<1x16x16x4xbf16>
    %11 = vector.shape_cast %10 : vector<1x16x16x4xbf16> to vector<16x16x4xbf16>
    %12 = arith.extf %11 : vector<16x16x4xbf16> to vector<16x16x4xf32>
    %c1 = arith.constant 1 : index
    %c1_27 = arith.constant 1 : index
    %c0_28 = arith.constant 0 : index
    %13 = vector.load %arg9[%c1, %c1_27, %c0_28] : memref<18x18x4xf32, #tpu.memory_space<vmem>>, vector<16x16x4xf32>
    tpu.vector_store %arg9[%c1, %c1_27, %c0_28], %12 {strides = array<i32>} : memref<18x18x4xf32, #tpu.memory_space<vmem>>, vector<16x16x4xf32>,
    %c0_29 = arith.constant 0 : index
    %c0_30 = arith.constant 0 : index
    %c0_31 = arith.constant 0 : index
    %14 = vector.load %arg9[%c0_29, %c0_30, %c0_31] : memref<18x18x4xf32, #tpu.memory_space<vmem>>, vector<16x16x4xf32>
    %c0_32 = arith.constant 0 : index
    %c0_33 = arith.constant 0 : index
    %c0_34 = arith.constant 0 : index
    %15 = vector.load %arg11[%c0_32, %c0_33, %c0_34] : memref<16x16x36xf32, #tpu.memory_space<vmem>>, vector<16x16x4xf32>
    tpu.vector_store %arg11[%c0_32, %c0_33, %c0_34], %14 {strides = array<i32>} : memref<16x16x36xf32, #tpu.memory_space<vmem>>, vector<16x16x4xf32>,
    %c0_35 = arith.constant 0 : index
    %c1_36 = arith.constant 1 : index
    %c0_37 = arith.constant 0 : index
    %16 = vector.load %arg9[%c0_35, %c1_36, %c0_37] : memref<18x18x4xf32, #tpu.memory_space<vmem>>, vector<16x16x4xf32>
    %c0_38 = arith.constant 0 : index
    %c0_39 = arith.constant 0 : index
    %c4 = arith.constant 4 : index
    %17 = vector.load %arg11[%c0_38, %c0_39, %c4] : memref<16x16x36xf32, #tpu.memory_space<vmem>>, vector<16x16x4xf32>
    tpu.vector_store %arg11[%c0_38, %c0_39, %c4], %16 {strides = array<i32>} : memref<16x16x36xf32, #tpu.memory_space<vmem>>, vector<16x16x4xf32>,
    %c0_40 = arith.constant 0 : index
    %c2 = arith.constant 2 : index
    %c0_41 = arith.constant 0 : index
    %18 = vector.load %arg9[%c0_40, %c2, %c0_41] : memref<18x18x4xf32, #tpu.memory_space<vmem>>, vector<16x16x4xf32>
    %c0_42 = arith.constant 0 : index
    %c0_43 = arith.constant 0 : index
    %c8 = arith.constant 8 : index
    %19 = vector.load %arg11[%c0_42, %c0_43, %c8] : memref<16x16x36xf32, #tpu.memory_space<vmem>>, vector<16x16x4xf32>
    tpu.vector_store %arg11[%c0_42, %c0_43, %c8], %18 {strides = array<i32>} : memref<16x16x36xf32, #tpu.memory_space<vmem>>, vector<16x16x4xf32>,
    %c1_44 = arith.constant 1 : index
    %c0_45 = arith.constant 0 : index
    %c0_46 = arith.constant 0 : index
    %20 = vector.load %arg9[%c1_44, %c0_45, %c0_46] : memref<18x18x4xf32, #tpu.memory_space<vmem>>, vector<16x16x4xf32>
    %c0_47 = arith.constant 0 : index
    %c0_48 = arith.constant 0 : index
    %c12 = arith.constant 12 : index
    %21 = vector.load %arg11[%c0_47, %c0_48, %c12] : memref<16x16x36xf32, #tpu.memory_space<vmem>>, vector<16x16x4xf32>
    tpu.vector_store %arg11[%c0_47, %c0_48, %c12], %20 {strides = array<i32>} : memref<16x16x36xf32, #tpu.memory_space<vmem>>, vector<16x16x4xf32>,
    %c1_49 = arith.constant 1 : index
    %c1_50 = arith.constant 1 : index
    %c0_51 = arith.constant 0 : index
    %22 = vector.load %arg9[%c1_49, %c1_50, %c0_51] : memref<18x18x4xf32, #tpu.memory_space<vmem>>, vector<16x16x4xf32>
    %c0_52 = arith.constant 0 : index
    %c0_53 = arith.constant 0 : index
    %c16 = arith.constant 16 : index
    %23 = vector.load %arg11[%c0_52, %c0_53, %c16] : memref<16x16x36xf32, #tpu.memory_space<vmem>>, vector<16x16x4xf32>
    tpu.vector_store %arg11[%c0_52, %c0_53, %c16], %22 {strides = array<i32>} : memref<16x16x36xf32, #tpu.memory_space<vmem>>, vector<16x16x4xf32>,
    %c1_54 = arith.constant 1 : index
    %c2_55 = arith.constant 2 : index
    %c0_56 = arith.constant 0 : index
    %24 = vector.load %arg9[%c1_54, %c2_55, %c0_56] : memref<18x18x4xf32, #tpu.memory_space<vmem>>, vector<16x16x4xf32>
    %c0_57 = arith.constant 0 : index
    %c0_58 = arith.constant 0 : index
    %c20 = arith.constant 20 : index
    %25 = vector.load %arg11[%c0_57, %c0_58, %c20] : memref<16x16x36xf32, #tpu.memory_space<vmem>>, vector<16x16x4xf32>
    tpu.vector_store %arg11[%c0_57, %c0_58, %c20], %24 {strides = array<i32>} : memref<16x16x36xf32, #tpu.memory_space<vmem>>, vector<16x16x4xf32>,
    %c2_59 = arith.constant 2 : index
    %c0_60 = arith.constant 0 : index
    %c0_61 = arith.constant 0 : index
    %26 = vector.load %arg9[%c2_59, %c0_60, %c0_61] : memref<18x18x4xf32, #tpu.memory_space<vmem>>, vector<16x16x4xf32>
    %c0_62 = arith.constant 0 : index
    %c0_63 = arith.constant 0 : index
    %c24 = arith.constant 24 : index
    %27 = vector.load %arg11[%c0_62, %c0_63, %c24] : memref<16x16x36xf32, #tpu.memory_space<vmem>>, vector<16x16x4xf32>
    tpu.vector_store %arg11[%c0_62, %c0_63, %c24], %26 {strides = array<i32>} : memref<16x16x36xf32, #tpu.memory_space<vmem>>, vector<16x16x4xf32>,
    %c2_64 = arith.constant 2 : index
    %c1_65 = arith.constant 1 : index
    %c0_66 = arith.constant 0 : index
    %28 = vector.load %arg9[%c2_64, %c1_65, %c0_66] : memref<18x18x4xf32, #tpu.memory_space<vmem>>, vector<16x16x4xf32>
    %c0_67 = arith.constant 0 : index
    %c0_68 = arith.constant 0 : index
    %c28 = arith.constant 28 : index
    %29 = vector.load %arg11[%c0_67, %c0_68, %c28] : memref<16x16x36xf32, #tpu.memory_space<vmem>>, vector<16x16x4xf32>
    tpu.vector_store %arg11[%c0_67, %c0_68, %c28], %28 {strides = array<i32>} : memref<16x16x36xf32, #tpu.memory_space<vmem>>, vector<16x16x4xf32>,
    %c2_69 = arith.constant 2 : index
    %c2_70 = arith.constant 2 : index
    %c0_71 = arith.constant 0 : index
    %30 = vector.load %arg9[%c2_69, %c2_70, %c0_71] : memref<18x18x4xf32, #tpu.memory_space<vmem>>, vector<16x16x4xf32>
    %c0_72 = arith.constant 0 : index
    %c0_73 = arith.constant 0 : index
    %c32 = arith.constant 32 : index
    %31 = vector.load %arg11[%c0_72, %c0_73, %c32] : memref<16x16x36xf32, #tpu.memory_space<vmem>>, vector<16x16x4xf32>
    tpu.vector_store %arg11[%c0_72, %c0_73, %c32], %30 {strides = array<i32>} : memref<16x16x36xf32, #tpu.memory_space<vmem>>, vector<16x16x4xf32>,
    %c0_74 = arith.constant 0 : index
    %c0_75 = arith.constant 0 : index
    %c0_76 = arith.constant 0 : index
    %32 = vector.load %arg11[%c0_74, %c0_75, %c0_76] : memref<16x16x36xf32, #tpu.memory_space<vmem>>, vector<16x16x36xf32>
    %33 = arith.truncf %32 : vector<16x16x36xf32> to vector<16x16x36xbf16>
    %c0_77 = arith.constant 0 : index
    %c0_78 = arith.constant 0 : index
    %34 = vector.load %arg2[%c0_77, %c0_78] : memref<36x4xbf16, #tpu.memory_space<vmem>>, vector<36x4xbf16>
    %cst_79 = arith.constant dense<0.000000e+00> : vector<16x16x4xf32>
    %35 = tpu.matmul %33, %34, %cst_79 {dimension_numbers = #tpu.dot_dimension_numbers<[2], [0], [0, 1], [1], [0, 0, 0, 1, 1, 1], [], []>} : vector<16x16x36xbf16>, vector<36x4xbf16>, vector<16x16x4xf32> -> vector<16x16x4xf32>
    %c0_80 = arith.constant 0 : index
    %c0_81 = arith.constant 0 : index
    %36 = vector.load %arg4[%c0_80, %c0_81] : memref<1x4xf32, #tpu.memory_space<vmem>>, vector<1x4xf32>
    %37 = vector.shape_cast %36 : vector<1x4xf32> to vector<1x1x4xf32>
    %38 = vector.broadcast %37 : vector<1x1x4xf32> to vector<16x16x4xf32>
    %39 = arith.mulf %35, %38 : vector<16x16x4xf32>
    %c0_82 = arith.constant 0 : index
    %c0_83 = arith.constant 0 : index
    %40 = vector.load %arg5[%c0_82, %c0_83] : memref<1x4xf32, #tpu.memory_space<vmem>>, vector<1x4xf32>
    %41 = vector.shape_cast %40 : vector<1x4xf32> to vector<1x1x4xf32>
    %42 = vector.broadcast %41 : vector<1x1x4xf32> to vector<16x16x4xf32>
    %43 = arith.addf %39, %42 : vector<16x16x4xf32>
    %cst_84 = arith.constant 0.000000e+00 : f32
    %44 = vector.broadcast %cst_84 : f32 to vector<16x16x4xf32>
    %45 = arith.maximumf %43, %44 : vector<16x16x4xf32>
    %c1_85 = arith.constant 1 : index
    %c1_86 = arith.constant 1 : index
    %c0_87 = arith.constant 0 : index
    %46 = vector.load %arg10[%c1_85, %c1_86, %c0_87] : memref<18x18x4xf32, #tpu.memory_space<vmem>>, vector<16x16x4xf32>
    tpu.vector_store %arg10[%c1_85, %c1_86, %c0_87], %45 {strides = array<i32>} : memref<18x18x4xf32, #tpu.memory_space<vmem>>, vector<16x16x4xf32>,
    %c0_88 = arith.constant 0 : index
    %c0_89 = arith.constant 0 : index
    %c0_90 = arith.constant 0 : index
    %47 = vector.load %arg10[%c0_88, %c0_89, %c0_90] : memref<18x18x4xf32, #tpu.memory_space<vmem>>, vector<16x16x4xf32>
    %c0_91 = arith.constant 0 : index
    %c0_92 = arith.constant 0 : index
    %c0_93 = arith.constant 0 : index
    %48 = vector.load %arg11[%c0_91, %c0_92, %c0_93] : memref<16x16x36xf32, #tpu.memory_space<vmem>>, vector<16x16x4xf32>
    tpu.vector_store %arg11[%c0_91, %c0_92, %c0_93], %47 {strides = array<i32>} : memref<16x16x36xf32, #tpu.memory_space<vmem>>, vector<16x16x4xf32>,
    %c0_94 = arith.constant 0 : index
    %c1_95 = arith.constant 1 : index
    %c0_96 = arith.constant 0 : index
    %49 = vector.load %arg10[%c0_94, %c1_95, %c0_96] : memref<18x18x4xf32, #tpu.memory_space<vmem>>, vector<16x16x4xf32>
    %c0_97 = arith.constant 0 : index
    %c0_98 = arith.constant 0 : index
    %c4_99 = arith.constant 4 : index
    %50 = vector.load %arg11[%c0_97, %c0_98, %c4_99] : memref<16x16x36xf32, #tpu.memory_space<vmem>>, vector<16x16x4xf32>
    tpu.vector_store %arg11[%c0_97, %c0_98, %c4_99], %49 {strides = array<i32>} : memref<16x16x36xf32, #tpu.memory_space<vmem>>, vector<16x16x4xf32>,
    %c0_100 = arith.constant 0 : index
    %c2_101 = arith.constant 2 : index
    %c0_102 = arith.constant 0 : index
    %51 = vector.load %arg10[%c0_100, %c2_101, %c0_102] : memref<18x18x4xf32, #tpu.memory_space<vmem>>, vector<16x16x4xf32>
    %c0_103 = arith.constant 0 : index
    %c0_104 = arith.constant 0 : index
    %c8_105 = arith.constant 8 : index
    %52 = vector.load %arg11[%c0_103, %c0_104, %c8_105] : memref<16x16x36xf32, #tpu.memory_space<vmem>>, vector<16x16x4xf32>
    tpu.vector_store %arg11[%c0_103, %c0_104, %c8_105], %51 {strides = array<i32>} : memref<16x16x36xf32, #tpu.memory_space<vmem>>, vector<16x16x4xf32>,
    %c1_106 = arith.constant 1 : index
    %c0_107 = arith.constant 0 : index
    %c0_108 = arith.constant 0 : index
    %53 = vector.load %arg10[%c1_106, %c0_107, %c0_108] : memref<18x18x4xf32, #tpu.memory_space<vmem>>, vector<16x16x4xf32>
    %c0_109 = arith.constant 0 : index
    %c0_110 = arith.constant 0 : index
    %c12_111 = arith.constant 12 : index
    %54 = vector.load %arg11[%c0_109, %c0_110, %c12_111] : memref<16x16x36xf32, #tpu.memory_space<vmem>>, vector<16x16x4xf32>
    tpu.vector_store %arg11[%c0_109, %c0_110, %c12_111], %53 {strides = array<i32>} : memref<16x16x36xf32, #tpu.memory_space<vmem>>, vector<16x16x4xf32>,
    %c1_112 = arith.constant 1 : index
    %c1_113 = arith.constant 1 : index
    %c0_114 = arith.constant 0 : index
    %55 = vector.load %arg10[%c1_112, %c1_113, %c0_114] : memref<18x18x4xf32, #tpu.memory_space<vmem>>, vector<16x16x4xf32>
    %c0_115 = arith.constant 0 : index
    %c0_116 = arith.constant 0 : index
    %c16_117 = arith.constant 16 : index
    %56 = vector.load %arg11[%c0_115, %c0_116, %c16_117] : memref<16x16x36xf32, #tpu.memory_space<vmem>>, vector<16x16x4xf32>
    tpu.vector_store %arg11[%c0_115, %c0_116, %c16_117], %55 {strides = array<i32>} : memref<16x16x36xf32, #tpu.memory_space<vmem>>, vector<16x16x4xf32>,
    %c1_118 = arith.constant 1 : index
    %c2_119 = arith.constant 2 : index
    %c0_120 = arith.constant 0 : index
    %57 = vector.load %arg10[%c1_118, %c2_119, %c0_120] : memref<18x18x4xf32, #tpu.memory_space<vmem>>, vector<16x16x4xf32>
    %c0_121 = arith.constant 0 : index
    %c0_122 = arith.constant 0 : index
    %c20_123 = arith.constant 20 : index
    %58 = vector.load %arg11[%c0_121, %c0_122, %c20_123] : memref<16x16x36xf32, #tpu.memory_space<vmem>>, vector<16x16x4xf32>
    tpu.vector_store %arg11[%c0_121, %c0_122, %c20_123], %57 {strides = array<i32>} : memref<16x16x36xf32, #tpu.memory_space<vmem>>, vector<16x16x4xf32>,
    %c2_124 = arith.constant 2 : index
    %c0_125 = arith.constant 0 : index
    %c0_126 = arith.constant 0 : index
    %59 = vector.load %arg10[%c2_124, %c0_125, %c0_126] : memref<18x18x4xf32, #tpu.memory_space<vmem>>, vector<16x16x4xf32>
    %c0_127 = arith.constant 0 : index
    %c0_128 = arith.constant 0 : index
    %c24_129 = arith.constant 24 : index
    %60 = vector.load %arg11[%c0_127, %c0_128, %c24_129] : memref<16x16x36xf32, #tpu.memory_space<vmem>>, vector<16x16x4xf32>
    tpu.vector_store %arg11[%c0_127, %c0_128, %c24_129], %59 {strides = array<i32>} : memref<16x16x36xf32, #tpu.memory_space<vmem>>, vector<16x16x4xf32>,
    %c2_130 = arith.constant 2 : index
    %c1_131 = arith.constant 1 : index
    %c0_132 = arith.constant 0 : index
    %61 = vector.load %arg10[%c2_130, %c1_131, %c0_132] : memref<18x18x4xf32, #tpu.memory_space<vmem>>, vector<16x16x4xf32>
    %c0_133 = arith.constant 0 : index
    %c0_134 = arith.constant 0 : index
    %c28_135 = arith.constant 28 : index
    %62 = vector.load %arg11[%c0_133, %c0_134, %c28_135] : memref<16x16x36xf32, #tpu.memory_space<vmem>>, vector<16x16x4xf32>
    tpu.vector_store %arg11[%c0_133, %c0_134, %c28_135], %61 {strides = array<i32>} : memref<16x16x36xf32, #tpu.memory_space<vmem>>, vector<16x16x4xf32>,
    %c2_136 = arith.constant 2 : index
    %c2_137 = arith.constant 2 : index
    %c0_138 = arith.constant 0 : index
    %63 = vector.load %arg10[%c2_136, %c2_137, %c0_138] : memref<18x18x4xf32, #tpu.memory_space<vmem>>, vector<16x16x4xf32>
    %c0_139 = arith.constant 0 : index
    %c0_140 = arith.constant 0 : index
    %c32_141 = arith.constant 32 : index
    %64 = vector.load %arg11[%c0_139, %c0_140, %c32_141] : memref<16x16x36xf32, #tpu.memory_space<vmem>>, vector<16x16x4xf32>
    tpu.vector_store %arg11[%c0_139, %c0_140, %c32_141], %63 {strides = array<i32>} : memref<16x16x36xf32, #tpu.memory_space<vmem>>, vector<16x16x4xf32>,
    %c0_142 = arith.constant 0 : index
    %c0_143 = arith.constant 0 : index
    %c0_144 = arith.constant 0 : index
    %65 = vector.load %arg11[%c0_142, %c0_143, %c0_144] : memref<16x16x36xf32, #tpu.memory_space<vmem>>, vector<16x16x36xf32>
    %66 = arith.truncf %65 : vector<16x16x36xf32> to vector<16x16x36xbf16>
    %c0_145 = arith.constant 0 : index
    %c0_146 = arith.constant 0 : index
    %67 = vector.load %arg3[%c0_145, %c0_146] : memref<36x4xbf16, #tpu.memory_space<vmem>>, vector<36x4xbf16>
    %cst_147 = arith.constant dense<0.000000e+00> : vector<16x16x4xf32>
    %68 = tpu.matmul %66, %67, %cst_147 {dimension_numbers = #tpu.dot_dimension_numbers<[2], [0], [0, 1], [1], [0, 0, 0, 1, 1, 1], [], []>} : vector<16x16x36xbf16>, vector<36x4xbf16>, vector<16x16x4xf32> -> vector<16x16x4xf32>
    %c0_148 = arith.constant 0 : index
    %c0_149 = arith.constant 0 : index
    %69 = vector.load %arg6[%c0_148, %c0_149] : memref<1x4xf32, #tpu.memory_space<vmem>>, vector<1x4xf32>
    %70 = vector.shape_cast %69 : vector<1x4xf32> to vector<1x1x4xf32>
    %71 = vector.broadcast %70 : vector<1x1x4xf32> to vector<16x16x4xf32>
    %72 = arith.mulf %68, %71 : vector<16x16x4xf32>
    %c0_150 = arith.constant 0 : index
    %c0_151 = arith.constant 0 : index
    %73 = vector.load %arg7[%c0_150, %c0_151] : memref<1x4xf32, #tpu.memory_space<vmem>>, vector<1x4xf32>
    %74 = vector.shape_cast %73 : vector<1x4xf32> to vector<1x1x4xf32>
    %75 = vector.broadcast %74 : vector<1x1x4xf32> to vector<16x16x4xf32>
    %76 = arith.addf %72, %75 : vector<16x16x4xf32>
    %77 = arith.addf %76, %12 : vector<16x16x4xf32>
    %cst_152 = arith.constant 0.000000e+00 : f32
    %78 = vector.broadcast %cst_152 : f32 to vector<16x16x4xf32>
    %79 = arith.maximumf %77, %78 : vector<16x16x4xf32>
    %c0_153 = arith.constant 0 : index
    %c0_154 = arith.constant 0 : index
    %c0_155 = arith.constant 0 : index
    %c0_156 = arith.constant 0 : index
    %80 = vector.load %arg8[%c0_153, %c0_154, %c0_155, %c0_156] : memref<1x16x16x4xf32, #tpu.memory_space<vmem>>, vector<1x16x16x4xf32>
    %81 = vector.shape_cast %80 : vector<1x16x16x4xf32> to vector<16x16x4xf32>
    %82 = vector.shape_cast %79 : vector<16x16x4xf32> to vector<1x16x16x4xf32>
    tpu.vector_store %arg8[%c0_153, %c0_154, %c0_155, %c0_156], %82 {strides = array<i32>} : memref<1x16x16x4xf32, #tpu.memory_space<vmem>>, vector<1x16x16x4xf32>,
    return
  }
  func.func @transform_0(%arg0: i32) -> (i32, i32, i32, i32) {
    %c0_i32 = arith.constant 0 : i32
    %c0_i32_0 = arith.constant 0 : i32
    %c0_i32_1 = arith.constant 0 : i32
    %c0_i32_2 = arith.constant 0 : i32
    return %arg0, %c0_i32, %c0_i32_0, %c0_i32_1 : i32, i32, i32, i32
  }
  func.func @transform_1(%arg0: i32) -> (i32, i32) {
    %c0_i32 = arith.constant 0 : i32
    %c0_i32_0 = arith.constant 0 : i32
    %c0_i32_1 = arith.constant 0 : i32
    return %c0_i32, %c0_i32_0 : i32, i32
  }
  func.func @transform_2(%arg0: i32) -> (i32, i32) {
    %c0_i32 = arith.constant 0 : i32
    %c0_i32_0 = arith.constant 0 : i32
    %c0_i32_1 = arith.constant 0 : i32
    return %c0_i32, %c0_i32_0 : i32, i32
  }
  func.func @transform_3(%arg0: i32) -> (i32, i32) {
    %c0_i32 = arith.constant 0 : i32
    %c0_i32_0 = arith.constant 0 : i32
    %c0_i32_1 = arith.constant 0 : i32
    return %c0_i32, %c0_i32_0 : i32, i32
  }
  func.func @transform_4(%arg0: i32) -> (i32, i32) {
    %c0_i32 = arith.constant 0 : i32
    %c0_i32_0 = arith.constant 0 : i32
    %c0_i32_1 = arith.constant 0 : i32
    return %c0_i32, %c0_i32_0 : i32, i32
  }
  func.func @transform_5(%arg0: i32) -> (i32, i32) {
    %c0_i32 = arith.constant 0 : i32
    %c0_i32_0 = arith.constant 0 : i32
    %c0_i32_1 = arith.constant 0 : i32
    return %c0_i32, %c0_i32_0 : i32, i32
  }
  func.func @transform_6(%arg0: i32) -> (i32, i32) {
    %c0_i32 = arith.constant 0 : i32
    %c0_i32_0 = arith.constant 0 : i32
    %c0_i32_1 = arith.constant 0 : i32
    return %c0_i32, %c0_i32_0 : i32, i32
  }
  func.func @transform_7(%arg0: i32) -> (i32, i32, i32, i32) {
    %c0_i32 = arith.constant 0 : i32
    %c0_i32_0 = arith.constant 0 : i32
    %c0_i32_1 = arith.constant 0 : i32
    %c0_i32_2 = arith.constant 0 : i32
    return %arg0, %c0_i32, %c0_i32_0, %c0_i32_1 : i32, i32, i32, i32
  }
}

</mosaic_0001>

<bundles_post_ra>
// kernel: basic_block_forward.1
= control target key start
LH: loop header
LB: loop body
LE: loop exit
PB: predicated region body
PF: predicated region fallthrough
CT: control target
= control target key end

     0   :  { %s4940_s24 = smov 0   ;;  %s7441_s0 = inlined_call_operand.vmem [shape: bf16[2,16,16,4], index: 0, kind: input, shape index: {}]   ;;  %s7442_s1 = inlined_call_operand.vmem [shape: bf16[36,4], index: 1, kind: input, shape index: {}]   ;;  %s7443_s2 = inlined_call_operand.vmem [shape: bf16[36,4], index: 2, kind: input, shape index: {}]   ;;  %s7444_s3 = inlined_call_operand.vmem [shape: f32[1,4], index: 3, kind: input, shape index: {}]   ;;  %s7445_s4 = inlined_call_operand.vmem [shape: f32[1,4], index: 4, kind: input, shape index: {}]   ;;  %s7446_s5 = inlined_call_operand.vmem [shape: f32[1,4], index: 5, kind: input, shape index: {}]   ;;  %s7447_s6 = inlined_call_operand.vmem [shape: f32[1,4], index: 6, kind: input, shape index: {}]   ;;  %s7448_s7 = inlined_call_operand.vmem [shape: f32[2,16,16,4], index: 7, kind: output, shape index: {}]  }
   0x1 LB: > { %s4610_s25 = sadd.s32 4294967295, %s4889_s24   ;;  %p4614_p0 = scmp.ge.s32.totalorder %s4889_s24, 1  ;;  %s4889_s24 = sphi %s4940_s24, %s17_s24  }
   0x2   : > { %p237_p1 = scmp.lt.s32.totalorder %s4889_s24, 3 }
   0x4   : > { %p238_p2 = pnand %p4614_p0, %p237_p1 }
   0x6   : > { %241 = sbr.rel (%p238_p2) target bundleno = 1693 (0x69d), region = 48 }
   0xb   : > { %vm280_vm0 = vcmask 31744   ;;  %vm289_vm1 = vcmask 24576   ;;  %vm283_vm2 = vcmask 25600   ;;  %p4950_p3 = scmp.lt.s32.totalorder %s4610_s25, 1  ;;  %v4891_v0 = vmov 0.0   ;;  %s4892_s8 = smov 4  }
   0xc   : > { %281 = vst.msk [vmem:[#allocation2] sm:$0xff] %vm280_vm0, %v4891_v0  ;;  %282 = vst.msk [vmem:[#allocation2 + $0x8] sm:$0xff] %vm280_vm0, %v4891_v0  ;;  %s4893_s9 = smov 8   ;;  %vm690_vm3 = vcmask 64544   ;;  %s4894_s10 = smov 12   ;;  %vm883_vm4 = vcmask 97344  }
   0xd   : > { %286 = vst.msk [vmem:[#allocation2 + $0x198] sm:$0xff] %vm280_vm0, %v4891_v0  ;;  %287 = vst.msk [vmem:[#allocation2 + $0x1a0] sm:$0xff] %vm280_vm0, %v4891_v0  ;;  %s7669_s25 = smov (!%p4950_p3, %s4610_s25), 1  ;;  %s4895_s11 = smov 16   ;;  %vm1076_vm5 = vcmask 130144   ;;  %vm1269_vm6 = vcmask 162944  }
   0xe   : > { %291 = vst.msk [vmem:[#allocation2 + $0x18] sm:$0x1] %vm289_vm1, %v4891_v0  ;;  %292 = vst.msk [vmem:[#allocation2 + $0x30] sm:$0x1] %vm289_vm1, %v4891_v0  ;;  %s4663_s27 = sshll.u32 %s7669_s25, 7  ;;  %s4896_s12 = smov 20  }
   0xf   : > { %293 = vst.msk [vmem:[#allocation2 + $0x48] sm:$0x1] %vm289_vm1, %v4891_v0  ;;  %294 = vst.msk [vmem:[#allocation2 + $0x60] sm:$0x1] %vm289_vm1, %v4891_v0  ;;  %s5132_s30 = scalar_lea.vmem %s7441_s0, %s4663_s27  ;;  %s4897_s13 = smov 24   ;;  %vm1462_vm7 = vcmask 195744  }
  0x10   : > { %295 = vst.msk [vmem:[#allocation2 + $0x78] sm:$0x1] %vm289_vm1, %v4891_v0  ;;  %296 = vst.msk [vmem:[#allocation2 + $0x90] sm:$0x1] %vm289_vm1, %v4891_v0  ;;  %v5135_v1 = vld [vmem:[%s5132_s30] sm:$0xff]   ;;  %v5138_v2 = vld [vmem:[%s5132_s30 + $0x8] sm:$0xff]  }
  0x11   : > { %297 = vst.msk [vmem:[#allocation2 + $0xa8] sm:$0x1] %vm289_vm1, %v4891_v0  ;;  %298 = vst.msk [vmem:[#allocation2 + $0xc0] sm:$0x1] %vm289_vm1, %v4891_v0  ;;  %v5141_v3 = vld [vmem:[%s5132_s30 + $0x10] sm:$0xff]   ;;  %v7477_v4 = vunpack.c.l.bf16 %v5135_v1  ;;  %v7478_v5 = vunpack.c.l.bf16 %v5138_v2  ;;  %v7475_v6 = vunpack.c.h.bf16 %v5135_v1  ;;  %v5148_v8 = vld [vmem:[%s5132_s30 + $0x18] sm:$0xff]   ;;  %v7476_v13 = vunpack.c.h.bf16 %v5138_v2 }
  0x12   : > { %299 = vst.msk [vmem:[#allocation2 + $0xd8] sm:$0x1] %vm289_vm1, %v4891_v0  ;;  %300 = vst.msk [vmem:[#allocation2 + $0xf0] sm:$0x1] %vm289_vm1, %v4891_v0  ;;  %v7473_v7 = vunpack.c.l.bf16 %v5141_v3  ;;  %v5151_v9 = vld [vmem:[%s5132_s30 + $0x20] sm:$0xff]   ;;  %v5154_v10 = vld [vmem:[%s5132_s30 + $0x28] sm:$0xff]   ;;  %v7474_v14 = vunpack.c.l.bf16 %v5148_v8  ;;  %v7471_v15 = vunpack.c.h.bf16 %v5141_v3  ;;  %v7472_v18 = vunpack.c.h.bf16 %v5148_v8 }
  0x13   : > { %301 = vst.msk [vmem:[#allocation2 + $0x108] sm:$0x1] %vm289_vm1, %v4891_v0  ;;  %302 = vst.msk [vmem:[#allocation2 + $0x120] sm:$0x1] %vm289_vm1, %v4891_v0  ;;  %v530_v11 = vld [vmem:[#allocation2 + $0x1] sm:$0xff]  ;;  %v7469_v16 = vunpack.c.l.bf16 %v5151_v9  ;;  %v5161_v17 = vld [vmem:[%s5132_s30 + $0x30] sm:$0xff]   ;;  %v7470_v19 = vunpack.c.l.bf16 %v5154_v10  ;;  %v7467_v20 = vunpack.c.h.bf16 %v5151_v9  ;;  %v7468_v25 = vunpack.c.h.bf16 %v5154_v10 }
  0x14   : > { %303 = vst.msk [vmem:[#allocation2 + $0x138] sm:$0x1] %vm289_vm1, %v4891_v0  ;;  %304 = vst.msk [vmem:[#allocation2 + $0x150] sm:$0x1] %vm289_vm1, %v4891_v0  ;;  %594 = vrot.lane.b32.xlu0 %v530_v11, %s4892_s8  ;;  %v7465_v21 = vunpack.c.l.bf16 %v5161_v17  ;;  %v5181_v22 = vld [vmem:[%s5132_s30 + $0x38] sm:$0xff]   ;;  %v5184_v23 = vld [vmem:[%s5132_s30 + $0x40] sm:$0xff]   ;;  %v7463_v27 = vunpack.c.h.bf16 %v5161_v17 }
  0x15   : > { %305 = vst.msk [vmem:[#allocation2 + $0x168] sm:$0x1] %vm289_vm1, %v4891_v0  ;;  %306 = vst.msk [vmem:[#allocation2 + $0x180] sm:$0x1] %vm289_vm1, %v4891_v0  ;;  %v5187_v24 = vld [vmem:[%s5132_s30 + $0x48] sm:$0xff]   ;;  %v7466_v26 = vunpack.c.l.bf16 %v5181_v22  ;;  %v7461_v28 = vunpack.c.l.bf16 %v5184_v23  ;;  %v5206_v29 = vld [vmem:[%s5132_s30 + $0x50] sm:$0xff]   ;;  %v7464_v32 = vunpack.c.h.bf16 %v5181_v22  ;;  %v7459_v34 = vunpack.c.h.bf16 %v5184_v23 }
  0x16   : > { %309 = vst.msk [vmem:[#allocation2 + $0x29] sm:$0x1] %vm289_vm1, %v4891_v0  ;;  %310 = vst.msk [vmem:[#allocation2 + $0x41] sm:$0x1] %vm289_vm1, %v4891_v0  ;;  %v5209_v30 = vld [vmem:[%s5132_s30 + $0x58] sm:$0xff]   ;;  %v5212_v31 = vld [vmem:[%s5132_s30 + $0x60] sm:$0xff]   ;;  %v7462_v33 = vunpack.c.l.bf16 %v5187_v24  ;;  %v7457_v35 = vunpack.c.l.bf16 %v5206_v29  ;;  %v7460_v38 = vunpack.c.h.bf16 %v5187_v24  ;;  %v7455_v40 = vunpack.c.h.bf16 %v5206_v29 }
  0x17   : > { %311 = vst.msk [vmem:[#allocation2 + $0x59] sm:$0x1] %vm289_vm1, %v4891_v0  ;;  %312 = vst.msk [vmem:[#allocation2 + $0x71] sm:$0x1] %vm289_vm1, %v4891_v0  ;;  %v5231_v36 = vld [vmem:[%s5132_s30 + $0x68] sm:$0xff]   ;;  %v5234_v37 = vld [vmem:[%s5132_s30 + $0x70] sm:$0xff]   ;;  %v7458_v39 = vunpack.c.l.bf16 %v5209_v30  ;;  %v7453_v41 = vunpack.c.l.bf16 %v5212_v31  ;;  %v7456_v44 = vunpack.c.h.bf16 %v5209_v30  ;;  %v7451_v46 = vunpack.c.h.bf16 %v5212_v31 }
  0x18   : > { %313 = vst.msk [vmem:[#allocation2 + $0x89] sm:$0x1] %vm289_vm1, %v4891_v0  ;;  %314 = vst.msk [vmem:[#allocation2 + $0xa1] sm:$0x1] %vm289_vm1, %v4891_v0  ;;  %v467_v43 = vld [vmem:[#allocation2 + $0x8] sm:$0xff]  ;;  %v7454_v45 = vunpack.c.l.bf16 %v5231_v36  ;;  %v7450_v47 = vunpack.c.l.bf16 %v5234_v37  ;;  %v7452_v48 = vunpack.c.h.bf16 %v5231_v36  ;;  %v7449_v49 = vunpack.c.h.bf16 %v5234_v37  ;;  %s4898_s14 = smov 28  }
  0x19   : > { %315 = vst.msk [vmem:[#allocation2 + $0xb9] sm:$0x1] %vm289_vm1, %v4891_v0  ;;  %316 = vst.msk [vmem:[#allocation2 + $0xd1] sm:$0x1] %vm289_vm1, %v4891_v0  ;;  %vm2192_vm8 = vcmask 1041408   ;;  %s4899_s21 = smov 32  }
  0x1a   : > { %317 = vst.msk [vmem:[#allocation2 + $0xe9] sm:$0x1] %vm289_vm1, %v4891_v0  ;;  %318 = vst.msk [vmem:[#allocation2 + $0x101] sm:$0x1] %vm289_vm1, %v4891_v0  ;;  %vm1656_vm9 = vcmask 228544   ;;  %vm1849_vm10 = vcmask 261344  }
  0x1b   : > { %319 = vst.msk [vmem:[#allocation2 + $0x119] sm:$0x1] %vm289_vm1, %v4891_v0  ;;  %320 = vst.msk [vmem:[#allocation2 + $0x131] sm:$0x1] %vm289_vm1, %v4891_v0  ;;  %vm2042_vm11 = vcmask 294144   ;;  %vm2143_vm12 = vcmask 293888  }
  0x1c   : > { %321 = vst.msk [vmem:[#allocation2 + $0x149] sm:$0x1] %vm289_vm1, %v4891_v0  ;;  %322 = vst.msk [vmem:[#allocation2 + $0x161] sm:$0x1] %vm289_vm1, %v4891_v0 }
  0x1d   : > { %323 = vst.msk [vmem:[#allocation2 + $0x179] sm:$0x1] %vm289_vm1, %v4891_v0  ;;  %324 = vst.msk [vmem:[#allocation2 + $0x191] sm:$0x1] %vm289_vm1, %v4891_v0 }
  0x1e   : > { %326 = vst.msk [vmem:[#allocation3] sm:$0xff] %vm280_vm0, %v4891_v0  ;;  %327 = vst.msk [vmem:[#allocation3 + $0x8] sm:$0xff] %vm280_vm0, %v4891_v0 }
  0x1f   : > { %330 = vst.msk [vmem:[#allocation3 + $0x198] sm:$0xff] %vm280_vm0, %v4891_v0  ;;  %331 = vst.msk [vmem:[#allocation3 + $0x1a0] sm:$0xff] %vm280_vm0, %v4891_v0 }
  0x20   : > { %334 = vst.msk [vmem:[#allocation3 + $0x18] sm:$0x1] %vm289_vm1, %v4891_v0  ;;  %335 = vst.msk [vmem:[#allocation3 + $0x30] sm:$0x1] %vm289_vm1, %v4891_v0 }
  0x21   : > { %336 = vst.msk [vmem:[#allocation3 + $0x48] sm:$0x1] %vm289_vm1, %v4891_v0  ;;  %337 = vst.msk [vmem:[#allocation3 + $0x60] sm:$0x1] %vm289_vm1, %v4891_v0 }
  0x22   : > { %338 = vst.msk [vmem:[#allocation3 + $0x78] sm:$0x1] %vm289_vm1, %v4891_v0  ;;  %339 = vst.msk [vmem:[#allocation3 + $0x90] sm:$0x1] %vm289_vm1, %v4891_v0 }
  0x23   : > { %340 = vst.msk [vmem:[#allocation3 + $0xa8] sm:$0x1] %vm289_vm1, %v4891_v0  ;;  %341 = vst.msk [vmem:[#allocation3 + $0xc0] sm:$0x1] %vm289_vm1, %v4891_v0 }
  0x24   : > { %342 = vst.msk [vmem:[#allocation3 + $0xd8] sm:$0x1] %vm289_vm1, %v4891_v0  ;;  %343 = vst.msk [vmem:[#allocation3 + $0xf0] sm:$0x1] %vm289_vm1, %v4891_v0 }
  0x25   : > { %344 = vst.msk [vmem:[#allocation3 + $0x108] sm:$0x1] %vm289_vm1, %v4891_v0  ;;  %345 = vst.msk [vmem:[#allocation3 + $0x120] sm:$0x1] %vm289_vm1, %v4891_v0 }
  0x26   : > { %346 = vst.msk [vmem:[#allocation3 + $0x138] sm:$0x1] %vm289_vm1, %v4891_v0  ;;  %347 = vst.msk [vmem:[#allocation3 + $0x150] sm:$0x1] %vm289_vm1, %v4891_v0 }
  0x27   : > { %348 = vst.msk [vmem:[#allocation3 + $0x168] sm:$0x1] %vm289_vm1, %v4891_v0  ;;  %349 = vst.msk [vmem:[#allocation3 + $0x180] sm:$0x1] %vm289_vm1, %v4891_v0 }
  0x28   : > { %352 = vst.msk [vmem:[#allocation3 + $0x29] sm:$0x1] %vm289_vm1, %v4891_v0  ;;  %353 = vst.msk [vmem:[#allocation3 + $0x41] sm:$0x1] %vm289_vm1, %v4891_v0 }
  0x29   : > { %354 = vst.msk [vmem:[#allocation3 + $0x59] sm:$0x1] %vm289_vm1, %v4891_v0  ;;  %355 = vst.msk [vmem:[#allocation3 + $0x71] sm:$0x1] %vm289_vm1, %v4891_v0 }
  0x2a   : > { %356 = vst.msk [vmem:[#allocation3 + $0x89] sm:$0x1] %vm289_vm1, %v4891_v0  ;;  %357 = vst.msk [vmem:[#allocation3 + $0xa1] sm:$0x1] %vm289_vm1, %v4891_v0 }
  0x2b   : > { %358 = vst.msk [vmem:[#allocation3 + $0xb9] sm:$0x1] %vm289_vm1, %v4891_v0  ;;  %359 = vst.msk [vmem:[#allocation3 + $0xd1] sm:$0x1] %vm289_vm1, %v4891_v0 }
  0x2c   : > { %360 = vst.msk [vmem:[#allocation3 + $0xe9] sm:$0x1] %vm289_vm1, %v4891_v0  ;;  %361 = vst.msk [vmem:[#allocation3 + $0x101] sm:$0x1] %vm289_vm1, %v4891_v0 }
  0x2d   : > { %362 = vst.msk [vmem:[#allocation3 + $0x119] sm:$0x1] %vm289_vm1, %v4891_v0  ;;  %363 = vst.msk [vmem:[#allocation3 + $0x131] sm:$0x1] %vm289_vm1, %v4891_v0 }
  0x2e   : > { %364 = vst.msk [vmem:[#allocation3 + $0x149] sm:$0x1] %vm289_vm1, %v4891_v0  ;;  %365 = vst.msk [vmem:[#allocation3 + $0x161] sm:$0x1] %vm289_vm1, %v4891_v0 }
  0x2f   : > { %366 = vst.msk [vmem:[#allocation3 + $0x179] sm:$0x1] %vm289_vm1, %v4891_v0  ;;  %367 = vst.msk [vmem:[#allocation3 + $0x191] sm:$0x1] %vm289_vm1, %v4891_v0 }
  0x30   : > { %284 = vst.msk [vmem:[#allocation2 + $0x10] sm:$0x3] %vm283_vm2, %v4891_v0  ;;  %288 = vst.msk [vmem:[#allocation2 + $0x1a8] sm:$0x3] %vm283_vm2, %v4891_v0 }
  0x31   : > { %328 = vst.msk [vmem:[#allocation3 + $0x10] sm:$0x3] %vm283_vm2, %v4891_v0  ;;  %332 = vst.msk [vmem:[#allocation3 + $0x1a8] sm:$0x3] %vm283_vm2, %v4891_v0 }
  0x32   : > { %290 = vst.msk [vmem:[#allocation2] sm:$0x1] %vm289_vm1, %v4891_v0  ;;  %307 = vst.msk [vmem:[#allocation2 + $0x198] sm:$0x1] %vm289_vm1, %v4891_v0 }
  0x33   : > { %308 = vst.msk [vmem:[#allocation2 + $0x11] sm:$0x1] %vm289_vm1, %v4891_v0  ;;  %333 = vst.msk [vmem:[#allocation3] sm:$0x1] %vm289_vm1, %v4891_v0 }
  0x34   : > { %350 = vst.msk [vmem:[#allocation3 + $0x198] sm:$0x1] %vm289_vm1, %v4891_v0  ;;  %325 = vst.msk [vmem:[#allocation2 + $0x1a9] sm:$0x1] %vm289_vm1, %v4891_v0 }
  0x35   : > { %351 = vst.msk [vmem:[#allocation3 + $0x11] sm:$0x1] %vm289_vm1, %v4891_v0  ;;  %368 = vst.msk [vmem:[#allocation3 + $0x1a9] sm:$0x1] %vm289_vm1, %v4891_v0 }
  0x36   : > { %7544 = vst [vmem:[#allocation5_spill] sm:$0xff] %v5135_v1  ;;  %7545 = vst [vmem:[#allocation6_spill] sm:$0xff] %v5138_v2  ;;  %v723_v1 = vld [vmem:[#allocation2 + $0x2] sm:$0xff] }
  0x37   : > { %7546 = vst [vmem:[#allocation7_spill] sm:$0xff] %v5141_v3  ;;  %7547 = vst [vmem:[#allocation8_spill] sm:$0xff] %v5148_v8  ;;  %v531_v12 = vld [vmem:[#allocation2 + $0x9] sm:$0xff] }
  0x38   : > { %7548 = vst [vmem:[#allocation9_spill] sm:$0xff] %v5151_v9  ;;  %7549 = vst [vmem:[#allocation10_spill] sm:$0xff] %v5154_v10  ;;  %596 = vrot.lane.b32.xlu0 %v531_v12, %s4892_s8 }
  0x39   : > { %7550 = vst [vmem:[#allocation11_spill] sm:$0xff] %v5161_v17  ;;  %434 = vst.msk [vmem:[#allocation2 + $0x19] sm:$0xff] %vm280_vm0, %v7477_v4  ;;  %v466_v42 = vld [vmem:[#allocation2] sm:$0xff]  ;;  %v5524_v17 = vld [vmem:[%s5132_s30 + $0x78] sm:$0xff]  }
  0x3a   : > { %436 = vst.msk [vmem:[#allocation2 + $0x31] sm:$0xff] %vm280_vm0, %v7478_v5  ;;  %435 = vst.msk [vmem:[#allocation2 + $0x21] sm:$0xff] %vm280_vm0, %v7475_v6  ;;  %v7510_v3 = vunpack.c.h.bf16 %v5524_v17 }
  0x3b   : > { %438 = vst.msk [vmem:[#allocation2 + $0x49] sm:$0xff] %vm280_vm0, %v7473_v7  ;;  %7551 = vst [vmem:[#allocation12_spill] sm:$0xff] %v5181_v22  ;;  %v7507_v22 = vunpack.c.l.bf16 %v5524_v17 }
  0x3c   : > { %7552 = vst [vmem:[#allocation13_spill] sm:$0xff] %v5184_v23  ;;  %7553 = vst [vmem:[#allocation14_spill] sm:$0xff] %v5187_v24 }
  0x3d   : > { %437 = vst.msk [vmem:[#allocation2 + $0x39] sm:$0xff] %vm280_vm0, %v7476_v13  ;;  %440 = vst.msk [vmem:[#allocation2 + $0x61] sm:$0xff] %vm280_vm0, %v7474_v14 }
  0x3e   : > { %439 = vst.msk [vmem:[#allocation2 + $0x51] sm:$0xff] %vm280_vm0, %v7471_v15  ;;  %442 = vst.msk [vmem:[#allocation2 + $0x79] sm:$0xff] %vm280_vm0, %v7469_v16 }
  0x3f   : > { %7554 = vst [vmem:[#allocation15_spill] sm:$0xff] %v5206_v29  ;;  %7555 = vst [vmem:[#allocation16_spill] sm:$0xff] %v5209_v30 }
  0x40   : > { %7556 = vst [vmem:[#allocation17_spill] sm:$0xff] %v5212_v31  ;;  %441 = vst.msk [vmem:[#allocation2 + $0x69] sm:$0xff] %vm280_vm0, %v7472_v18  ;;  %v5297_v50 = vld [vmem:[#allocation2 + $0x19] sm:$0xff] }
  0x41   : > { %444 = vst.msk [vmem:[#allocation2 + $0x91] sm:$0xff] %vm280_vm0, %v7470_v19  ;;  %443 = vst.msk [vmem:[#allocation2 + $0x81] sm:$0xff] %vm280_vm0, %v7467_v20  ;;  %v5299_v51 = vld [vmem:[#allocation2 + $0x31] sm:$0xff]  ;;  %598 = vrot.lane.b32.xlu1 %v5297_v50, %s4892_s8  ;;  %v5311_v52 = vld [vmem:[#allocation2 + $0x21] sm:$0xff] }
  0x42   : > { %446 = vst.msk [vmem:[#allocation2 + $0xa9] sm:$0xff] %vm280_vm0, %v7465_v21  ;;  %7557 = vst [vmem:[#allocation18_spill] sm:$0xff] %v5231_v36  ;;  %602 = vrot.lane.b32.xlu0 %v5299_v51, %s4892_s8  ;;  %v5313_v53 = vld [vmem:[#allocation2 + $0x49] sm:$0xff]  ;;  %v5347_v62 = vld [vmem:[#allocation2 + $0x18] sm:$0xff] }
  0x43   : > { %7558 = vst [vmem:[#allocation19_spill] sm:$0xff] %v5234_v37  ;;  %445 = vst.msk [vmem:[#allocation2 + $0x99] sm:$0xff] %vm280_vm0, %v7468_v25  ;;  %v5351_v63 = vld [vmem:[#allocation2 + $0x30] sm:$0xff]  ;;  %v5353_v0 = vld [vmem:[#allocation2 + $0x20] sm:$0xff] }
  0x44   : > { %448 = vst.msk [vmem:[#allocation2 + $0xc1] sm:$0xff] %vm280_vm0, %v7466_v26  ;;  %447 = vst.msk [vmem:[#allocation2 + $0xb1] sm:$0xff] %vm280_vm0, %v7463_v27  ;;  %v5319_v54 = vld [vmem:[#allocation2 + $0x39] sm:$0xff]  ;;  %v5321_v55 = vld [vmem:[#allocation2 + $0x61] sm:$0xff] }
  0x45   : > { %450 = vst.msk [vmem:[#allocation2 + $0xd9] sm:$0xff] %vm280_vm0, %v7461_v28  ;;  %449 = vst.msk [vmem:[#allocation2 + $0xc9] sm:$0xff] %vm280_vm0, %v7464_v32  ;;  %600 = vrot.lane.b32.xlu1 %v5311_v52, %s4892_s8  ;;  %v5327_v56 = vld [vmem:[#allocation2 + $0x51] sm:$0xff]  ;;  %v5329_v57 = vld [vmem:[#allocation2 + $0x79] sm:$0xff] }
  0x46   : > { %452 = vst.msk [vmem:[#allocation2 + $0xf1] sm:$0xff] %vm280_vm0, %v7462_v33  ;;  %451 = vst.msk [vmem:[#allocation2 + $0xe1] sm:$0xff] %vm280_vm0, %v7459_v34  ;;  %606 = vrot.lane.b32.xlu0 %v5313_v53, %s4892_s8  ;;  %v5361_v12 = vld [vmem:[#allocation2 + $0x48] sm:$0xff]  ;;  %v5553_v2 = vld [vmem:[#allocation2 + $0x1a] sm:$0xff] }
  0x47   : > { %454 = vst.msk [vmem:[#allocation2 + $0x109] sm:$0xff] %vm280_vm0, %v7457_v35  ;;  %498 = vst.msk [vmem:[#allocation4] sm:$0xff] %vm280_vm0, %v466_v42  ;;  %v5335_v58 = vld [vmem:[#allocation2 + $0x69] sm:$0xff] }
  0x48   : > { %499 = vst.msk [vmem:[#allocation4 + $0x8] sm:$0xff] %vm280_vm0, %v467_v43  ;;  %453 = vst.msk [vmem:[#allocation2 + $0xf9] sm:$0xff] %vm280_vm0, %v7460_v38  ;;  %v5337_v59 = vld [vmem:[#allocation2 + $0x91] sm:$0xff]  ;;  %v5343_v60 = vld [vmem:[#allocation2 + $0x81] sm:$0xff] }
  0x49   : > { %456 = vst.msk [vmem:[#allocation2 + $0x121] sm:$0xff] %vm280_vm0, %v7458_v39  ;;  %455 = vst.msk [vmem:[#allocation2 + $0x111] sm:$0xff] %vm280_vm0, %v7455_v40  ;;  %604 = vrot.lane.b32.xlu1 %v5319_v54, %s4892_s8  ;;  %v5345_v61 = vld [vmem:[#allocation2 + $0xa9] sm:$0xff]  ;;  %v5371_v43 = vld [vmem:[#allocation2 + $0x38] sm:$0xff] }
  0x4a   : > { %458 = vst.msk [vmem:[#allocation2 + $0x139] sm:$0xff] %vm280_vm0, %v7453_v41  ;;  %457 = vst.msk [vmem:[#allocation2 + $0x129] sm:$0xff] %vm280_vm0, %v7456_v44  ;;  %610 = vrot.lane.b32.xlu0 %v5321_v55, %s4892_s8  ;;  %v5355_v11 = vld [vmem:[#allocation2 + $0x99] sm:$0xff]  ;;  %v5391_v41 = vld [vmem:[#allocation2 + $0x90] sm:$0xff] }
  0x4b   : > { %460 = vst.msk [vmem:[#allocation2 + $0x151] sm:$0xff] %vm280_vm0, %v7454_v45  ;;  %459 = vst.msk [vmem:[#allocation2 + $0x141] sm:$0xff] %vm280_vm0, %v7451_v46  ;;  %v5367_v42 = vld [vmem:[#allocation2 + $0xc1] sm:$0xff]  ;;  %v5381_v46 = vld [vmem:[#allocation2 + $0x78] sm:$0xff] }
  0x4c   : > { %462 = vst.msk [vmem:[#allocation2 + $0x169] sm:$0xff] %vm280_vm0, %v7450_v47  ;;  %461 = vst.msk [vmem:[#allocation2 + $0x159] sm:$0xff] %vm280_vm0, %v7452_v48  ;;  %v5379_v47 = vld [vmem:[#allocation2 + $0x50] sm:$0xff]  ;;  %v5383_v48 = vld [vmem:[#allocation2 + $0x68] sm:$0xff] }
  0x4d   : > { %463 = vst.msk [vmem:[#allocation2 + $0x171] sm:$0xff] %vm280_vm0, %v7449_v49  ;;  %608 = vrot.lane.b32.xlu1 %v5327_v56, %s4892_s8  ;;  %500 = vst.msk [vmem:[#allocation4 + $0x10] sm:$0xff] %vm280_vm0, %v5347_v62  ;;  %v5373_v49 = vld [vmem:[#allocation2 + $0x60] sm:$0xff]  ;;  %v5395_v40 = vld [vmem:[#allocation2 + $0xa8] sm:$0xff] }
  0x4e   : > { %614 = vrot.lane.b32.xlu0 %v5329_v57, %s4892_s8  ;;  %502 = vst.msk [vmem:[#allocation4 + $0x20] sm:$0xff] %vm280_vm0, %v5351_v63  ;;  %501 = vst.msk [vmem:[#allocation4 + $0x18] sm:$0xff] %vm280_vm0, %v5353_v0  ;;  %v5393_v45 = vld [vmem:[#allocation2 + $0x80] sm:$0xff]  ;;  %v5397_v44 = vld [vmem:[#allocation2 + $0xb1] sm:$0xff] }
  0x4f   : > { %504 = vst.msk [vmem:[#allocation4 + $0x30] sm:$0xff] %vm280_vm0, %v5361_v12  ;;  %503 = vst.msk [vmem:[#allocation4 + $0x28] sm:$0xff] %vm280_vm0, %v5371_v43  ;;  %v5399_v35 = vld [vmem:[#allocation2 + $0xd9] sm:$0xff]  ;;  %v5411_v38 = vld [vmem:[#allocation2 + $0xb0] sm:$0xff] }
  0x50   : > { %506 = vst.msk [vmem:[#allocation4 + $0x40] sm:$0xff] %vm280_vm0, %v5373_v49  ;;  %505 = vst.msk [vmem:[#allocation4 + $0x38] sm:$0xff] %vm280_vm0, %v5379_v47  ;;  %v5407_v39 = vld [vmem:[#allocation2 + $0x98] sm:$0xff]  ;;  %v5409_v34 = vld [vmem:[#allocation2 + $0xc0] sm:$0xff] }
  0x51   : > { %612 = vrot.lane.b32.xlu1 %v5335_v58, %s4892_s8  ;;  %508 = vst.msk [vmem:[#allocation4 + $0x50] sm:$0xff] %vm280_vm0, %v5381_v46  ;;  %507 = vst.msk [vmem:[#allocation4 + $0x48] sm:$0xff] %vm280_vm0, %v5383_v48  ;;  %v5423_v28 = vld [vmem:[#allocation2 + $0xd8] sm:$0xff]  ;;  %v5425_v33 = vld [vmem:[#allocation2 + $0xc8] sm:$0xff] }
  0x52   : > { %618 = vrot.lane.b32.xlu0 %v5337_v59, %s4892_s8  ;;  %510 = vst.msk [vmem:[#allocation4 + $0x60] sm:$0xff] %vm280_vm0, %v5391_v41  ;;  %509 = vst.msk [vmem:[#allocation4 + $0x58] sm:$0xff] %vm280_vm0, %v5393_v45  ;;  %v5427_v27 = vld [vmem:[#allocation2 + $0xf0] sm:$0xff]  ;;  %v5435_v32 = vld [vmem:[#allocation2 + $0xe0] sm:$0xff] }
  0x53   : > { %512 = vst.msk [vmem:[#allocation4 + $0x70] sm:$0xff] %vm280_vm0, %v5395_v40  ;;  %511 = vst.msk [vmem:[#allocation4 + $0x68] sm:$0xff] %vm280_vm0, %v5407_v39  ;;  %v5437_v21 = vld [vmem:[#allocation2 + $0x108] sm:$0xff]  ;;  %v5439_v26 = vld [vmem:[#allocation2 + $0xf8] sm:$0xff] }
  0x54   : > { %514 = vst.msk [vmem:[#allocation4 + $0x80] sm:$0xff] %vm280_vm0, %v5409_v34  ;;  %513 = vst.msk [vmem:[#allocation4 + $0x78] sm:$0xff] %vm280_vm0, %v5411_v38  ;;  %v5451_v20 = vld [vmem:[#allocation2 + $0x120] sm:$0xff]  ;;  %v5453_v25 = vld [vmem:[#allocation2 + $0x110] sm:$0xff] }
  0x55   : > { %616 = vrot.lane.b32.xlu1 %v5343_v60, %s4892_s8  ;;  %516 = vst.msk [vmem:[#allocation4 + $0x90] sm:$0xff] %vm280_vm0, %v5423_v28  ;;  %515 = vst.msk [vmem:[#allocation4 + $0x88] sm:$0xff] %vm280_vm0, %v5425_v33  ;;  %v5455_v16 = vld [vmem:[#allocation2 + $0xc9] sm:$0xff]  ;;  %v5457_v19 = vld [vmem:[#allocation2 + $0xf1] sm:$0xff] }
  0x56   : > { %622 = vrot.lane.b32.xlu0 %v5345_v61, %s4892_s8  ;;  %518 = vst.msk [vmem:[#allocation4 + $0xa0] sm:$0xff] %vm280_vm0, %v5427_v27  ;;  %517 = vst.msk [vmem:[#allocation4 + $0x98] sm:$0xff] %vm280_vm0, %v5435_v32  ;;  %v5467_v15 = vld [vmem:[#allocation2 + $0x138] sm:$0xff]  ;;  %v5469_v18 = vld [vmem:[#allocation2 + $0x128] sm:$0xff] }
  0x57   : > { %520 = vst.msk [vmem:[#allocation4 + $0xb0] sm:$0xff] %vm280_vm0, %v5437_v21  ;;  %519 = vst.msk [vmem:[#allocation4 + $0xa8] sm:$0xff] %vm280_vm0, %v5439_v26  ;;  %v5471_v7 = vld [vmem:[#allocation2 + $0xe1] sm:$0xff]  ;;  %v5473_v14 = vld [vmem:[#allocation2 + $0x109] sm:$0xff] }
  0x58   : > { %522 = vst.msk [vmem:[#allocation4 + $0xc0] sm:$0xff] %vm280_vm0, %v5451_v20  ;;  %521 = vst.msk [vmem:[#allocation4 + $0xb8] sm:$0xff] %vm280_vm0, %v5453_v25  ;;  %v5483_v6 = vld [vmem:[#allocation2 + $0x150] sm:$0xff]  ;;  %v5485_v13 = vld [vmem:[#allocation2 + $0x140] sm:$0xff] }
  0x59   : > { %620 = vrot.lane.b32.xlu1 %v5355_v11, %s4892_s8  ;;  %524 = vst.msk [vmem:[#allocation4 + $0xd0] sm:$0xff] %vm280_vm0, %v5467_v15  ;;  %523 = vst.msk [vmem:[#allocation4 + $0xc8] sm:$0xff] %vm280_vm0, %v5469_v18  ;;  %v5487_v4 = vld [vmem:[#allocation2 + $0xf9] sm:$0xff]  ;;  %v5489_v5 = vld [vmem:[#allocation2 + $0x121] sm:$0xff] }
  0x5a   : > { %626 = vrot.lane.b32.xlu0 %v5367_v42, %s4892_s8  ;;  %526 = vst.msk [vmem:[#allocation4 + $0xe0] sm:$0xff] %vm280_vm0, %v5483_v6  ;;  %525 = vst.msk [vmem:[#allocation4 + $0xd8] sm:$0xff] %vm280_vm0, %v5485_v13  ;;  %v5499_v37 = vld [vmem:[#allocation2 + $0x168] sm:$0xff]  ;;  %v5501_v31 = vld [vmem:[#allocation2 + $0x158] sm:$0xff] }
  0x5b   : > { %v5503_v36 = vld [vmem:[#allocation2 + $0x111] sm:$0xff]  ;;  %v5505_v29 = vld [vmem:[#allocation2 + $0x139] sm:$0xff]  ;;  %528 = vst.msk [vmem:[#allocation4 + $0xf0] sm:$0xff] %vm280_vm0, %v5499_v37  ;;  %527 = vst.msk [vmem:[#allocation4 + $0xe8] sm:$0xff] %vm280_vm0, %v5501_v31 }
  0x5c   : > { %v5515_v30 = vld [vmem:[#allocation2 + $0x170] sm:$0xff]  ;;  %7559 = vst [vmem:[#allocation20_spill] sm:$0xff] %v5524_v17  ;;  %464 = vst.msk [vmem:[#allocation2 + $0x181] sm:$0xff] %vm280_vm0, %v7507_v22  ;;  %v5534_v9 = vld [vmem:[#allocation2 + $0x141] sm:$0xff] }
  0x5d   : > { %624 = vrot.lane.b32.xlu1 %v5397_v44, %s4892_s8  ;;  %v5517_v23 = vld [vmem:[#allocation2 + $0x129] sm:$0xff]  ;;  %v5519_v24 = vld [vmem:[#allocation2 + $0x151] sm:$0xff]  ;;  %529 = vst.msk [vmem:[#allocation4 + $0xf8] sm:$0xff] %vm280_vm0, %v5515_v30  ;;  %7560 = vst [vmem:[#allocation21_spill] sm:$0xff] %v5534_v9 }
  0x5e   : > { %630 = vrot.lane.b32.xlu0 %v5399_v35, %s4892_s8  ;;  %v5536_v10 = vld [vmem:[#allocation2 + $0x169] sm:$0xff]  ;;  %465 = vst.msk [vmem:[#allocation2 + $0x189] sm:$0xff] %vm280_vm0, %v7510_v3  ;;  %v5546_v8 = vld [vmem:[#allocation2 + $0x159] sm:$0xff]  ;;  %v5551_v22 = vld [vmem:[#allocation2 + $0x171] sm:$0xff] }
  0x5f   : > { %7561 = vst [vmem:[#allocation22_spill] sm:$0xff] %v5536_v10  ;;  %7562 = vst [vmem:[#allocation23_spill] sm:$0xff] %v5546_v8  ;;  %v724_v3 = vld [vmem:[#allocation2 + $0xa] sm:$0xff]  ;;  %v5559_v17 = vld [vmem:[#allocation2 + $0x32] sm:$0xff] }
  0x60   : > { %7563 = vst [vmem:[#allocation24_spill] sm:$0xff] %v5551_v22  ;;  %7564 = vst [vmem:[#allocation25_spill] sm:$0xff] %v5553_v2 }
  0x61   : > { %628 = vrot.lane.b32.xlu1 %v5455_v16, %s4892_s8  ;;  %7565 = vst [vmem:[#allocation26_spill] sm:$0xff] %v5559_v17 }
  0x62   : > { %634 = vrot.lane.b32.xlu0 %v5457_v19, %s4892_s8 }
  0x65   : > { %632 = vrot.lane.b32.xlu1 %v5471_v7, %s4892_s8 }
  0x66   : > { %638 = vrot.lane.b32.xlu0 %v5473_v14, %s4892_s8 }
  0x69   : > { %636 = vrot.lane.b32.xlu1 %v5487_v4, %s4892_s8 }
  0x6a   : > { %642 = vrot.lane.b32.xlu0 %v5489_v5, %s4892_s8 }
  0x6d   : > { %640 = vrot.lane.b32.xlu1 %v5503_v36, %s4892_s8 }
  0x6e   : > { %646 = vrot.lane.b32.xlu0 %v5505_v29, %s4892_s8 }
  0x71   : > { %644 = vrot.lane.b32.xlu1 %v5517_v23, %s4892_s8 }
  0x72   : > { %650 = vrot.lane.b32.xlu0 %v5519_v24, %s4892_s8 }
  0x75   : > { %648 = vrot.lane.b32.xlu1 %v5534_v9, %s4892_s8 }
  0x76   : > { %654 = vrot.lane.b32.xlu0 %v5536_v10, %s4892_s8 }
  0x79   : > { %652 = vrot.lane.b32.xlu1 %v5546_v8, %s4892_s8  ;;  %v5564_v8 = vld [vmem:[#allocation2 + $0x22] sm:$0xff] }
  0x7a   : > { %787 = vrot.lane.b32.xlu0 %v723_v1, %s4893_s9  ;;  %7566 = vst [vmem:[#allocation27_spill] sm:$0xff] %v5564_v8  ;;  %v5566_v1 = vld [vmem:[#allocation2 + $0x4a] sm:$0xff] }
  0x7b   : > { %7567 = vst [vmem:[#allocation28_spill] sm:$0xff] %v5566_v1 }
  0x7d   : > { %656 = vrot.lane.b32.xlu1 %v5551_v22, %s4892_s8  ;;  %v5572_v22 = vld [vmem:[#allocation2 + $0x3a] sm:$0xff] }
  0x7e   : > { %791 = vrot.lane.b32.xlu0 %v5553_v2, %s4893_s9  ;;  %7568 = vst [vmem:[#allocation29_spill] sm:$0xff] %v5572_v22  ;;  %v5574_v2 = vld [vmem:[#allocation2 + $0x62] sm:$0xff] }
  0x7f   : > { %7569 = vst [vmem:[#allocation30_spill] sm:$0xff] %v5574_v2 }
  0x81   : > { %789 = vrot.lane.b32.xlu1 %v724_v3, %s4893_s9  ;;  %v5580_v3 = vld [vmem:[#allocation2 + $0x52] sm:$0xff] }
  0x82   : > { %795 = vrot.lane.b32.xlu0 %v5559_v17, %s4893_s9  ;;  %7570 = vst [vmem:[#allocation31_spill] sm:$0xff] %v5580_v3  ;;  %v5582_v17 = vld [vmem:[#allocation2 + $0x7a] sm:$0xff] }
  0x83   : > { %7571 = vst [vmem:[#allocation32_spill] sm:$0xff] %v5582_v17 }
  0x85   : > { %793 = vrot.lane.b32.xlu1 %v5564_v8, %s4893_s9  ;;  %v5590_v8 = vld [vmem:[#allocation2 + $0x92] sm:$0xff] }
  0x86   : > { %799 = vrot.lane.b32.xlu0 %v5566_v1, %s4893_s9  ;;  %v5588_v1 = vld [vmem:[#allocation2 + $0x6a] sm:$0xff]  ;;  %7573 = vst [vmem:[#allocation34_spill] sm:$0xff] %v5590_v8  ;;  %v595_v10 = vpop.permute.xlu0 %594 }
  0x87   : > { %7572 = vst [vmem:[#allocation33_spill] sm:$0xff] %v5588_v1  ;;  %691 = vst.msk [vmem:[#allocation4] sm:$0xff] %vm690_vm3, %v595_v10  ;;  %v5662_v10 = vld [vmem:[#allocation2 + $0x142] sm:$0xff] }
  0x88   : > { %7589 = vst [vmem:[#allocation50_spill] sm:$0xff] %v5662_v10 }
  0x89   : > { %797 = vrot.lane.b32.xlu1 %v5572_v22, %s4893_s9  ;;  %v5598_v22 = vld [vmem:[#allocation2 + $0xaa] sm:$0xff] }
  0x8a   : > { %803 = vrot.lane.b32.xlu0 %v5574_v2, %s4893_s9  ;;  %v5596_v2 = vld [vmem:[#allocation2 + $0x82] sm:$0xff]  ;;  %7575 = vst [vmem:[#allocation36_spill] sm:$0xff] %v5598_v22 }
  0x8b   : > { %7574 = vst [vmem:[#allocation35_spill] sm:$0xff] %v5596_v2 }
  0x8d   : > { %801 = vrot.lane.b32.xlu1 %v5580_v3, %s4893_s9  ;;  %v5606_v3 = vld [vmem:[#allocation2 + $0xc2] sm:$0xff] }
  0x8e   : > { %807 = vrot.lane.b32.xlu0 %v5582_v17, %s4893_s9  ;;  %v5604_v17 = vld [vmem:[#allocation2 + $0x9a] sm:$0xff]  ;;  %7577 = vst [vmem:[#allocation38_spill] sm:$0xff] %v5606_v3 }
  0x8f   : > { %7576 = vst [vmem:[#allocation37_spill] sm:$0xff] %v5604_v17 }
  0x91   : > { %805 = vrot.lane.b32.xlu1 %v5588_v1, %s4893_s9  ;;  %v5614_v1 = vld [vmem:[#allocation2 + $0xda] sm:$0xff] }
  0x92   : > { %811 = vrot.lane.b32.xlu0 %v5590_v8, %s4893_s9  ;;  %v5612_v8 = vld [vmem:[#allocation2 + $0xb2] sm:$0xff]  ;;  %7579 = vst [vmem:[#allocation40_spill] sm:$0xff] %v5614_v1 }
  0x93   : > { %7578 = vst [vmem:[#allocation39_spill] sm:$0xff] %v5612_v8 }
  0x95   : > { %809 = vrot.lane.b32.xlu1 %v5596_v2, %s4893_s9  ;;  %v5622_v2 = vld [vmem:[#allocation2 + $0xf2] sm:$0xff] }
  0x96   : > { %815 = vrot.lane.b32.xlu0 %v5598_v22, %s4893_s9  ;;  %v5620_v22 = vld [vmem:[#allocation2 + $0xca] sm:$0xff]  ;;  %7581 = vst [vmem:[#allocation42_spill] sm:$0xff] %v5622_v2 }
  0x97   : > { %7580 = vst [vmem:[#allocation41_spill] sm:$0xff] %v5620_v22 }
  0x99   : > { %813 = vrot.lane.b32.xlu1 %v5604_v17, %s4893_s9  ;;  %v5630_v17 = vld [vmem:[#allocation2 + $0x10a] sm:$0xff] }
  0x9a   : > { %819 = vrot.lane.b32.xlu0 %v5606_v3, %s4893_s9  ;;  %v5628_v3 = vld [vmem:[#allocation2 + $0xe2] sm:$0xff]  ;;  %7583 = vst [vmem:[#allocation44_spill] sm:$0xff] %v5630_v17 }
  0x9b   : > { %7582 = vst [vmem:[#allocation43_spill] sm:$0xff] %v5628_v3 }
  0x9d   : > { %817 = vrot.lane.b32.xlu1 %v5612_v8, %s4893_s9  ;;  %v5638_v8 = vld [vmem:[#allocation2 + $0x122] sm:$0xff] }
  0x9e   : > { %823 = vrot.lane.b32.xlu0 %v5614_v1, %s4893_s9  ;;  %v5636_v1 = vld [vmem:[#allocation2 + $0xfa] sm:$0xff]  ;;  %7585 = vst [vmem:[#allocation46_spill] sm:$0xff] %v5638_v8 }
  0x9f   : > { %7584 = vst [vmem:[#allocation45_spill] sm:$0xff] %v5636_v1 }
  0xa1   : > { %821 = vrot.lane.b32.xlu1 %v5620_v22, %s4893_s9  ;;  %v5646_v22 = vld [vmem:[#allocation2 + $0x13a] sm:$0xff] }
  0xa2   : > { %827 = vrot.lane.b32.xlu0 %v5622_v2, %s4893_s9  ;;  %v5644_v2 = vld [vmem:[#allocation2 + $0x112] sm:$0xff] }
  0xa3   : > { %7586 = vst [vmem:[#allocation47_spill] sm:$0xff] %v5644_v2 }
  0xa5   : > { %825 = vrot.lane.b32.xlu1 %v5628_v3, %s4893_s9 }
  0xa6   : > { %831 = vrot.lane.b32.xlu0 %v5630_v17, %s4893_s9  ;;  %v5653_v17 = vld [vmem:[#allocation2 + $0x12a] sm:$0xff] }
  0xa7   : > { %7587 = vst [vmem:[#allocation48_spill] sm:$0xff] %v5653_v17 }
  0xa9   : > { %829 = vrot.lane.b32.xlu1 %v5636_v1, %s4893_s9  ;;  %v5655_v1 = vld [vmem:[#allocation2 + $0x152] sm:$0xff] }
  0xaa   : > { %835 = vrot.lane.b32.xlu0 %v5638_v8, %s4893_s9  ;;  %7588 = vst [vmem:[#allocation49_spill] sm:$0xff] %v5655_v1  ;;  %v597_v3 = vpop.permute.xlu0 %596  ;;  %v5664_v8 = vld [vmem:[#allocation2 + $0x16a] sm:$0xff] }
  0xab   : > { %692 = vst.msk [vmem:[#allocation4 + $0x8] sm:$0xff] %vm690_vm3, %v597_v3  ;;  %v5672_v3 = vld [vmem:[#allocation2 + $0x15a] sm:$0xff] }
  0xad   : > { %833 = vrot.lane.b32.xlu1 %v5644_v2, %s4893_s9 }
  0xae   : > { %839 = vrot.lane.b32.xlu0 %v5646_v22, %s4893_s9 }
  0xb1   : > { %837 = vrot.lane.b32.xlu1 %v5653_v17, %s4893_s9 }
  0xb2   : > { %843 = vrot.lane.b32.xlu0 %v5655_v1, %s4893_s9 }
  0xb3   : > { %v599_v2 = vpop.permute.xlu1 %598 }
  0xb4   : > { %v603_v9 = vpop.permute.xlu0 %602  ;;  %693 = vst.msk [vmem:[#allocation4 + $0x10] sm:$0xff] %vm690_vm3, %v599_v2  ;;  %v5680_v2 = vld [vmem:[#allocation2 + $0x172] sm:$0xff] }
  0xb5   : > { %695 = vst.msk [vmem:[#allocation4 + $0x20] sm:$0xff] %vm690_vm3, %v603_v9  ;;  %841 = vrot.lane.b32.xlu1 %v5662_v10, %s4893_s9 }
  0xb6   : > { %847 = vrot.lane.b32.xlu0 %v5664_v8, %s4893_s9 }
  0xb7   : > { %v601_v17 = vpop.permute.xlu1 %600 }
  0xb8   : > { %v607_v1 = vpop.permute.xlu0 %606  ;;  %694 = vst.msk [vmem:[#allocation4 + $0x18] sm:$0xff] %vm690_vm3, %v601_v17 }
  0xb9   : > { %697 = vst.msk [vmem:[#allocation4 + $0x30] sm:$0xff] %vm690_vm3, %v607_v1  ;;  %845 = vrot.lane.b32.xlu1 %v5672_v3, %s4893_s9 }
  0xba   : > { %980 = vrot.lane.b32.xlu0 %v5347_v62, %s4894_s10 }
  0xbb   : > { %v605_v9 = vpop.permute.xlu1 %604 }
  0xbc   : > { %v611_v10 = vpop.permute.xlu0 %610  ;;  %696 = vst.msk [vmem:[#allocation4 + $0x28] sm:$0xff] %vm690_vm3, %v605_v9 }
  0xbd   : > { %699 = vst.msk [vmem:[#allocation4 + $0x40] sm:$0xff] %vm690_vm3, %v611_v10  ;;  %849 = vrot.lane.b32.xlu1 %v5680_v2, %s4893_s9 }
  0xbe   : > { %984 = vrot.lane.b32.xlu0 %v5351_v63, %s4894_s10 }
  0xbf   : > { %v609_v17 = vpop.permute.xlu1 %608 }
  0xc0   : > { %v615_v1 = vpop.permute.xlu0 %614  ;;  %698 = vst.msk [vmem:[#allocation4 + $0x38] sm:$0xff] %vm690_vm3, %v609_v17 }
  0xc1   : > { %701 = vst.msk [vmem:[#allocation4 + $0x50] sm:$0xff] %vm690_vm3, %v615_v1  ;;  %982 = vrot.lane.b32.xlu1 %v5353_v0, %s4894_s10 }
  0xc2   : > { %988 = vrot.lane.b32.xlu0 %v5361_v12, %s4894_s10 }
  0xc3   : > { %v613_v62 = vpop.permute.xlu1 %612 }
  0xc4   : > { %v619_v10 = vpop.permute.xlu0 %618  ;;  %700 = vst.msk [vmem:[#allocation4 + $0x48] sm:$0xff] %vm690_vm3, %v613_v62 }
  0xc5   : > { %703 = vst.msk [vmem:[#allocation4 + $0x60] sm:$0xff] %vm690_vm3, %v619_v10  ;;  %986 = vrot.lane.b32.xlu1 %v5371_v43, %s4894_s10 }
  0xc6   : > { %992 = vrot.lane.b32.xlu0 %v5373_v49, %s4894_s10 }
  0xc7   : > { %v617_v9 = vpop.permute.xlu1 %616 }
  0xc8   : > { %v623_v17 = vpop.permute.xlu0 %622  ;;  %702 = vst.msk [vmem:[#allocation4 + $0x58] sm:$0xff] %vm690_vm3, %v617_v9 }
  0xc9   : > { %705 = vst.msk [vmem:[#allocation4 + $0x70] sm:$0xff] %vm690_vm3, %v623_v17  ;;  %990 = vrot.lane.b32.xlu1 %v5379_v47, %s4894_s10 }
  0xca   : > { %996 = vrot.lane.b32.xlu0 %v5381_v46, %s4894_s10 }
  0xcb   : > { %v621_v0 = vpop.permute.xlu1 %620 }
  0xcc   : > { %v627_v1 = vpop.permute.xlu0 %626  ;;  %704 = vst.msk [vmem:[#allocation4 + $0x68] sm:$0xff] %vm690_vm3, %v621_v0 }
  0xcd   : > { %707 = vst.msk [vmem:[#allocation4 + $0x80] sm:$0xff] %vm690_vm3, %v627_v1  ;;  %994 = vrot.lane.b32.xlu1 %v5383_v48, %s4894_s10 }
  0xce   : > { %1000 = vrot.lane.b32.xlu0 %v5391_v41, %s4894_s10 }
  0xcf   : > { %v625_v62 = vpop.permute.xlu1 %624 }
  0xd0   : > { %v631_v10 = vpop.permute.xlu0 %630  ;;  %706 = vst.msk [vmem:[#allocation4 + $0x78] sm:$0xff] %vm690_vm3, %v625_v62 }
  0xd1   : > { %709 = vst.msk [vmem:[#allocation4 + $0x90] sm:$0xff] %vm690_vm3, %v631_v10  ;;  %998 = vrot.lane.b32.xlu1 %v5393_v45, %s4894_s10 }
  0xd2   : > { %1004 = vrot.lane.b32.xlu0 %v5395_v40, %s4894_s10 }
  0xd3   : > { %v629_v9 = vpop.permute.xlu1 %628 }
  0xd4   : > { %v635_v17 = vpop.permute.xlu0 %634  ;;  %708 = vst.msk [vmem:[#allocation4 + $0x88] sm:$0xff] %vm690_vm3, %v629_v9 }
  0xd5   : > { %711 = vst.msk [vmem:[#allocation4 + $0xa0] sm:$0xff] %vm690_vm3, %v635_v17  ;;  %1002 = vrot.lane.b32.xlu1 %v5407_v39, %s4894_s10 }
  0xd6   : > { %1008 = vrot.lane.b32.xlu0 %v5409_v34, %s4894_s10 }
  0xd7   : > { %v633_v0 = vpop.permute.xlu1 %632 }
  0xd8   : > { %v639_v1 = vpop.permute.xlu0 %638  ;;  %710 = vst.msk [vmem:[#allocation4 + $0x98] sm:$0xff] %vm690_vm3, %v633_v0 }
  0xd9   : > { %713 = vst.msk [vmem:[#allocation4 + $0xb0] sm:$0xff] %vm690_vm3, %v639_v1  ;;  %1006 = vrot.lane.b32.xlu1 %v5411_v38, %s4894_s10 }
  0xda   : > { %1012 = vrot.lane.b32.xlu0 %v5423_v28, %s4894_s10 }
  0xdb   : > { %v637_v62 = vpop.permute.xlu1 %636 }
  0xdc   : > { %v643_v10 = vpop.permute.xlu0 %642  ;;  %712 = vst.msk [vmem:[#allocation4 + $0xa8] sm:$0xff] %vm690_vm3, %v637_v62 }
  0xdd   : > { %715 = vst.msk [vmem:[#allocation4 + $0xc0] sm:$0xff] %vm690_vm3, %v643_v10  ;;  %1010 = vrot.lane.b32.xlu1 %v5425_v33, %s4894_s10 }
  0xde   : > { %1016 = vrot.lane.b32.xlu0 %v5427_v27, %s4894_s10 }
  0xdf   : > { %v641_v9 = vpop.permute.xlu1 %640 }
  0xe0   : > { %v647_v17 = vpop.permute.xlu0 %646  ;;  %714 = vst.msk [vmem:[#allocation4 + $0xb8] sm:$0xff] %vm690_vm3, %v641_v9 }
  0xe1   : > { %717 = vst.msk [vmem:[#allocation4 + $0xd0] sm:$0xff] %vm690_vm3, %v647_v17  ;;  %1014 = vrot.lane.b32.xlu1 %v5435_v32, %s4894_s10 }
  0xe2   : > { %1020 = vrot.lane.b32.xlu0 %v5437_v21, %s4894_s10 }
  0xe3   : > { %v645_v0 = vpop.permute.xlu1 %644 }
  0xe4   : > { %v651_v1 = vpop.permute.xlu0 %650  ;;  %716 = vst.msk [vmem:[#allocation4 + $0xc8] sm:$0xff] %vm690_vm3, %v645_v0 }
  0xe5   : > { %719 = vst.msk [vmem:[#allocation4 + $0xe0] sm:$0xff] %vm690_vm3, %v651_v1  ;;  %1018 = vrot.lane.b32.xlu1 %v5439_v26, %s4894_s10 }
  0xe6   : > { %1024 = vrot.lane.b32.xlu0 %v5451_v20, %s4894_s10 }
  0xe7   : > { %v649_v62 = vpop.permute.xlu1 %648 }
  0xe8   : > { %v655_v10 = vpop.permute.xlu0 %654  ;;  %718 = vst.msk [vmem:[#allocation4 + $0xd8] sm:$0xff] %vm690_vm3, %v649_v62  ;;  %v5766_v62 = vld [vmem:[#allocation2 + $0x180] sm:$0xff] }
  0xe9   : > { %721 = vst.msk [vmem:[#allocation4 + $0xf0] sm:$0xff] %vm690_vm3, %v655_v10  ;;  %1022 = vrot.lane.b32.xlu1 %v5453_v25, %s4894_s10 }
  0xea   : > { %1028 = vrot.lane.b32.xlu0 %v5467_v15, %s4894_s10 }
  0xeb   : > { %v653_v9 = vpop.permute.xlu1 %652 }
  0xec   : > { %v788_v17 = vpop.permute.xlu0 %787  ;;  %720 = vst.msk [vmem:[#allocation4 + $0xe8] sm:$0xff] %vm690_vm3, %v653_v9 }
  0xed   : > { %884 = vst.msk [vmem:[#allocation4] sm:$0xff] %vm883_vm4, %v788_v17  ;;  %1026 = vrot.lane.b32.xlu1 %v5469_v18, %s4894_s10 }
  0xee   : > { %1032 = vrot.lane.b32.xlu0 %v5483_v6, %s4894_s10 }
  0xef   : > { %v657_v0 = vpop.permute.xlu1 %656 }
  0xf0   : > { %v792_v1 = vpop.permute.xlu0 %791  ;;  %722 = vst.msk [vmem:[#allocation4 + $0xf8] sm:$0xff] %vm690_vm3, %v657_v0 }
  0xf1   : > { %886 = vst.msk [vmem:[#allocation4 + $0x10] sm:$0xff] %vm883_vm4, %v792_v1  ;;  %1030 = vrot.lane.b32.xlu1 %v5485_v13, %s4894_s10  ;;  %v5780_v1 = vld [vmem:[#allocation2 + $0x188] sm:$0xff] }
  0xf2   : > { %1036 = vrot.lane.b32.xlu0 %v5499_v37, %s4894_s10 }
  0xf3   : > { %v790_v10 = vpop.permute.xlu1 %789 }
  0xf4   : > { %v796_v9 = vpop.permute.xlu0 %795  ;;  %885 = vst.msk [vmem:[#allocation4 + $0x8] sm:$0xff] %vm883_vm4, %v790_v10 }
  0xf5   : > { %888 = vst.msk [vmem:[#allocation4 + $0x20] sm:$0xff] %vm883_vm4, %v796_v9  ;;  %1034 = vrot.lane.b32.xlu1 %v5501_v31, %s4894_s10 }
  0xf6   : > { %1040 = vrot.lane.b32.xlu0 %v5766_v62, %s4894_s10 }
  0xf7   : > { %v794_v17 = vpop.permute.xlu1 %793 }
  0xf8   : > { %v800_v0 = vpop.permute.xlu0 %799  ;;  %887 = vst.msk [vmem:[#allocation4 + $0x18] sm:$0xff] %vm883_vm4, %v794_v17 }
  0xf9   : > { %890 = vst.msk [vmem:[#allocation4 + $0x30] sm:$0xff] %vm883_vm4, %v800_v0  ;;  %1038 = vrot.lane.b32.xlu1 %v5515_v30, %s4894_s10 }
  0xfa   : > { %1173 = vrot.lane.b32.xlu0 %v5297_v50, %s4895_s11 }
  0xfb   : > { %v798_v10 = vpop.permute.xlu1 %797 }
  0xfc   : > { %v804_v9 = vpop.permute.xlu0 %803  ;;  %889 = vst.msk [vmem:[#allocation4 + $0x28] sm:$0xff] %vm883_vm4, %v798_v10 }
  0xfd   : > { %892 = vst.msk [vmem:[#allocation4 + $0x40] sm:$0xff] %vm883_vm4, %v804_v9  ;;  %1042 = vrot.lane.b32.xlu1 %v5780_v1, %s4894_s10 }
  0xfe   : > { %1177 = vrot.lane.b32.xlu0 %v5299_v51, %s4895_s11 }
  0xff   : > { %v802_v17 = vpop.permute.xlu1 %801 }
 0x100   : > { %v808_v0 = vpop.permute.xlu0 %807  ;;  %891 = vst.msk [vmem:[#allocation4 + $0x38] sm:$0xff] %vm883_vm4, %v802_v17  ;;  %v5866_v17 = vld [vmem:[#allocation2 + $0x181] sm:$0xff] }
 0x101   : > { %894 = vst.msk [vmem:[#allocation4 + $0x50] sm:$0xff] %vm883_vm4, %v808_v0  ;;  %1175 = vrot.lane.b32.xlu1 %v5311_v52, %s4895_s11 }
 0x102   : > { %1181 = vrot.lane.b32.xlu0 %v5313_v53, %s4895_s11 }
 0x103   : > { %v806_v50 = vpop.permute.xlu1 %805 }
 0x104   : > { %v812_v10 = vpop.permute.xlu0 %811  ;;  %893 = vst.msk [vmem:[#allocation4 + $0x48] sm:$0xff] %vm883_vm4, %v806_v50 }
 0x105   : > { %896 = vst.msk [vmem:[#allocation4 + $0x60] sm:$0xff] %vm883_vm4, %v812_v10  ;;  %1179 = vrot.lane.b32.xlu1 %v5319_v54, %s4895_s11 }
 0x106   : > { %1185 = vrot.lane.b32.xlu0 %v5321_v55, %s4895_s11 }
 0x107   : > { %v810_v51 = vpop.permute.xlu1 %809 }
 0x108   : > { %v816_v9 = vpop.permute.xlu0 %815  ;;  %895 = vst.msk [vmem:[#allocation4 + $0x58] sm:$0xff] %vm883_vm4, %v810_v51  ;;  %v7593_v51 = vld [vmem:[#allocation24_spill] sm:$0xff] }
 0x109   : > { %898 = vst.msk [vmem:[#allocation4 + $0x70] sm:$0xff] %vm883_vm4, %v816_v9  ;;  %1183 = vrot.lane.b32.xlu1 %v5327_v56, %s4895_s11  ;;  %v7594_v9 = vld [vmem:[#allocation25_spill] sm:$0xff] }
 0x10a   : > { %1189 = vrot.lane.b32.xlu0 %v5329_v57, %s4895_s11 }
 0x10b   : > { %v814_v52 = vpop.permute.xlu1 %813 }
 0x10c   : > { %v820_v53 = vpop.permute.xlu0 %819  ;;  %897 = vst.msk [vmem:[#allocation4 + $0x68] sm:$0xff] %vm883_vm4, %v814_v52  ;;  %v5880_v52 = vld [vmem:[#allocation2 + $0x189] sm:$0xff] }
 0x10d   : > { %900 = vst.msk [vmem:[#allocation4 + $0x80] sm:$0xff] %vm883_vm4, %v820_v53  ;;  %1187 = vrot.lane.b32.xlu1 %v5335_v58, %s4895_s11 }
 0x10e   : > { %1193 = vrot.lane.b32.xlu0 %v5337_v59, %s4895_s11 }
 0x10f   : > { %v818_v54 = vpop.permute.xlu1 %817 }
 0x110   : > { %v824_v55 = vpop.permute.xlu0 %823  ;;  %899 = vst.msk [vmem:[#allocation4 + $0x78] sm:$0xff] %vm883_vm4, %v818_v54 }
 0x111   : > { %902 = vst.msk [vmem:[#allocation4 + $0x90] sm:$0xff] %vm883_vm4, %v824_v55  ;;  %1191 = vrot.lane.b32.xlu1 %v5343_v60, %s4895_s11  ;;  %v7595_v55 = vld [vmem:[#allocation26_spill] sm:$0xff] }
 0x112   : > { %1197 = vrot.lane.b32.xlu0 %v5345_v61, %s4895_s11 }
 0x113   : > { %v822_v56 = vpop.permute.xlu1 %821 }
 0x114   : > { %v828_v57 = vpop.permute.xlu0 %827  ;;  %901 = vst.msk [vmem:[#allocation4 + $0x88] sm:$0xff] %vm883_vm4, %v822_v56 }
 0x115   : > { %904 = vst.msk [vmem:[#allocation4 + $0xa0] sm:$0xff] %vm883_vm4, %v828_v57  ;;  %1195 = vrot.lane.b32.xlu1 %v5355_v11, %s4895_s11 }
 0x116   : > { %1201 = vrot.lane.b32.xlu0 %v5367_v42, %s4895_s11 }
 0x117   : > { %v826_v58 = vpop.permute.xlu1 %825 }
 0x118   : > { %v832_v59 = vpop.permute.xlu0 %831  ;;  %903 = vst.msk [vmem:[#allocation4 + $0x98] sm:$0xff] %vm883_vm4, %v826_v58  ;;  %v7596_v58 = vld [vmem:[#allocation27_spill] sm:$0xff] }
 0x119   : > { %906 = vst.msk [vmem:[#allocation4 + $0xb0] sm:$0xff] %vm883_vm4, %v832_v59  ;;  %1199 = vrot.lane.b32.xlu1 %v5397_v44, %s4895_s11  ;;  %v7597_v59 = vld [vmem:[#allocation28_spill] sm:$0xff] }
 0x11a   : > { %1205 = vrot.lane.b32.xlu0 %v5399_v35, %s4895_s11 }
 0x11b   : > { %v830_v60 = vpop.permute.xlu1 %829 }
 0x11c   : > { %v836_v61 = vpop.permute.xlu0 %835  ;;  %905 = vst.msk [vmem:[#allocation4 + $0xa8] sm:$0xff] %vm883_vm4, %v830_v60 }
 0x11d   : > { %908 = vst.msk [vmem:[#allocation4 + $0xc0] sm:$0xff] %vm883_vm4, %v836_v61  ;;  %1203 = vrot.lane.b32.xlu1 %v5455_v16, %s4895_s11 }
 0x11e   : > { %1209 = vrot.lane.b32.xlu0 %v5457_v19, %s4895_s11 }
 0x11f   : > { %v834_v11 = vpop.permute.xlu1 %833 }
 0x120   : > { %v840_v42 = vpop.permute.xlu0 %839  ;;  %907 = vst.msk [vmem:[#allocation4 + $0xb8] sm:$0xff] %vm883_vm4, %v834_v11  ;;  %v7598_v11 = vld [vmem:[#allocation29_spill] sm:$0xff] }
 0x121   : > { %910 = vst.msk [vmem:[#allocation4 + $0xd0] sm:$0xff] %vm883_vm4, %v840_v42  ;;  %1207 = vrot.lane.b32.xlu1 %v5471_v7, %s4895_s11  ;;  %v7599_v42 = vld [vmem:[#allocation30_spill] sm:$0xff] }
 0x122   : > { %1213 = vrot.lane.b32.xlu0 %v5473_v14, %s4895_s11 }
 0x123   : > { %v838_v35 = vpop.permute.xlu1 %837 }
 0x124   : > { %v844_v44 = vpop.permute.xlu0 %843  ;;  %909 = vst.msk [vmem:[#allocation4 + $0xc8] sm:$0xff] %vm883_vm4, %v838_v35 }
 0x125   : > { %912 = vst.msk [vmem:[#allocation4 + $0xe0] sm:$0xff] %vm883_vm4, %v844_v44  ;;  %1211 = vrot.lane.b32.xlu1 %v5487_v4, %s4895_s11 }
 0x126   : > { %1217 = vrot.lane.b32.xlu0 %v5489_v5, %s4895_s11 }
 0x127   : > { %v842_v16 = vpop.permute.xlu1 %841 }
 0x128   : > { %v848_v19 = vpop.permute.xlu0 %847  ;;  %911 = vst.msk [vmem:[#allocation4 + $0xd8] sm:$0xff] %vm883_vm4, %v842_v16  ;;  %v7600_v16 = vld [vmem:[#allocation31_spill] sm:$0xff] }
 0x129   : > { %914 = vst.msk [vmem:[#allocation4 + $0xf0] sm:$0xff] %vm883_vm4, %v848_v19  ;;  %1215 = vrot.lane.b32.xlu1 %v5503_v36, %s4895_s11  ;;  %v7591_v36 = vld [vmem:[#allocation22_spill] sm:$0xff]  ;;  %v7601_v19 = vld [vmem:[#allocation32_spill] sm:$0xff] }
 0x12a   : > { %1221 = vrot.lane.b32.xlu0 %v5505_v29, %s4895_s11  ;;  %v7590_v29 = vld [vmem:[#allocation21_spill] sm:$0xff] }
 0x12b   : > { %v846_v7 = vpop.permute.xlu1 %845 }
 0x12c   : > { %v981_v14 = vpop.permute.xlu0 %980  ;;  %913 = vst.msk [vmem:[#allocation4 + $0xe8] sm:$0xff] %vm883_vm4, %v846_v7 }
 0x12d   : > { %1077 = vst.msk [vmem:[#allocation4] sm:$0xff] %vm1076_vm5, %v981_v14  ;;  %1219 = vrot.lane.b32.xlu1 %v5517_v23, %s4895_s11  ;;  %v7592_v23 = vld [vmem:[#allocation23_spill] sm:$0xff] }
 0x12e   : > { %1225 = vrot.lane.b32.xlu0 %v5519_v24, %s4895_s11 }
 0x12f   : > { %v850_v4 = vpop.permute.xlu1 %849 }
 0x130   : > { %v985_v5 = vpop.permute.xlu0 %984  ;;  %915 = vst.msk [vmem:[#allocation4 + $0xf8] sm:$0xff] %vm883_vm4, %v850_v4  ;;  %v7602_v4 = vld [vmem:[#allocation33_spill] sm:$0xff] }
 0x131   : > { %1079 = vst.msk [vmem:[#allocation4 + $0x10] sm:$0xff] %vm1076_vm5, %v985_v5  ;;  %1223 = vrot.lane.b32.xlu1 %v7590_v29, %s4895_s11  ;;  %v7603_v5 = vld [vmem:[#allocation34_spill] sm:$0xff] }
 0x132   : > { %1229 = vrot.lane.b32.xlu0 %v7591_v36, %s4895_s11 }
 0x133   : > { %v983_v0 = vpop.permute.xlu1 %982 }
 0x134   : > { %v989_v50 = vpop.permute.xlu0 %988  ;;  %1078 = vst.msk [vmem:[#allocation4 + $0x8] sm:$0xff] %vm1076_vm5, %v983_v0  ;;  %v7604_v0 = vld [vmem:[#allocation35_spill] sm:$0xff] }
 0x135   : > { %1081 = vst.msk [vmem:[#allocation4 + $0x20] sm:$0xff] %vm1076_vm5, %v989_v50  ;;  %1227 = vrot.lane.b32.xlu1 %v7592_v23, %s4895_s11  ;;  %v7605_v50 = vld [vmem:[#allocation36_spill] sm:$0xff] }
 0x136   : > { %1233 = vrot.lane.b32.xlu0 %v5866_v17, %s4895_s11 }
 0x137   : > { %v987_v24 = vpop.permute.xlu1 %986 }
 0x138   : > { %v993_v10 = vpop.permute.xlu0 %992  ;;  %1080 = vst.msk [vmem:[#allocation4 + $0x18] sm:$0xff] %vm1076_vm5, %v987_v24 }
 0x139   : > { %1083 = vst.msk [vmem:[#allocation4 + $0x30] sm:$0xff] %vm1076_vm5, %v993_v10  ;;  %1231 = vrot.lane.b32.xlu1 %v7593_v51, %s4895_s11  ;;  %v7606_v10 = vld [vmem:[#allocation37_spill] sm:$0xff]  ;;  %v7607_v51 = vld [vmem:[#allocation38_spill] sm:$0xff] }
 0x13a   : > { %1366 = vrot.lane.b32.xlu0 %v7594_v9, %s4896_s12 }
 0x13b   : > { %v991_v53 = vpop.permute.xlu1 %990 }
 0x13c   : > { %v997_v54 = vpop.permute.xlu0 %996  ;;  %1082 = vst.msk [vmem:[#allocation4 + $0x28] sm:$0xff] %vm1076_vm5, %v991_v53 }
 0x13d   : > { %1085 = vst.msk [vmem:[#allocation4 + $0x40] sm:$0xff] %vm1076_vm5, %v997_v54  ;;  %1235 = vrot.lane.b32.xlu1 %v5880_v52, %s4895_s11  ;;  %v7608_v54 = vld [vmem:[#allocation39_spill] sm:$0xff] }
 0x13e   : > { %1370 = vrot.lane.b32.xlu0 %v7595_v55, %s4896_s12  ;;  %v7609_v55 = vld [vmem:[#allocation40_spill] sm:$0xff] }
 0x13f   : > { %v995_v56 = vpop.permute.xlu1 %994 }
 0x140   : > { %v1001_v57 = vpop.permute.xlu0 %1000  ;;  %1084 = vst.msk [vmem:[#allocation4 + $0x38] sm:$0xff] %vm1076_vm5, %v995_v56 }
 0x141   : > { %1087 = vst.msk [vmem:[#allocation4 + $0x50] sm:$0xff] %vm1076_vm5, %v1001_v57  ;;  %1368 = vrot.lane.b32.xlu1 %v7596_v58, %s4896_s12  ;;  %v7610_v58 = vld [vmem:[#allocation41_spill] sm:$0xff] }
 0x142   : > { %1374 = vrot.lane.b32.xlu0 %v7597_v59, %s4896_s12  ;;  %v7611_v59 = vld [vmem:[#allocation42_spill] sm:$0xff] }
 0x143   : > { %v999_v60 = vpop.permute.xlu1 %998 }
 0x144   : > { %v1005_v61 = vpop.permute.xlu0 %1004  ;;  %1086 = vst.msk [vmem:[#allocation4 + $0x48] sm:$0xff] %vm1076_vm5, %v999_v60 }
 0x145   : > { %1089 = vst.msk [vmem:[#allocation4 + $0x60] sm:$0xff] %vm1076_vm5, %v1005_v61  ;;  %1372 = vrot.lane.b32.xlu1 %v7598_v11, %s4896_s12  ;;  %v7612_v11 = vld [vmem:[#allocation43_spill] sm:$0xff] }
 0x146   : > { %1378 = vrot.lane.b32.xlu0 %v7599_v42, %s4896_s12  ;;  %v7613_v42 = vld [vmem:[#allocation44_spill] sm:$0xff] }
 0x147   : > { %v1003_v35 = vpop.permute.xlu1 %1002 }
 0x148   : > { %v1009_v44 = vpop.permute.xlu0 %1008  ;;  %1088 = vst.msk [vmem:[#allocation4 + $0x58] sm:$0xff] %vm1076_vm5, %v1003_v35 }
 0x149   : > { %1091 = vst.msk [vmem:[#allocation4 + $0x70] sm:$0xff] %vm1076_vm5, %v1009_v44  ;;  %1376 = vrot.lane.b32.xlu1 %v7600_v16, %s4896_s12  ;;  %v7614_v16 = vld [vmem:[#allocation45_spill] sm:$0xff] }
 0x14a   : > { %1382 = vrot.lane.b32.xlu0 %v7601_v19, %s4896_s12  ;;  %v7615_v19 = vld [vmem:[#allocation46_spill] sm:$0xff] }
 0x14b   : > { %v1007_v7 = vpop.permute.xlu1 %1006 }
 0x14c   : > { %v1013_v14 = vpop.permute.xlu0 %1012  ;;  %1090 = vst.msk [vmem:[#allocation4 + $0x68] sm:$0xff] %vm1076_vm5, %v1007_v7 }
 0x14d   : > { %1093 = vst.msk [vmem:[#allocation4 + $0x80] sm:$0xff] %vm1076_vm5, %v1013_v14  ;;  %1380 = vrot.lane.b32.xlu1 %v7602_v4, %s4896_s12  ;;  %v7616_v4 = vld [vmem:[#allocation47_spill] sm:$0xff] }
 0x14e   : > { %1386 = vrot.lane.b32.xlu0 %v7603_v5, %s4896_s12 }
 0x14f   : > { %v1011_v29 = vpop.permute.xlu1 %1010 }
 0x150   : > { %v1017_v36 = vpop.permute.xlu0 %1016  ;;  %1092 = vst.msk [vmem:[#allocation4 + $0x78] sm:$0xff] %vm1076_vm5, %v1011_v29 }
 0x151   : > { %1095 = vst.msk [vmem:[#allocation4 + $0x90] sm:$0xff] %vm1076_vm5, %v1017_v36  ;;  %1384 = vrot.lane.b32.xlu1 %v7604_v0, %s4896_s12  ;;  %v7617_v36 = vld [vmem:[#allocation48_spill] sm:$0xff]  ;;  %v7618_v0 = vld [vmem:[#allocation49_spill] sm:$0xff] }
 0x152   : > { %1390 = vrot.lane.b32.xlu0 %v7605_v50, %s4896_s12 }
 0x153   : > { %v1015_v23 = vpop.permute.xlu1 %1014 }
 0x154   : > { %v1021_v24 = vpop.permute.xlu0 %1020  ;;  %1094 = vst.msk [vmem:[#allocation4 + $0x88] sm:$0xff] %vm1076_vm5, %v1015_v23 }
 0x155   : > { %1097 = vst.msk [vmem:[#allocation4 + $0xa0] sm:$0xff] %vm1076_vm5, %v1021_v24  ;;  %1388 = vrot.lane.b32.xlu1 %v7606_v10, %s4896_s12  ;;  %v5966_v24 = vld [vmem:[#allocation2 + $0x182] sm:$0xff] }
 0x156   : > { %1394 = vrot.lane.b32.xlu0 %v7607_v51, %s4896_s12 }
 0x157   : > { %v1019_v9 = vpop.permute.xlu1 %1018 }
 0x158   : > { %v1025_v53 = vpop.permute.xlu0 %1024  ;;  %1096 = vst.msk [vmem:[#allocation4 + $0x98] sm:$0xff] %vm1076_vm5, %v1019_v9 }
 0x159   : > { %1099 = vst.msk [vmem:[#allocation4 + $0xb0] sm:$0xff] %vm1076_vm5, %v1025_v53  ;;  %1392 = vrot.lane.b32.xlu1 %v7608_v54, %s4896_s12 }
 0x15a   : > { %1398 = vrot.lane.b32.xlu0 %v7609_v55, %s4896_s12 }
 0x15b   : > { %v1023_v56 = vpop.permute.xlu1 %1022 }
 0x15c   : > { %v1029_v57 = vpop.permute.xlu0 %1028  ;;  %1098 = vst.msk [vmem:[#allocation4 + $0xa8] sm:$0xff] %vm1076_vm5, %v1023_v56 }
 0x15d   : > { %1101 = vst.msk [vmem:[#allocation4 + $0xc0] sm:$0xff] %vm1076_vm5, %v1029_v57  ;;  %1396 = vrot.lane.b32.xlu1 %v7610_v58, %s4896_s12 }
 0x15e   : > { %1402 = vrot.lane.b32.xlu0 %v7611_v59, %s4896_s12 }
 0x15f   : > { %v1027_v60 = vpop.permute.xlu1 %1026 }
 0x160   : > { %v1033_v61 = vpop.permute.xlu0 %1032  ;;  %1100 = vst.msk [vmem:[#allocation4 + $0xb8] sm:$0xff] %vm1076_vm5, %v1027_v60 }
 0x161   : > { %1103 = vst.msk [vmem:[#allocation4 + $0xd0] sm:$0xff] %vm1076_vm5, %v1033_v61  ;;  %1400 = vrot.lane.b32.xlu1 %v7612_v11, %s4896_s12  ;;  %v1693_v11 = vld [vmem:[#allocation2 + $0x61] sm:$0xff] }
 0x162   : > { %1406 = vrot.lane.b32.xlu0 %v7613_v42, %s4896_s12 }
 0x163   : > { %v1031_v35 = vpop.permute.xlu1 %1030 }
 0x164   : > { %v1037_v44 = vpop.permute.xlu0 %1036  ;;  %1102 = vst.msk [vmem:[#allocation4 + $0xc8] sm:$0xff] %vm1076_vm5, %v1031_v35 }
 0x165   : > { %1105 = vst.msk [vmem:[#allocation4 + $0xe0] sm:$0xff] %vm1076_vm5, %v1037_v44  ;;  %1404 = vrot.lane.b32.xlu1 %v7614_v16, %s4896_s12  ;;  %v1695_v44 = vld [vmem:[#allocation2 + $0x79] sm:$0xff] }
 0x166   : > { %1410 = vrot.lane.b32.xlu0 %v7615_v19, %s4896_s12 }
 0x167   : > { %v1035_v7 = vpop.permute.xlu1 %1034 }
 0x168   : > { %v1041_v14 = vpop.permute.xlu0 %1040  ;;  %1104 = vst.msk [vmem:[#allocation4 + $0xd8] sm:$0xff] %vm1076_vm5, %v1035_v7  ;;  %v4877_v7 = vld [vmem:[%s7442_s1 + $0x10] ss:$0 sps:$4 sm:$0x33]  }
 0x169   : > { %1107 = vst.msk [vmem:[#allocation4 + $0xf0] sm:$0xff] %vm1076_vm5, %v1041_v14  ;;  %1408 = vrot.lane.b32.xlu1 %v7616_v4, %s4896_s12  ;;  %v1694_v14 = vld [vmem:[#allocation2 + $0x69] sm:$0xff]  ;;  %v1697_v4 = vld [vmem:[#allocation2 + $0x91] sm:$0xff]  ;;  %4858 = vmatprep.subr.msk.bf16.mxu0 %vm2192_vm8, %v4877_v7 }
 0x16a   : > { %1414 = vrot.lane.b32.xlu0 %v5646_v22, %s4896_s12  ;;  %v7619_v22 = vld [vmem:[#allocation50_spill] sm:$0xff] }
 0x16b   : > { %v1039_v5 = vpop.permute.xlu1 %1038 }
 0x16c   : > { %v1174_v29 = vpop.permute.xlu0 %1173  ;;  %1106 = vst.msk [vmem:[#allocation4 + $0xe8] sm:$0xff] %vm1076_vm5, %v1039_v5  ;;  %v2194_v5 = vsel %vm2192_vm8, %v4877_v7, 0  ;;  %v1706_v7 = vld [vmem:[#allocation2 + $0xf9] sm:$0xff] }
 0x16d   : > { %1270 = vst.msk [vmem:[#allocation4] sm:$0xff] %vm1269_vm6, %v1174_v29  ;;  %1412 = vrot.lane.b32.xlu1 %v7617_v36, %s4896_s12  ;;  %4783 = vmatpush3.bf16.msra.mxu0 %v2194_v5 }
 0x16e   : > { %1418 = vrot.lane.b32.xlu0 %v7618_v0, %s4896_s12  ;;  %v4878_v0 = vld [vmem:[%s7442_s1 + $0x8] sm:$0xff]  }
 0x16f   : > { %v1043_v50 = vpop.permute.xlu1 %1042  ;;  %4784 = vmatprep.subr.bf16.mxu0 %v4878_v0 }
 0x170   : > { %v1178_v23 = vpop.permute.xlu0 %1177  ;;  %1108 = vst.msk [vmem:[#allocation4 + $0xf8] sm:$0xff] %vm1076_vm5, %v1043_v50  ;;  %v1696_v50 = vld [vmem:[#allocation2 + $0x81] sm:$0xff] }
 0x171   : > { %1272 = vst.msk [vmem:[#allocation4 + $0x10] sm:$0xff] %vm1269_vm6, %v1178_v23  ;;  %1416 = vrot.lane.b32.xlu1 %v7619_v22, %s4896_s12  ;;  %v1883_v23 = vld [vmem:[#allocation2 + $0x3a] sm:$0xff]  ;;  %4785 = vmatpush3.bf16.msra.mxu0 %v4878_v0 }
 0x172   : > { %1422 = vrot.lane.b32.xlu0 %v5664_v8, %s4896_s12  ;;  %v5980_v8 = vld [vmem:[#allocation2 + $0x18a] sm:$0xff] }
 0x173   : > { %v1176_v10 = vpop.permute.xlu1 %1175 }
 0x174   : > { %v1182_v51 = vpop.permute.xlu0 %1181  ;;  %1271 = vst.msk [vmem:[#allocation4 + $0x8] sm:$0xff] %vm1269_vm6, %v1176_v10 }
 0x175   : > { %1274 = vst.msk [vmem:[#allocation4 + $0x20] sm:$0xff] %vm1269_vm6, %v1182_v51  ;;  %1420 = vrot.lane.b32.xlu1 %v5672_v3, %s4896_s12  ;;  %v4879_v51 = vld [vmem:[%s7442_s1] sm:$0xff]  }
 0x176   : > { %1426 = vrot.lane.b32.xlu0 %v5966_v24, %s4896_s12  ;;  %4786 = vmatprep.subr.bf16.mxu0 %v4879_v51 }
 0x177   : > { %v1180_v9 = vpop.permute.xlu1 %1179  ;;  %4787 = vmatpush3.bf16.msra.mxu0 %v4879_v51 }
 0x178   : > { %v1186_v53 = vpop.permute.xlu0 %1185  ;;  %1273 = vst.msk [vmem:[#allocation4 + $0x18] sm:$0xff] %vm1269_vm6, %v1180_v9  ;;  %v1882_v9 = vld [vmem:[#allocation2 + $0x32] sm:$0xff] }
 0x179   : > { %1276 = vst.msk [vmem:[#allocation4 + $0x30] sm:$0xff] %vm1269_vm6, %v1186_v53  ;;  %1424 = vrot.lane.b32.xlu1 %v5680_v2, %s4896_s12  ;;  %v1885_v53 = vld [vmem:[#allocation2 + $0x52] sm:$0xff] }
 0x17a   : > { %1560 = vrot.lane.b32.xlu0 %v5351_v63, %s4897_s13 }
 0x17b   : > { %v1184_v54 = vpop.permute.xlu1 %1183 }
 0x17c   : > { %v1190_v3 = vpop.permute.xlu0 %1189  ;;  %1275 = vst.msk [vmem:[#allocation4 + $0x28] sm:$0xff] %vm1269_vm6, %v1184_v54 }
 0x17d   : > { %1278 = vst.msk [vmem:[#allocation4 + $0x40] sm:$0xff] %vm1269_vm6, %v1190_v3  ;;  %1428 = vrot.lane.b32.xlu1 %v5980_v8, %s4896_s12 }
 0x17e   : > { %1564 = vrot.lane.b32.xlu0 %v5361_v12, %s4897_s13 }
 0x17f   : > { %v1188_v55 = vpop.permute.xlu1 %1187 }
 0x180   : > { %v1194_v2 = vpop.permute.xlu0 %1193  ;;  %1277 = vst.msk [vmem:[#allocation4 + $0x38] sm:$0xff] %vm1269_vm6, %v1188_v55  ;;  %v1884_v55 = vld [vmem:[#allocation2 + $0x4a] sm:$0xff] }
 0x181   : > { %1280 = vst.msk [vmem:[#allocation4 + $0x50] sm:$0xff] %vm1269_vm6, %v1194_v2  ;;  %1562 = vrot.lane.b32.xlu1 %v5371_v43, %s4897_s13  ;;  %v1887_v2 = vld [vmem:[#allocation2 + $0x6a] sm:$0xff] }
 0x182   : > { %1568 = vrot.lane.b32.xlu0 %v5373_v49, %s4897_s13 }
 0x183   : > { %v1192_v63 = vpop.permute.xlu1 %1191 }
 0x184   : > { %v1198_v56 = vpop.permute.xlu0 %1197  ;;  %1279 = vst.msk [vmem:[#allocation4 + $0x48] sm:$0xff] %vm1269_vm6, %v1192_v63 }
 0x185   : > { %1282 = vst.msk [vmem:[#allocation4 + $0x60] sm:$0xff] %vm1269_vm6, %v1198_v56  ;;  %1566 = vrot.lane.b32.xlu1 %v5379_v47, %s4897_s13 }
 0x186   : > { %1572 = vrot.lane.b32.xlu0 %v5381_v46, %s4897_s13 }
 0x187   : > { %v1196_v12 = vpop.permute.xlu1 %1195 }
 0x188   : > { %v1202_v57 = vpop.permute.xlu0 %1201  ;;  %1281 = vst.msk [vmem:[#allocation4 + $0x58] sm:$0xff] %vm1269_vm6, %v1196_v12  ;;  %v1886_v12 = vld [vmem:[#allocation2 + $0x62] sm:$0xff] }
 0x189   : > { %1284 = vst.msk [vmem:[#allocation4 + $0x70] sm:$0xff] %vm1269_vm6, %v1202_v57  ;;  %1570 = vrot.lane.b32.xlu1 %v5383_v48, %s4897_s13  ;;  %v1889_v57 = vld [vmem:[#allocation2 + $0x82] sm:$0xff] }
 0x18a   : > { %1576 = vrot.lane.b32.xlu0 %v5391_v41, %s4897_s13 }
 0x18b   : > { %v1200_v49 = vpop.permute.xlu1 %1199 }
 0x18c   : > { %v1206_v43 = vpop.permute.xlu0 %1205  ;;  %1283 = vst.msk [vmem:[#allocation4 + $0x68] sm:$0xff] %vm1269_vm6, %v1200_v49 }
 0x18d   : > { %1286 = vst.msk [vmem:[#allocation4 + $0x80] sm:$0xff] %vm1269_vm6, %v1206_v43  ;;  %1574 = vrot.lane.b32.xlu1 %v5393_v45, %s4897_s13 }
 0x18e   : > { %1580 = vrot.lane.b32.xlu0 %v5395_v40, %s4897_s13 }
 0x18f   : > { %v1204_v46 = vpop.permute.xlu1 %1203 }
 0x190   : > { %v1210_v47 = vpop.permute.xlu0 %1209  ;;  %1285 = vst.msk [vmem:[#allocation4 + $0x78] sm:$0xff] %vm1269_vm6, %v1204_v46  ;;  %v1888_v46 = vld [vmem:[#allocation2 + $0x7a] sm:$0xff] }
 0x191   : > { %1288 = vst.msk [vmem:[#allocation4 + $0x90] sm:$0xff] %vm1269_vm6, %v1210_v47  ;;  %1578 = vrot.lane.b32.xlu1 %v5407_v39, %s4897_s13  ;;  %v1699_v47 = vld [vmem:[#allocation2 + $0xa9] sm:$0xff] }
 0x192   : > { %1584 = vrot.lane.b32.xlu0 %v5409_v34, %s4897_s13 }
 0x193   : > { %v1208_v41 = vpop.permute.xlu1 %1207 }
 0x194   : > { %v1214_v48 = vpop.permute.xlu0 %1213  ;;  %1287 = vst.msk [vmem:[#allocation4 + $0x88] sm:$0xff] %vm1269_vm6, %v1208_v41 }
 0x195   : > { %1290 = vst.msk [vmem:[#allocation4 + $0xa0] sm:$0xff] %vm1269_vm6, %v1214_v48  ;;  %1582 = vrot.lane.b32.xlu1 %v5411_v38, %s4897_s13 }
 0x196   : > { %1588 = vrot.lane.b32.xlu0 %v5423_v28, %s4897_s13 }
 0x197   : > { %v1212_v40 = vpop.permute.xlu1 %1211 }
 0x198   : > { %v1218_v45 = vpop.permute.xlu0 %1217  ;;  %1289 = vst.msk [vmem:[#allocation4 + $0x98] sm:$0xff] %vm1269_vm6, %v1212_v40  ;;  %v1698_v40 = vld [vmem:[#allocation2 + $0x99] sm:$0xff] }
 0x199   : > { %1292 = vst.msk [vmem:[#allocation4 + $0xb0] sm:$0xff] %vm1269_vm6, %v1218_v45  ;;  %1586 = vrot.lane.b32.xlu1 %v5425_v33, %s4897_s13  ;;  %v1890_v45 = vld [vmem:[#allocation2 + $0x92] sm:$0xff] }
 0x19a   : > { %1592 = vrot.lane.b32.xlu0 %v5427_v27, %s4897_s13 }
 0x19b   : > { %v1216_v34 = vpop.permute.xlu1 %1215 }
 0x19c   : > { %v1222_v39 = vpop.permute.xlu0 %1221  ;;  %1291 = vst.msk [vmem:[#allocation4 + $0xa8] sm:$0xff] %vm1269_vm6, %v1216_v34 }
 0x19d   : > { %1294 = vst.msk [vmem:[#allocation4 + $0xc0] sm:$0xff] %vm1269_vm6, %v1222_v39  ;;  %1590 = vrot.lane.b32.xlu1 %v5435_v32, %s4897_s13 }
 0x19e   : > { %1596 = vrot.lane.b32.xlu0 %v5437_v21, %s4897_s13 }
 0x19f   : > { %v1220_v28 = vpop.permute.xlu1 %1219 }
 0x1a0   : > { %v1226_v38 = vpop.permute.xlu0 %1225  ;;  %1293 = vst.msk [vmem:[#allocation4 + $0xb8] sm:$0xff] %vm1269_vm6, %v1220_v28  ;;  %v1700_v28 = vld [vmem:[#allocation2 + $0xb1] sm:$0xff] }
 0x1a1   : > { %1296 = vst.msk [vmem:[#allocation4 + $0xd0] sm:$0xff] %vm1269_vm6, %v1226_v38  ;;  %1594 = vrot.lane.b32.xlu1 %v5439_v26, %s4897_s13  ;;  %v1892_v38 = vld [vmem:[#allocation2 + $0xaa] sm:$0xff] }
 0x1a2   : > { %1600 = vrot.lane.b32.xlu0 %v5451_v20, %s4897_s13 }
 0x1a3   : > { %v1224_v27 = vpop.permute.xlu1 %1223 }
 0x1a4   : > { %v1230_v33 = vpop.permute.xlu0 %1229  ;;  %1295 = vst.msk [vmem:[#allocation4 + $0xc8] sm:$0xff] %vm1269_vm6, %v1224_v27 }
 0x1a5   : > { %1298 = vst.msk [vmem:[#allocation4 + $0xe0] sm:$0xff] %vm1269_vm6, %v1230_v33  ;;  %1598 = vrot.lane.b32.xlu1 %v5453_v25, %s4897_s13 }
 0x1a6   : > { %1604 = vrot.lane.b32.xlu0 %v5467_v15, %s4897_s13 }
 0x1a7   : > { %v1228_v21 = vpop.permute.xlu1 %1227 }
 0x1a8   : > { %v1234_v32 = vpop.permute.xlu0 %1233  ;;  %1297 = vst.msk [vmem:[#allocation4 + $0xd8] sm:$0xff] %vm1269_vm6, %v1228_v21  ;;  %v1891_v21 = vld [vmem:[#allocation2 + $0x9a] sm:$0xff] }
 0x1a9   : > { %1300 = vst.msk [vmem:[#allocation4 + $0xf0] sm:$0xff] %vm1269_vm6, %v1234_v32  ;;  %1602 = vrot.lane.b32.xlu1 %v5469_v18, %s4897_s13  ;;  %v1701_v32 = vld [vmem:[#allocation2 + $0xc1] sm:$0xff] }
 0x1aa   : > { %1608 = vrot.lane.b32.xlu0 %v5483_v6, %s4897_s13  ;;  %v1526_v6 = vld [vmem:[#allocation2 + $0x198] sm:$0xff] }
 0x1ab   : > { %v1232_v20 = vpop.permute.xlu1 %1231 }
 0x1ac   : > { %v1367_v26 = vpop.permute.xlu0 %1366  ;;  %1299 = vst.msk [vmem:[#allocation4 + $0xe8] sm:$0xff] %vm1269_vm6, %v1232_v20 }
 0x1ad   : > { %1463 = vst.msk [vmem:[#allocation4] sm:$0xff] %vm1462_vm7, %v1367_v26  ;;  %1606 = vrot.lane.b32.xlu1 %v5485_v13, %s4897_s13  ;;  %v1689_v13 = vld [vmem:[#allocation2 + $0x31] sm:$0xff] }
 0x1ae   : > { %1612 = vrot.lane.b32.xlu0 %v5499_v37, %s4897_s13 }
 0x1af   : > { %v1236_v15 = vpop.permute.xlu1 %1235 }
 0x1b0   : > { %v1371_v25 = vpop.permute.xlu0 %1370  ;;  %1301 = vst.msk [vmem:[#allocation4 + $0xf8] sm:$0xff] %vm1269_vm6, %v1236_v15  ;;  %v1893_v15 = vld [vmem:[#allocation2 + $0xb2] sm:$0xff] }
 0x1b1   : > { %1465 = vst.msk [vmem:[#allocation4 + $0x10] sm:$0xff] %vm1462_vm7, %v1371_v25  ;;  %1610 = vrot.lane.b32.xlu1 %v5501_v31, %s4897_s13  ;;  %v1527_v31 = vld [vmem:[#allocation2 + $0x1a0] sm:$0xff] }
 0x1b2   : > { %1616 = vrot.lane.b32.xlu0 %v5766_v62, %s4897_s13  ;;  %v1691_v62 = vld [vmem:[#allocation2 + $0x49] sm:$0xff]  ;;  %v1703_v25 = vld [vmem:[#allocation2 + $0xd9] sm:$0xff] }
 0x1b3   : > { %v1369_v18 = vpop.permute.xlu1 %1368 }
 0x1b4   : > { %v1375_v58 = vpop.permute.xlu0 %1374  ;;  %1464 = vst.msk [vmem:[#allocation4 + $0x8] sm:$0xff] %vm1462_vm7, %v1369_v18 }
 0x1b5   : > { %1467 = vst.msk [vmem:[#allocation4 + $0x20] sm:$0xff] %vm1462_vm7, %v1375_v58  ;;  %1614 = vrot.lane.b32.xlu1 %v5515_v30, %s4897_s13  ;;  %v1690_v30 = vld [vmem:[#allocation2 + $0x39] sm:$0xff]  ;;  %v1702_v58 = vld [vmem:[#allocation2 + $0xc9] sm:$0xff] }
 0x1b6   : > { %1620 = vrot.lane.b32.xlu0 %v1526_v6, %s4897_s13 }
 0x1b7   : > { %v1373_v37 = vpop.permute.xlu1 %1372 }
 0x1b8   : > { %v1379_v59 = vpop.permute.xlu0 %1378  ;;  %1466 = vst.msk [vmem:[#allocation4 + $0x18] sm:$0xff] %vm1462_vm7, %v1373_v37 }
 0x1b9   : > { %1469 = vst.msk [vmem:[#allocation4 + $0x30] sm:$0xff] %vm1462_vm7, %v1379_v59  ;;  %1618 = vrot.lane.b32.xlu1 %v5780_v1, %s4897_s13  ;;  %v1692_v1 = vld [vmem:[#allocation2 + $0x51] sm:$0xff] }
 0x1ba   : > { %1753 = vrot.lane.b32.xlu0 %v1689_v13, %s4898_s14  ;;  %v1894_v13 = vld [vmem:[#allocation2 + $0xc2] sm:$0xff] }
 0x1bb   : > { %v1377_v60 = vpop.permute.xlu1 %1376 }
 0x1bc   : > { %v1383_v61 = vpop.permute.xlu0 %1382  ;;  %1468 = vst.msk [vmem:[#allocation4 + $0x28] sm:$0xff] %vm1462_vm7, %v1377_v60 }
 0x1bd   : > { %1471 = vst.msk [vmem:[#allocation4 + $0x40] sm:$0xff] %vm1462_vm7, %v1383_v61  ;;  %1622 = vrot.lane.b32.xlu1 %v1527_v31, %s4897_s13  ;;  %v1704_v31 = vld [vmem:[#allocation2 + $0xe1] sm:$0xff] }
 0x1be   : > { %1757 = vrot.lane.b32.xlu0 %v1691_v62, %s4898_s14  ;;  %v1896_v62 = vld [vmem:[#allocation2 + $0xda] sm:$0xff] }
 0x1bf   : > { %v1381_v42 = vpop.permute.xlu1 %1380 }
 0x1c0   : > { %v1387_v35 = vpop.permute.xlu0 %1386  ;;  %1470 = vst.msk [vmem:[#allocation4 + $0x38] sm:$0xff] %vm1462_vm7, %v1381_v42 }
 0x1c1   : > { %1473 = vst.msk [vmem:[#allocation4 + $0x50] sm:$0xff] %vm1462_vm7, %v1387_v35  ;;  %1755 = vrot.lane.b32.xlu1 %v1690_v30, %s4898_s14  ;;  %v1895_v30 = vld [vmem:[#allocation2 + $0xca] sm:$0xff] }
 0x1c2   : > { %1761 = vrot.lane.b32.xlu0 %v1693_v11, %s4898_s14  ;;  %v1705_v11 = vld [vmem:[#allocation2 + $0xf1] sm:$0xff] }
 0x1c3   : > { %v1385_v16 = vpop.permute.xlu1 %1384 }
 0x1c4   : > { %v1391_v19 = vpop.permute.xlu0 %1390  ;;  %1472 = vst.msk [vmem:[#allocation4 + $0x48] sm:$0xff] %vm1462_vm7, %v1385_v16 }
 0x1c5   : > { %1475 = vst.msk [vmem:[#allocation4 + $0x60] sm:$0xff] %vm1462_vm7, %v1391_v19  ;;  %1759 = vrot.lane.b32.xlu1 %v1692_v1, %s4898_s14  ;;  %v1897_v1 = vld [vmem:[#allocation2 + $0xe2] sm:$0xff] }
 0x1c6   : > { %1765 = vrot.lane.b32.xlu0 %v1695_v44, %s4898_s14  ;;  %v1707_v44 = vld [vmem:[#allocation2 + $0x109] sm:$0xff] }
 0x1c7   : > { %v1389_v29 = vpop.permute.xlu1 %1388 }
 0x1c8   : > { %v1395_v36 = vpop.permute.xlu0 %1394  ;;  %1474 = vst.msk [vmem:[#allocation4 + $0x58] sm:$0xff] %vm1462_vm7, %v1389_v29  ;;  %v1708_v29 = vld [vmem:[#allocation2 + $0x111] sm:$0xff] }
 0x1c9   : > { %1477 = vst.msk [vmem:[#allocation4 + $0x70] sm:$0xff] %vm1462_vm7, %v1395_v36  ;;  %1763 = vrot.lane.b32.xlu1 %v1694_v14, %s4898_s14  ;;  %v1898_v14 = vld [vmem:[#allocation2 + $0xf2] sm:$0xff]  ;;  %v1900_v36 = vld [vmem:[#allocation2 + $0x10a] sm:$0xff] }
 0x1ca   : > { %1769 = vrot.lane.b32.xlu0 %v1697_v4, %s4898_s14 }
 0x1cb   : > { %v1393_v22 = vpop.permute.xlu1 %1392 }
 0x1cc   : > { %v1399_v10 = vpop.permute.xlu0 %1398  ;;  %1476 = vst.msk [vmem:[#allocation4 + $0x68] sm:$0xff] %vm1462_vm7, %v1393_v22  ;;  %v1709_v22 = vld [vmem:[#allocation2 + $0x121] sm:$0xff] }
 0x1cd   : > { %1479 = vst.msk [vmem:[#allocation4 + $0x80] sm:$0xff] %vm1462_vm7, %v1399_v10  ;;  %1767 = vrot.lane.b32.xlu1 %v1696_v50, %s4898_s14 }
 0x1ce   : > { %1948 = vrot.lane.b32.xlu0 %v1883_v23, %s4899_s21  ;;  %v1899_v23 = vld [vmem:[#allocation2 + $0xfa] sm:$0xff] }
 0x1cf   : > { %v1397_v54 = vpop.permute.xlu1 %1396 }
 0x1d0   : > { %v1403_v3 = vpop.permute.xlu0 %1402  ;;  %1478 = vst.msk [vmem:[#allocation4 + $0x78] sm:$0xff] %vm1462_vm7, %v1397_v54 }
 0x1d1   : > { %1481 = vst.msk [vmem:[#allocation4 + $0x90] sm:$0xff] %vm1462_vm7, %v1403_v3  ;;  %1946 = vrot.lane.b32.xlu1 %v1882_v9, %s4899_s21  ;;  %v1901_v9 = vld [vmem:[#allocation2 + $0x112] sm:$0xff] }
 0x1d2   : > { %1952 = vrot.lane.b32.xlu0 %v1885_v53, %s4899_s21  ;;  %v1711_v53 = vld [vmem:[#allocation2 + $0x139] sm:$0xff] }
 0x1d3   : > { %v1401_v63 = vpop.permute.xlu1 %1400 }
 0x1d4   : > { %v1407_v56 = vpop.permute.xlu0 %1406  ;;  %1480 = vst.msk [vmem:[#allocation4 + $0x88] sm:$0xff] %vm1462_vm7, %v1401_v63 }
 0x1d5   : > { %1483 = vst.msk [vmem:[#allocation4 + $0xa0] sm:$0xff] %vm1462_vm7, %v1407_v56  ;;  %1950 = vrot.lane.b32.xlu1 %v1884_v55, %s4899_s21  ;;  %v1710_v55 = vld [vmem:[#allocation2 + $0x129] sm:$0xff] }
 0x1d6   : > { %1956 = vrot.lane.b32.xlu0 %v1887_v2, %s4899_s21  ;;  %v1902_v2 = vld [vmem:[#allocation2 + $0x122] sm:$0xff] }
 0x1d7   : > { %v1405_v49 = vpop.permute.xlu1 %1404 }
 0x1d8   : > { %v1411_v43 = vpop.permute.xlu0 %1410  ;;  %1482 = vst.msk [vmem:[#allocation4 + $0x98] sm:$0xff] %vm1462_vm7, %v1405_v49 }
 0x1d9   : > { %1485 = vst.msk [vmem:[#allocation4 + $0xb0] sm:$0xff] %vm1462_vm7, %v1411_v43  ;;  %1954 = vrot.lane.b32.xlu1 %v1886_v12, %s4899_s21  ;;  %v1712_v12 = vld [vmem:[#allocation2 + $0x141] sm:$0xff] }
 0x1da   : > { %1960 = vrot.lane.b32.xlu0 %v1889_v57, %s4899_s21  ;;  %v1904_v57 = vld [vmem:[#allocation2 + $0x13a] sm:$0xff] }
 0x1db   : > { %v1409_v41 = vpop.permute.xlu1 %1408 }
 0x1dc   : > { %v1415_v48 = vpop.permute.xlu0 %1414  ;;  %1484 = vst.msk [vmem:[#allocation4 + $0xa8] sm:$0xff] %vm1462_vm7, %v1409_v41 }
 0x1dd   : > { %1487 = vst.msk [vmem:[#allocation4 + $0xc0] sm:$0xff] %vm1462_vm7, %v1415_v48  ;;  %1958 = vrot.lane.b32.xlu1 %v1888_v46, %s4899_s21  ;;  %v1903_v46 = vld [vmem:[#allocation2 + $0x12a] sm:$0xff] }
 0x1de   : > { %1773 = vrot.lane.b32.xlu0 %v1699_v47, %s4898_s14  ;;  %v1713_v47 = vld [vmem:[#allocation2 + $0x151] sm:$0xff] }
 0x1df   : > { %v1413_v34 = vpop.permute.xlu1 %1412 }
 0x1e0   : > { %v1419_v39 = vpop.permute.xlu0 %1418  ;;  %1486 = vst.msk [vmem:[#allocation4 + $0xb8] sm:$0xff] %vm1462_vm7, %v1413_v34 }
 0x1e1   : > { %1489 = vst.msk [vmem:[#allocation4 + $0xd0] sm:$0xff] %vm1462_vm7, %v1419_v39  ;;  %1771 = vrot.lane.b32.xlu1 %v1698_v40, %s4898_s14  ;;  %v1905_v40 = vld [vmem:[#allocation2 + $0x142] sm:$0xff] }
 0x1e2   : > { %1962 = vrot.lane.b32.xlu0 %v1890_v45, %s4899_s21  ;;  %v1715_v45 = vld [vmem:[#allocation2 + $0x169] sm:$0xff] }
 0x1e3   : > { %v1417_v27 = vpop.permute.xlu1 %1416 }
 0x1e4   : > { %v1423_v33 = vpop.permute.xlu0 %1422  ;;  %1488 = vst.msk [vmem:[#allocation4 + $0xc8] sm:$0xff] %vm1462_vm7, %v1417_v27 }
 0x1e5   : > { %1491 = vst.msk [vmem:[#allocation4 + $0xe0] sm:$0xff] %vm1462_vm7, %v1423_v33  ;;  %1775 = vrot.lane.b32.xlu1 %v1700_v28, %s4898_s14  ;;  %v1714_v28 = vld [vmem:[#allocation2 + $0x159] sm:$0xff] }
 0x1e6   : > { %1966 = vrot.lane.b32.xlu0 %v1892_v38, %s4899_s21  ;;  %v1906_v38 = vld [vmem:[#allocation2 + $0x152] sm:$0xff] }
 0x1e7   : > { %v1421_v20 = vpop.permute.xlu1 %1420 }
 0x1e8   : > { %v1427_v26 = vpop.permute.xlu0 %1426  ;;  %1490 = vst.msk [vmem:[#allocation4 + $0xd8] sm:$0xff] %vm1462_vm7, %v1421_v20 }
 0x1e9   : > { %1493 = vst.msk [vmem:[#allocation4 + $0xf0] sm:$0xff] %vm1462_vm7, %v1427_v26  ;;  %1964 = vrot.lane.b32.xlu1 %v1891_v21, %s4899_s21  ;;  %v1716_v21 = vld [vmem:[#allocation2 + $0x171] sm:$0xff] }
 0x1ea   : > { %1777 = vrot.lane.b32.xlu0 %v1701_v32, %s4898_s14  ;;  %v1908_v32 = vld [vmem:[#allocation2 + $0x16a] sm:$0xff] }
 0x1eb   : > { %v1425_v6 = vpop.permute.xlu1 %1424 }
 0x1ec   : > { %v1561_v18 = vpop.permute.xlu0 %1560  ;;  %1492 = vst.msk [vmem:[#allocation4 + $0xe8] sm:$0xff] %vm1462_vm7, %v1425_v6 }
 0x1ed   : > { %1657 = vst.msk [vmem:[#allocation4] sm:$0xff] %vm1656_vm9, %v1561_v18  ;;  %1968 = vrot.lane.b32.xlu1 %v1893_v15, %s4899_s21  ;;  %v1907_v15 = vld [vmem:[#allocation2 + $0x15a] sm:$0xff]  ;;  %v1909_v18 = vld [vmem:[#allocation2 + $0x172] sm:$0xff] }
 0x1ee   : > { %1781 = vrot.lane.b32.xlu0 %v1703_v25, %s4898_s14 }
 0x1ef   : > { %v1429_v37 = vpop.permute.xlu1 %1428 }
 0x1f0   : > { %v1565_v59 = vpop.permute.xlu0 %1564  ;;  %1494 = vst.msk [vmem:[#allocation4 + $0xf8] sm:$0xff] %vm1462_vm7, %v1429_v37 }
 0x1f1   : > { %1659 = vst.msk [vmem:[#allocation4 + $0x10] sm:$0xff] %vm1656_vm9, %v1565_v59  ;;  %1779 = vrot.lane.b32.xlu1 %v1702_v58, %s4898_s14  ;;  %v1719_v58 = vld [vmem:[#allocation2 + $0x199] sm:$0xff] }
 0x1f2   : > { %1970 = vrot.lane.b32.xlu0 %v1894_v13, %s4899_s21 }
 0x1f3   : > { %v1563_v60 = vpop.permute.xlu1 %1562 }
 0x1f4   : > { %v1569_v61 = vpop.permute.xlu0 %1568  ;;  %1658 = vst.msk [vmem:[#allocation4 + $0x8] sm:$0xff] %vm1656_vm9, %v1563_v60 }
 0x1f5   : > { %1661 = vst.msk [vmem:[#allocation4 + $0x20] sm:$0xff] %vm1656_vm9, %v1569_v61  ;;  %1783 = vrot.lane.b32.xlu1 %v1704_v31, %s4898_s14 }
 0x1f6   : > { %1974 = vrot.lane.b32.xlu0 %v1896_v62, %s4899_s21  ;;  %v1912_v62 = vld [vmem:[#allocation2 + $0x19a] sm:$0xff] }
 0x1f7   : > { %v1567_v42 = vpop.permute.xlu1 %1566 }
 0x1f8   : > { %v1573_v35 = vpop.permute.xlu0 %1572  ;;  %1660 = vst.msk [vmem:[#allocation4 + $0x18] sm:$0xff] %vm1656_vm9, %v1567_v42 }
 0x1f9   : > { %1663 = vst.msk [vmem:[#allocation4 + $0x30] sm:$0xff] %vm1656_vm9, %v1573_v35  ;;  %1972 = vrot.lane.b32.xlu1 %v1895_v30, %s4899_s21 }
 0x1fa   : > { %1785 = vrot.lane.b32.xlu0 %v1705_v11, %s4898_s14 }
 0x1fb   : > { %v1571_v16 = vpop.permute.xlu1 %1570 }
 0x1fc   : > { %v1577_v19 = vpop.permute.xlu0 %1576  ;;  %1662 = vst.msk [vmem:[#allocation4 + $0x28] sm:$0xff] %vm1656_vm9, %v1571_v16 }
 0x1fd   : > { %1665 = vst.msk [vmem:[#allocation4 + $0x40] sm:$0xff] %vm1656_vm9, %v1577_v19  ;;  %1976 = vrot.lane.b32.xlu1 %v1897_v1, %s4899_s21 }
 0x1fe   : > { %1789 = vrot.lane.b32.xlu0 %v1707_v44, %s4898_s14 }
 0x1ff   : > { %v1575_v4 = vpop.permute.xlu1 %1574 }
 0x200   : > { %v1581_v5 = vpop.permute.xlu0 %1580  ;;  %1664 = vst.msk [vmem:[#allocation4 + $0x38] sm:$0xff] %vm1656_vm9, %v1575_v4 }
 0x201   : > { %1667 = vst.msk [vmem:[#allocation4 + $0x50] sm:$0xff] %vm1656_vm9, %v1581_v5  ;;  %1787 = vrot.lane.b32.xlu1 %v1706_v7, %s4898_s14 }
 0x202   : > { %1978 = vrot.lane.b32.xlu0 %v1898_v14, %s4899_s21 }
 0x203   : > { %v1579_v0 = vpop.permute.xlu1 %1578 }
 0x204   : > { %v1585_v50 = vpop.permute.xlu0 %1584  ;;  %1666 = vst.msk [vmem:[#allocation4 + $0x48] sm:$0xff] %vm1656_vm9, %v1579_v0 }
 0x205   : > { %1669 = vst.msk [vmem:[#allocation4 + $0x60] sm:$0xff] %vm1656_vm9, %v1585_v50  ;;  %1791 = vrot.lane.b32.xlu1 %v1708_v29, %s4898_s14 }
 0x206   : > { %1982 = vrot.lane.b32.xlu0 %v1900_v36, %s4899_s21 }
 0x207   : > { %v1583_v10 = vpop.permute.xlu1 %1582 }
 0x208   : > { %v1589_v51 = vpop.permute.xlu0 %1588  ;;  %1668 = vst.msk [vmem:[#allocation4 + $0x58] sm:$0xff] %vm1656_vm9, %v1583_v10 }
 0x209   : > { %1671 = vst.msk [vmem:[#allocation4 + $0x70] sm:$0xff] %vm1656_vm9, %v1589_v51  ;;  %1980 = vrot.lane.b32.xlu1 %v1899_v23, %s4899_s21 }
 0x20a   : > { %1793 = vrot.lane.b32.xlu0 %v1709_v22, %s4898_s14 }
 0x20b   : > { %v1587_v54 = vpop.permute.xlu1 %1586 }
 0x20c   : > { %v1593_v3 = vpop.permute.xlu0 %1592  ;;  %1670 = vst.msk [vmem:[#allocation4 + $0x68] sm:$0xff] %vm1656_vm9, %v1587_v54 }
 0x20d   : > { %1673 = vst.msk [vmem:[#allocation4 + $0x80] sm:$0xff] %vm1656_vm9, %v1593_v3  ;;  %1984 = vrot.lane.b32.xlu1 %v1901_v9, %s4899_s21 }
 0x20e   : > { %1797 = vrot.lane.b32.xlu0 %v1711_v53, %s4898_s14 }
 0x20f   : > { %v1591_v63 = vpop.permute.xlu1 %1590 }
 0x210   : > { %v1597_v56 = vpop.permute.xlu0 %1596  ;;  %1672 = vst.msk [vmem:[#allocation4 + $0x78] sm:$0xff] %vm1656_vm9, %v1591_v63 }
 0x211   : > { %1675 = vst.msk [vmem:[#allocation4 + $0x90] sm:$0xff] %vm1656_vm9, %v1597_v56  ;;  %1795 = vrot.lane.b32.xlu1 %v1710_v55, %s4898_s14 }
 0x212   : > { %1986 = vrot.lane.b32.xlu0 %v1902_v2, %s4899_s21 }
 0x213   : > { %v1595_v49 = vpop.permute.xlu1 %1594 }
 0x214   : > { %v1601_v43 = vpop.permute.xlu0 %1600  ;;  %1674 = vst.msk [vmem:[#allocation4 + $0x88] sm:$0xff] %vm1656_vm9, %v1595_v49 }
 0x215   : > { %1677 = vst.msk [vmem:[#allocation4 + $0xa0] sm:$0xff] %vm1656_vm9, %v1601_v43  ;;  %1799 = vrot.lane.b32.xlu1 %v1712_v12, %s4898_s14 }
 0x216   : > { %1990 = vrot.lane.b32.xlu0 %v1904_v57, %s4899_s21 }
 0x217   : > { %v1599_v41 = vpop.permute.xlu1 %1598 }
 0x218   : > { %v1605_v48 = vpop.permute.xlu0 %1604  ;;  %1676 = vst.msk [vmem:[#allocation4 + $0x98] sm:$0xff] %vm1656_vm9, %v1599_v41 }
 0x219   : > { %1679 = vst.msk [vmem:[#allocation4 + $0xb0] sm:$0xff] %vm1656_vm9, %v1605_v48  ;;  %1988 = vrot.lane.b32.xlu1 %v1903_v46, %s4899_s21 }
 0x21a   : > { %1801 = vrot.lane.b32.xlu0 %v1713_v47, %s4898_s14 }
 0x21b   : > { %v1603_v34 = vpop.permute.xlu1 %1602 }
 0x21c   : > { %v1609_v39 = vpop.permute.xlu0 %1608  ;;  %1678 = vst.msk [vmem:[#allocation4 + $0xa8] sm:$0xff] %vm1656_vm9, %v1603_v34 }
 0x21d   : > { %1681 = vst.msk [vmem:[#allocation4 + $0xc0] sm:$0xff] %vm1656_vm9, %v1609_v39  ;;  %1992 = vrot.lane.b32.xlu1 %v1905_v40, %s4899_s21 }
 0x21e   : > { %1805 = vrot.lane.b32.xlu0 %v1715_v45, %s4898_s14 }
 0x21f   : > { %v1607_v27 = vpop.permute.xlu1 %1606 }
 0x220   : > { %v1613_v33 = vpop.permute.xlu0 %1612  ;;  %1680 = vst.msk [vmem:[#allocation4 + $0xb8] sm:$0xff] %vm1656_vm9, %v1607_v27 }
 0x221   : > { %1683 = vst.msk [vmem:[#allocation4 + $0xd0] sm:$0xff] %vm1656_vm9, %v1613_v33  ;;  %1803 = vrot.lane.b32.xlu1 %v1714_v28, %s4898_s14 }
 0x222   : > { %1994 = vrot.lane.b32.xlu0 %v1906_v38, %s4899_s21 }
 0x223   : > { %v1611_v20 = vpop.permute.xlu1 %1610 }
 0x224   : > { %v1617_v26 = vpop.permute.xlu0 %1616  ;;  %1682 = vst.msk [vmem:[#allocation4 + $0xc8] sm:$0xff] %vm1656_vm9, %v1611_v20 }
 0x225   : > { %1685 = vst.msk [vmem:[#allocation4 + $0xe0] sm:$0xff] %vm1656_vm9, %v1617_v26  ;;  %1807 = vrot.lane.b32.xlu1 %v1716_v21, %s4898_s14 }
 0x226   : > { %1998 = vrot.lane.b32.xlu0 %v1908_v32, %s4899_s21 }
 0x227   : > { %v1615_v25 = vpop.permute.xlu1 %1614 }
 0x228   : > { %v1621_v6 = vpop.permute.xlu0 %1620  ;;  %1684 = vst.msk [vmem:[#allocation4 + $0xd8] sm:$0xff] %vm1656_vm9, %v1615_v25 }
 0x229   : > { %1687 = vst.msk [vmem:[#allocation4 + $0xf0] sm:$0xff] %vm1656_vm9, %v1621_v6  ;;  %1996 = vrot.lane.b32.xlu1 %v1907_v15, %s4899_s21 }
 0x22a   : > { %1809 = vrot.lane.b32.xlu0 %v5866_v17, %s4898_s14  ;;  %v1720_v17 = vld [vmem:[#allocation2 + $0x1a1] sm:$0xff] }
 0x22b   : > { %v1619_v13 = vpop.permute.xlu1 %1618 }
 0x22c   : > { %v1754_v37 = vpop.permute.xlu0 %1753  ;;  %1686 = vst.msk [vmem:[#allocation4 + $0xe8] sm:$0xff] %vm1656_vm9, %v1619_v13 }
 0x22d   : > { %1850 = vst.msk [vmem:[#allocation4] sm:$0xff] %vm1849_vm10, %v1754_v37  ;;  %2000 = vrot.lane.b32.xlu1 %v1909_v18, %s4899_s21 }
 0x22e   : > { %1813 = vrot.lane.b32.xlu0 %v1719_v58, %s4898_s14 }
 0x22f   : > { %v1623_v59 = vpop.permute.xlu1 %1622 }
 0x230   : > { %v1758_v31 = vpop.permute.xlu0 %1757  ;;  %1688 = vst.msk [vmem:[#allocation4 + $0xf8] sm:$0xff] %vm1656_vm9, %v1623_v59 }
 0x231   : > { %1852 = vst.msk [vmem:[#allocation4 + $0x10] sm:$0xff] %vm1849_vm10, %v1758_v31  ;;  %1811 = vrot.lane.b32.xlu1 %v5880_v52, %s4898_s14  ;;  %v1913_v52 = vld [vmem:[#allocation2 + $0x1a2] sm:$0xff] }
 0x232   : > { %2002 = vrot.lane.b32.xlu0 %v5966_v24, %s4899_s21 }
 0x233   : > { %v1756_v60 = vpop.permute.xlu1 %1755 }
 0x234   : > { %v1762_v61 = vpop.permute.xlu0 %1761  ;;  %1851 = vst.msk [vmem:[#allocation4 + $0x8] sm:$0xff] %vm1849_vm10, %v1756_v60 }
 0x235   : > { %1854 = vst.msk [vmem:[#allocation4 + $0x20] sm:$0xff] %vm1849_vm10, %v1762_v61  ;;  %1815 = vrot.lane.b32.xlu1 %v1720_v17, %s4898_s14 }
 0x236   : > { %2006 = vrot.lane.b32.xlu0 %v1912_v62, %s4899_s21 }
 0x237   : > { %v1760_v30 = vpop.permute.xlu1 %1759 }
 0x238   : > { %v1766_v11 = vpop.permute.xlu0 %1765  ;;  %1853 = vst.msk [vmem:[#allocation4 + $0x18] sm:$0xff] %vm1849_vm10, %v1760_v30 }
 0x239   : > { %1856 = vst.msk [vmem:[#allocation4 + $0x30] sm:$0xff] %vm1849_vm10, %v1766_v11  ;;  %2004 = vrot.lane.b32.xlu1 %v5980_v8, %s4899_s21 }
 0x23b   : > { %v1764_v24 = vpop.permute.xlu1 %1763 }
 0x23c   : > { %v1770_v42 = vpop.permute.xlu0 %1769  ;;  %1855 = vst.msk [vmem:[#allocation4 + $0x28] sm:$0xff] %vm1849_vm10, %v1764_v24 }
 0x23d   : > { %1858 = vst.msk [vmem:[#allocation4 + $0x40] sm:$0xff] %vm1849_vm10, %v1770_v42  ;;  %2008 = vrot.lane.b32.xlu1 %v1913_v52, %s4899_s21 }
 0x23f   : > { %v1768_v35 = vpop.permute.xlu1 %1767 }
 0x240   : > { %v1949_v1 = vpop.permute.xlu0 %1948  ;;  %1857 = vst.msk [vmem:[#allocation4 + $0x38] sm:$0xff] %vm1849_vm10, %v1768_v35 }
 0x241   : > { %2044 = vst.msk [vmem:[#allocation4 + $0x8] sm:$0xff] %vm2042_vm11, %v1949_v1 }
 0x243   : > { %v1947_v44 = vpop.permute.xlu1 %1946 }
 0x244   : > { %v1953_v16 = vpop.permute.xlu0 %1952  ;;  %2043 = vst.msk [vmem:[#allocation4] sm:$0xff] %vm2042_vm11, %v1947_v44 }
 0x245   : > { %2046 = vst.msk [vmem:[#allocation4 + $0x18] sm:$0xff] %vm2042_vm11, %v1953_v16 }
 0x247   : > { %v1951_v8 = vpop.permute.xlu1 %1950 }
 0x248   : > { %v1957_v19 = vpop.permute.xlu0 %1956  ;;  %2045 = vst.msk [vmem:[#allocation4 + $0x10] sm:$0xff] %vm2042_vm11, %v1951_v8  ;;  %v2076_v7 = vld [vmem:[#allocation4 + $0x8] sm:$0xff] }
 0x249   : > { %2048 = vst.msk [vmem:[#allocation4 + $0x28] sm:$0xff] %vm2042_vm11, %v1957_v19 }
 0x24b   : > { %v1955_v14 = vpop.permute.xlu1 %1954  ;;  %v2075_v4 = vld [vmem:[#allocation4] sm:$0xff] }
 0x24c   : > { %v1961_v5 = vpop.permute.xlu0 %1960  ;;  %2047 = vst.msk [vmem:[#allocation4 + $0x20] sm:$0xff] %vm2042_vm11, %v1955_v14  ;;  %v2107_v29 = vpack.c.bf16 %v2076_v7, %v2075_v4  ;;  %v2078_v36 = vld [vmem:[#allocation4 + $0x18] sm:$0xff] }
 0x24d   : > { %2050 = vst.msk [vmem:[#allocation4 + $0x38] sm:$0xff] %vm2042_vm11, %v1961_v5 }
 0x24e   : > { %4788 = vmatprep.mubr.msk.bf16.mxu0 %vm2143_vm12, %v2107_v29 }
 0x24f   : > { %v1959_v0 = vpop.permute.xlu1 %1958  ;;  %v2077_v50 = vld [vmem:[#allocation4 + $0x10] sm:$0xff] }
 0x250   : > { %v1774_v23 = vpop.permute.xlu0 %1773  ;;  %2049 = vst.msk [vmem:[#allocation4 + $0x30] sm:$0xff] %vm2042_vm11, %v1959_v0  ;;  %v2108_v22 = vpack.c.bf16 %v2078_v36, %v2077_v50  ;;  %v2080_v10 = vld [vmem:[#allocation4 + $0x28] sm:$0xff] }
 0x251   : > { %1860 = vst.msk [vmem:[#allocation4 + $0x50] sm:$0xff] %vm1849_vm10, %v1774_v23 }
 0x252   : > { %4789 = vmatmul.mubr.msk.bf16.vlgmr.msra.gmra.mxu0 %vm2143_vm12, %v2108_v22 }
 0x253   : > { %v1772_v51 = vpop.permute.xlu1 %1771  ;;  %v2079_v9 = vld [vmem:[#allocation4 + $0x20] sm:$0xff] }
 0x254   : > { %v1963_v53 = vpop.permute.xlu0 %1962  ;;  %1859 = vst.msk [vmem:[#allocation4 + $0x48] sm:$0xff] %vm1849_vm10, %v1772_v51  ;;  %v2109_v54 = vpack.c.bf16 %v2080_v10, %v2079_v9  ;;  %v2082_v3 = vld [vmem:[#allocation4 + $0x38] sm:$0xff] }
 0x255   : > { %2051 = vst.msk [vmem:[#allocation4 + $0x40] sm:$0xff] %vm2042_vm11, %v1963_v53 }
 0x256   : > { %4792 = vmatprep.mubr.msk.bf16.mxu0 %vm2143_vm12, %v2109_v54  ;;  %v2564_v54 = vld [vmem:[#allocation3 + $0x1] sm:$0xff] }
 0x257   : > { %v1776_v55 = vpop.permute.xlu1 %1775  ;;  %v2081_v2 = vld [vmem:[#allocation4 + $0x30] sm:$0xff]  ;;  %2628 = vrot.lane.b32.xlu0 %v2564_v54, %s4892_s8 }
 0x258   : > { %v1967_v63 = vpop.permute.xlu0 %1966  ;;  %1861 = vst.msk [vmem:[#allocation4 + $0x58] sm:$0xff] %vm1849_vm10, %v1776_v55  ;;  %v2110_v56 = vpack.c.bf16 %v2082_v3, %v2081_v2 }
 0x259   : > { %2053 = vst.msk [vmem:[#allocation4 + $0x50] sm:$0xff] %vm2042_vm11, %v1967_v63  ;;  %v2565_v63 = vld [vmem:[#allocation3 + $0x9] sm:$0xff] }
 0x25a   : > { %4793 = vmatmul.mubr.msk.bf16.gmra.mxu0 %vm2143_vm12, %v2110_v56  ;;  %2630 = vrot.lane.b32.xlu1 %v2565_v63, %s4892_s8 }
 0x25b   : > { %v1965_v12 = vpop.permute.xlu1 %1964 }
 0x25c   : > { %v1778_v57 = vpop.permute.xlu0 %1777  ;;  %2052 = vst.msk [vmem:[#allocation4 + $0x48] sm:$0xff] %vm2042_vm11, %v1965_v12  ;;  %v2083_v46 = vld [vmem:[#allocation4 + $0x40] sm:$0xff] }
 0x25d   : > { %1862 = vst.msk [vmem:[#allocation4 + $0x60] sm:$0xff] %vm1849_vm10, %v1778_v57 }
 0x25f   : > { %v1969_v49 = vpop.permute.xlu1 %1968 }
 0x260   : > { %v1782_v43 = vpop.permute.xlu0 %1781  ;;  %2054 = vst.msk [vmem:[#allocation4 + $0x58] sm:$0xff] %vm2042_vm11, %v1969_v49  ;;  %v2085_v45 = vld [vmem:[#allocation4 + $0x50] sm:$0xff] }
 0x261   : > { %1864 = vst.msk [vmem:[#allocation4 + $0x70] sm:$0xff] %vm1849_vm10, %v1782_v43 }
 0x263   : > { %v1780_v47 = vpop.permute.xlu1 %1779  ;;  %v2084_v41 = vld [vmem:[#allocation4 + $0x48] sm:$0xff] }
 0x264   : > { %v1971_v48 = vpop.permute.xlu0 %1970  ;;  %1863 = vst.msk [vmem:[#allocation4 + $0x68] sm:$0xff] %vm1849_vm10, %v1780_v47  ;;  %v2111_v40 = vpack.c.bf16 %v2084_v41, %v2083_v46 }
 0x265   : > { %2055 = vst.msk [vmem:[#allocation4 + $0x60] sm:$0xff] %vm2042_vm11, %v1971_v48 }
 0x266   : > { %4796 = vmatprep.mubr.msk.bf16.mxu0 %vm2143_vm12, %v2111_v40 }
 0x267   : > { %v1784_v34 = vpop.permute.xlu1 %1783  ;;  %v2086_v39 = vld [vmem:[#allocation4 + $0x58] sm:$0xff] }
 0x268   : > { %v1975_v28 = vpop.permute.xlu0 %1974  ;;  %1865 = vst.msk [vmem:[#allocation4 + $0x78] sm:$0xff] %vm1849_vm10, %v1784_v34  ;;  %v2112_v38 = vpack.c.bf16 %v2086_v39, %v2085_v45 }
 0x269   : > { %2057 = vst.msk [vmem:[#allocation4 + $0x70] sm:$0xff] %vm2042_vm11, %v1975_v28 }
 0x26a   : > { %4797 = vmatmul.mubr.msk.bf16.gmra.mxu0 %vm2143_vm12, %v2112_v38 }
 0x26b   : > { %v1973_v27 = vpop.permute.xlu1 %1972 }
 0x26c   : > { %v1786_v33 = vpop.permute.xlu0 %1785  ;;  %2056 = vst.msk [vmem:[#allocation4 + $0x68] sm:$0xff] %vm2042_vm11, %v1973_v27  ;;  %v2087_v20 = vld [vmem:[#allocation4 + $0x60] sm:$0xff] }
 0x26d   : > { %1866 = vst.msk [vmem:[#allocation4 + $0x80] sm:$0xff] %vm1849_vm10, %v1786_v33 }
 0x26f   : > { %v1977_v21 = vpop.permute.xlu1 %1976 }
 0x270   : > { %v1790_v32 = vpop.permute.xlu0 %1789  ;;  %2058 = vst.msk [vmem:[#allocation4 + $0x78] sm:$0xff] %vm2042_vm11, %v1977_v21  ;;  %v2089_v18 = vld [vmem:[#allocation4 + $0x70] sm:$0xff] }
 0x271   : > { %1868 = vst.msk [vmem:[#allocation4 + $0x90] sm:$0xff] %vm1849_vm10, %v1790_v32  ;;  %v2500_v21 = vld [vmem:[#allocation3] sm:$0xff]  ;;  %v6298_v32 = vld [vmem:[%s7444_s3] ss:$0 sm:$0xff] }
 0x272   : > { %2532 = vst.msk [vmem:[#allocation4] sm:$0xff] %vm280_vm0, %v2500_v21 }
 0x273   : > { %v1788_v26 = vpop.permute.xlu1 %1787  ;;  %v2088_v15 = vld [vmem:[#allocation4 + $0x68] sm:$0xff] }
 0x274   : > { %v1979_v25 = vpop.permute.xlu0 %1978  ;;  %1867 = vst.msk [vmem:[#allocation4 + $0x88] sm:$0xff] %vm1849_vm10, %v1788_v26  ;;  %v2113_v6 = vpack.c.bf16 %v2088_v15, %v2087_v20  ;;  %v6304_v15 = vld [vmem:[%s7445_s4] ss:$0 sm:$0xff] }
 0x275   : > { %2059 = vst.msk [vmem:[#allocation4 + $0x80] sm:$0xff] %vm2042_vm11, %v1979_v25 }
 0x276   : > { %4800 = vmatprep.mubr.msk.bf16.mxu0 %vm2143_vm12, %v2113_v6  ;;  %v2501_v6 = vld [vmem:[#allocation3 + $0x8] sm:$0xff] }
 0x277   : > { %v1792_v58 = vpop.permute.xlu1 %1791  ;;  %v2090_v13 = vld [vmem:[#allocation4 + $0x78] sm:$0xff]  ;;  %2533 = vst.msk [vmem:[#allocation4 + $0x8] sm:$0xff] %vm280_vm0, %v2501_v6 }
 0x278   : > { %v1983_v37 = vpop.permute.xlu0 %1982  ;;  %1869 = vst.msk [vmem:[#allocation4 + $0x98] sm:$0xff] %vm1849_vm10, %v1792_v58  ;;  %v2114_v59 = vpack.c.bf16 %v2090_v13, %v2089_v18 }
 0x279   : > { %2061 = vst.msk [vmem:[#allocation4 + $0x90] sm:$0xff] %vm2042_vm11, %v1983_v37 }
 0x27a   : > { %4801 = vmatmul.mubr.msk.bf16.gmra.mxu0 %vm2143_vm12, %v2114_v59 }
 0x27b   : > { %v1981_v31 = vpop.permute.xlu1 %1980 }
 0x27c   : > { %v1794_v17 = vpop.permute.xlu0 %1793  ;;  %2060 = vst.msk [vmem:[#allocation4 + $0x88] sm:$0xff] %vm2042_vm11, %v1981_v31  ;;  %v2091_v61 = vld [vmem:[#allocation4 + $0x80] sm:$0xff] }
 0x27d   : > { %1870 = vst.msk [vmem:[#allocation4 + $0xa0] sm:$0xff] %vm1849_vm10, %v1794_v17 }
 0x27f   : > { %v1985_v62 = vpop.permute.xlu1 %1984 }
 0x280   : > { %v1798_v60 = vpop.permute.xlu0 %1797  ;;  %2062 = vst.msk [vmem:[#allocation4 + $0x98] sm:$0xff] %vm2042_vm11, %v1985_v62  ;;  %v2093_v42 = vld [vmem:[#allocation4 + $0x90] sm:$0xff] }
 0x281   : > { %1872 = vst.msk [vmem:[#allocation4 + $0xb0] sm:$0xff] %vm1849_vm10, %v1798_v60 }
 0x283   : > { %v1796_v30 = vpop.permute.xlu1 %1795  ;;  %v2092_v11 = vld [vmem:[#allocation4 + $0x88] sm:$0xff] }
 0x284   : > { %v1987_v52 = vpop.permute.xlu0 %1986  ;;  %1871 = vst.msk [vmem:[#allocation4 + $0xa8] sm:$0xff] %vm1849_vm10, %v1796_v30  ;;  %v2115_v24 = vpack.c.bf16 %v2092_v11, %v2091_v61 }
 0x285   : > { %2063 = vst.msk [vmem:[#allocation4 + $0xa0] sm:$0xff] %vm2042_vm11, %v1987_v52 }
 0x286   : > { %4804 = vmatprep.mubr.msk.bf16.mxu0 %vm2143_vm12, %v2115_v24 }
 0x287   : > { %v1800_v35 = vpop.permute.xlu1 %1799  ;;  %v2094_v1 = vld [vmem:[#allocation4 + $0x98] sm:$0xff] }
 0x288   : > { %v1991_v44 = vpop.permute.xlu0 %1990  ;;  %1873 = vst.msk [vmem:[#allocation4 + $0xb8] sm:$0xff] %vm1849_vm10, %v1800_v35  ;;  %v2116_v16 = vpack.c.bf16 %v2094_v1, %v2093_v42 }
 0x289   : > { %2065 = vst.msk [vmem:[#allocation4 + $0xb0] sm:$0xff] %vm2042_vm11, %v1991_v44 }
 0x28a   : > { %4805 = vmatmul.mubr.msk.bf16.gmra.mxu0 %vm2143_vm12, %v2116_v16 }
 0x28b   : > { %v1989_v8 = vpop.permute.xlu1 %1988 }
 0x28c   : > { %v1802_v19 = vpop.permute.xlu0 %1801  ;;  %2064 = vst.msk [vmem:[#allocation4 + $0xa8] sm:$0xff] %vm2042_vm11, %v1989_v8  ;;  %v2095_v4 = vld [vmem:[#allocation4 + $0xa0] sm:$0xff] }
 0x28d   : > { %1874 = vst.msk [vmem:[#allocation4 + $0xc0] sm:$0xff] %vm1849_vm10, %v1802_v19 }
 0x28f   : > { %v1993_v7 = vpop.permute.xlu1 %1992 }
 0x290   : > { %v1806_v14 = vpop.permute.xlu0 %1805  ;;  %2066 = vst.msk [vmem:[#allocation4 + $0xb8] sm:$0xff] %vm2042_vm11, %v1993_v7  ;;  %v2097_v50 = vld [vmem:[#allocation4 + $0xb0] sm:$0xff] }
 0x291   : > { %1876 = vst.msk [vmem:[#allocation4 + $0xd0] sm:$0xff] %vm1849_vm10, %v1806_v14 }
 0x293   : > { %v1804_v5 = vpop.permute.xlu1 %1803  ;;  %v2096_v29 = vld [vmem:[#allocation4 + $0xa8] sm:$0xff] }
 0x294   : > { %v1995_v36 = vpop.permute.xlu0 %1994  ;;  %1875 = vst.msk [vmem:[#allocation4 + $0xc8] sm:$0xff] %vm1849_vm10, %v1804_v5  ;;  %v2117_v0 = vpack.c.bf16 %v2096_v29, %v2095_v4 }
 0x295   : > { %2067 = vst.msk [vmem:[#allocation4 + $0xc0] sm:$0xff] %vm2042_vm11, %v1995_v36 }
 0x296   : > { %4808 = vmatprep.mubr.msk.bf16.mxu0 %vm2143_vm12, %v2117_v0 }
 0x297   : > { %v1808_v23 = vpop.permute.xlu1 %1807  ;;  %v2098_v22 = vld [vmem:[#allocation4 + $0xb8] sm:$0xff] }
 0x298   : > { %v1999_v10 = vpop.permute.xlu0 %1998  ;;  %1877 = vst.msk [vmem:[#allocation4 + $0xd8] sm:$0xff] %vm1849_vm10, %v1808_v23  ;;  %v2118_v51 = vpack.c.bf16 %v2098_v22, %v2097_v50 }
 0x299   : > { %2069 = vst.msk [vmem:[#allocation4 + $0xd0] sm:$0xff] %vm2042_vm11, %v1999_v10 }
 0x29a   : > { %4809 = vmatmul.mubr.msk.bf16.gmra.mxu0 %vm2143_vm12, %v2118_v51 }
 0x29b   : > { %v1997_v9 = vpop.permute.xlu1 %1996 }
 0x29c   : > { %v1810_v53 = vpop.permute.xlu0 %1809  ;;  %2068 = vst.msk [vmem:[#allocation4 + $0xc8] sm:$0xff] %vm2042_vm11, %v1997_v9  ;;  %v2099_v2 = vld [vmem:[#allocation4 + $0xc0] sm:$0xff] }
 0x29d   : > { %1878 = vst.msk [vmem:[#allocation4 + $0xe0] sm:$0xff] %vm1849_vm10, %v1810_v53 }
 0x29f   : > { %v2001_v3 = vpop.permute.xlu1 %2000 }
 0x2a0   : > { %v1814_v55 = vpop.permute.xlu0 %1813  ;;  %2070 = vst.msk [vmem:[#allocation4 + $0xd8] sm:$0xff] %vm2042_vm11, %v2001_v3  ;;  %v2101_v43 = vld [vmem:[#allocation4 + $0xd0] sm:$0xff] }
 0x2a1   : > { %1880 = vst.msk [vmem:[#allocation4 + $0xf0] sm:$0xff] %vm1849_vm10, %v1814_v55 }
 0x2a3   : > { %v1812_v56 = vpop.permute.xlu1 %1811  ;;  %v2100_v12 = vld [vmem:[#allocation4 + $0xc8] sm:$0xff] }
 0x2a4   : > { %v2003_v57 = vpop.permute.xlu0 %2002  ;;  %1879 = vst.msk [vmem:[#allocation4 + $0xe8] sm:$0xff] %vm1849_vm10, %v1812_v56  ;;  %v2119_v49 = vpack.c.bf16 %v2100_v12, %v2099_v2 }
 0x2a5   : > { %2071 = vst.msk [vmem:[#allocation4 + $0xe0] sm:$0xff] %vm2042_vm11, %v2003_v57 }
 0x2a6   : > { %4812 = vmatprep.mubr.msk.bf16.mxu0 %vm2143_vm12, %v2119_v49 }
 0x2a7   : > { %v1816_v46 = vpop.permute.xlu1 %1815  ;;  %v2102_v47 = vld [vmem:[#allocation4 + $0xd8] sm:$0xff] }
 0x2a8   : > { %v2007_v41 = vpop.permute.xlu0 %2006  ;;  %1881 = vst.msk [vmem:[#allocation4 + $0xf8] sm:$0xff] %vm1849_vm10, %v1816_v46  ;;  %v2120_v48 = vpack.c.bf16 %v2102_v47, %v2101_v43 }
 0x2a9   : > { %2073 = vst.msk [vmem:[#allocation4 + $0xf0] sm:$0xff] %vm2042_vm11, %v2007_v41 }
 0x2aa   : > { %4813 = vmatmul.mubr.msk.bf16.gmra.mxu0 %vm2143_vm12, %v2120_v48 }
 0x2ab   : > { %v2005_v40 = vpop.permute.xlu1 %2004 }
 0x2ac   : > { %2072 = vst.msk [vmem:[#allocation4 + $0xe8] sm:$0xff] %vm2042_vm11, %v2005_v40  ;;  %v2103_v34 = vld [vmem:[#allocation4 + $0xe0] sm:$0xff] }
 0x2af   : > { %v2009_v45 = vpop.permute.xlu1 %2008 }
 0x2b0   : > { %2074 = vst.msk [vmem:[#allocation4 + $0xf8] sm:$0xff] %vm2042_vm11, %v2009_v45  ;;  %v2105_v38 = vld [vmem:[#allocation4 + $0xf0] sm:$0xff] }
 0x2b3   : > { %v2104_v39 = vld [vmem:[#allocation4 + $0xe8] sm:$0xff] }
 0x2b4   : > { %v2121_v28 = vpack.c.bf16 %v2104_v39, %v2103_v34 }
 0x2b6   : > { %4816 = vmatprep.mubr.msk.bf16.mxu0 %vm2143_vm12, %v2121_v28 }
 0x2b7   : > { %v2106_v27 = vld [vmem:[#allocation4 + $0xf8] sm:$0xff] }
 0x2b8   : > { %v2122_v33 = vpack.c.bf16 %v2106_v27, %v2105_v38 }
 0x2ba   : > { %4817 = vmatmul.mubr.msk.bf16.gmra.mxu0 %vm2143_vm12, %v2122_v33 }
 0x2c9   : > { %v2629_v20 = vpop.permute.xlu0 %2628 }
 0x2ca   : > { %2724 = vst.msk [vmem:[#allocation4] sm:$0xff] %vm690_vm3, %v2629_v20 }
 0x2cc   : > { %v2631_v37 = vpop.permute.xlu1 %2630 }
 0x2cd   : > { %2725 = vst.msk [vmem:[#allocation4 + $0x8] sm:$0xff] %vm690_vm3, %v2631_v37 }
 0x312   : > { %v4790_v26 = vpop.f32.mrf.mxu0 }
 0x313   : > { %v2366_v25 = vmul.f32 %v4790_v26, %v6298_v32 }
 0x314   : > { %v2230_v18 = vpop.f32.mrf.mxu0 }
 0x315   : > { %v2405_v58 = vadd.f32 %v6304_v15, %v2366_v25  ;;  %v2364_v13 = vmul.f32 %v6298_v32, %v2230_v18 }
 0x316   : > { %v4791_v59 = vpop.f32.mrf.mxu0 }
 0x317   : > { %v2437_v31 = vmax.f32 %v2405_v58, 0.0  ;;  %v2403_v17 = vadd.f32 %v6304_v15, %v2364_v13  ;;  %v2367_v62 = vmul.f32 %v4791_v59, %v6298_v32 }
 0x318   : > { %v2233_v60 = vpop.f32.mrf.mxu0 }
 0x319   : > { %2470 = vst.msk [vmem:[#allocation3 + $0x31] sm:$0xff] %vm280_vm0, %v2437_v31  ;;  %v2435_v61 = vmax.f32 %v2403_v17, 0.0  ;;  %v2406_v30 = vadd.f32 %v6304_v15, %v2367_v62  ;;  %v2365_v11 = vmul.f32 %v6298_v32, %v2233_v60 }
 0x31a   : > { %v4794_v52 = vpop.f32.mrf.mxu0 }
 0x31b   : > { %2468 = vst.msk [vmem:[#allocation3 + $0x19] sm:$0xff] %vm280_vm0, %v2435_v61  ;;  %v2438_v24 = vmax.f32 %v2406_v30, 0.0  ;;  %v2404_v42 = vadd.f32 %v6304_v15, %v2365_v11  ;;  %v2370_v35 = vmul.f32 %v4794_v52, %v6298_v32 }
 0x31c   : > { %v2246_v1 = vpop.f32.mrf.mxu0 }
 0x31d   : > { %2471 = vst.msk [vmem:[#allocation3 + $0x39] sm:$0xff] %vm280_vm0, %v2438_v24  ;;  %v2436_v44 = vmax.f32 %v2404_v42, 0.0  ;;  %v2409_v16 = vadd.f32 %v6304_v15, %v2370_v35  ;;  %v2368_v8 = vmul.f32 %v6298_v32, %v2246_v1 }
 0x31e   : > { %v4795_v19 = vpop.f32.mrf.mxu0 }
 0x31f   : > { %2469 = vst.msk [vmem:[#allocation3 + $0x21] sm:$0xff] %vm280_vm0, %v2436_v44  ;;  %v2441_v7 = vmax.f32 %v2409_v16, 0.0  ;;  %v2407_v14 = vadd.f32 %v6304_v15, %v2368_v8  ;;  %v2371_v4 = vmul.f32 %v4795_v19, %v6298_v32 }
 0x320   : > { %v2249_v5 = vpop.f32.mrf.mxu0  ;;  %v6326_v29 = vld [vmem:[#allocation3 + $0x30] sm:$0xff] }
 0x321   : > { %2474 = vst.msk [vmem:[#allocation3 + $0x61] sm:$0xff] %vm280_vm0, %v2441_v7  ;;  %v2439_v36 = vmax.f32 %v2407_v14, 0.0  ;;  %v2410_v0 = vadd.f32 %v6304_v15, %v2371_v4  ;;  %v2369_v50 = vmul.f32 %v6298_v32, %v2249_v5  ;;  %2536 = vst.msk [vmem:[#allocation4 + $0x20] sm:$0xff] %vm280_vm0, %v6326_v29  ;;  %v6346_v54 = vld [vmem:[#allocation3 + $0x31] sm:$0xff] }
 0x322   : > { %v6333_v23 = vld [vmem:[#allocation3 + $0x19] sm:$0xff] }
 0x323   : > { %v6335_v22 = vld [vmem:[#allocation3 + $0x18] sm:$0xff]  ;;  %2472 = vst.msk [vmem:[#allocation3 + $0x49] sm:$0xff] %vm280_vm0, %v2439_v36  ;;  %v2442_v10 = vmax.f32 %v2410_v0, 0.0  ;;  %v2408_v51 = vadd.f32 %v6304_v15, %v2369_v50  ;;  %2632 = vrot.lane.b32.xlu0 %v6333_v23, %s4892_s8 }
 0x324   : > { %2534 = vst.msk [vmem:[#allocation4 + $0x10] sm:$0xff] %vm280_vm0, %v6335_v22  ;;  %v6344_v53 = vld [vmem:[#allocation3 + $0x38] sm:$0xff] }
 0x325   : > { %2475 = vst.msk [vmem:[#allocation3 + $0x69] sm:$0xff] %vm280_vm0, %v2442_v10  ;;  %v2440_v9 = vmax.f32 %v2408_v51, 0.0  ;;  %2537 = vst.msk [vmem:[#allocation4 + $0x28] sm:$0xff] %vm280_vm0, %v6344_v53  ;;  %v6365_v56 = vld [vmem:[#allocation3 + $0x39] sm:$0xff] }
 0x326   : > { %v6348_v3 = vld [vmem:[#allocation3 + $0x21] sm:$0xff] }
 0x327   : > { %2473 = vst.msk [vmem:[#allocation3 + $0x51] sm:$0xff] %vm280_vm0, %v2440_v9  ;;  %2636 = vrot.lane.b32.xlu0 %v6346_v54, %s4892_s8  ;;  %2634 = vrot.lane.b32.xlu1 %v6348_v3, %s4892_s8  ;;  %v6357_v55 = vld [vmem:[#allocation3 + $0x20] sm:$0xff] }
 0x328   : > { %2535 = vst.msk [vmem:[#allocation4 + $0x18] sm:$0xff] %vm280_vm0, %v6357_v55  ;;  %v6361_v2 = vld [vmem:[#allocation3 + $0x60] sm:$0xff] }
 0x329   : > { %2540 = vst.msk [vmem:[#allocation4 + $0x40] sm:$0xff] %vm280_vm0, %v6361_v2  ;;  %v6382_v40 = vld [vmem:[#allocation3 + $0x61] sm:$0xff] }
 0x32a   : > { %v4798_v63 = vpop.f32.mrf.mxu0  ;;  %v6367_v12 = vld [vmem:[#allocation3 + $0x49] sm:$0xff] }
 0x32b   : > { %v6369_v57 = vld [vmem:[#allocation3 + $0x48] sm:$0xff]  ;;  %v2374_v49 = vmul.f32 %v4798_v63, %v6298_v32  ;;  %2638 = vrot.lane.b32.xlu1 %v6365_v56, %s4892_s8  ;;  %2640 = vrot.lane.b32.xlu0 %v6367_v12, %s4892_s8 }
 0x32c   : > { %2538 = vst.msk [vmem:[#allocation4 + $0x30] sm:$0xff] %vm280_vm0, %v6369_v57  ;;  %v2262_v43 = vpop.f32.mrf.mxu0  ;;  %v6380_v41 = vld [vmem:[#allocation3 + $0x68] sm:$0xff] }
 0x32d   : > { %v2413_v46 = vadd.f32 %v6304_v15, %v2374_v49  ;;  %v2372_v47 = vmul.f32 %v6298_v32, %v2262_v43  ;;  %2541 = vst.msk [vmem:[#allocation4 + $0x48] sm:$0xff] %vm280_vm0, %v6380_v41  ;;  %v6401_v26 = vld [vmem:[#allocation3 + $0x69] sm:$0xff] }
 0x32e   : > { %v4799_v48 = vpop.f32.mrf.mxu0  ;;  %v6384_v45 = vld [vmem:[#allocation3 + $0x51] sm:$0xff] }
 0x32f   : > { %v2445_v34 = vmax.f32 %v2413_v46, 0.0  ;;  %v2411_v39 = vadd.f32 %v6304_v15, %v2372_v47  ;;  %v2375_v28 = vmul.f32 %v4799_v48, %v6298_v32  ;;  %2644 = vrot.lane.b32.xlu0 %v6382_v40, %s4892_s8  ;;  %2642 = vrot.lane.b32.xlu1 %v6384_v45, %s4892_s8  ;;  %v6394_v38 = vld [vmem:[#allocation3 + $0x50] sm:$0xff] }
 0x330   : > { %v2265_v27 = vpop.f32.mrf.mxu0  ;;  %2539 = vst.msk [vmem:[#allocation4 + $0x38] sm:$0xff] %vm280_vm0, %v6394_v38 }
 0x331   : > { %2478 = vst.msk [vmem:[#allocation3 + $0x91] sm:$0xff] %vm280_vm0, %v2445_v34  ;;  %v2443_v33 = vmax.f32 %v2411_v39, 0.0  ;;  %v2414_v21 = vadd.f32 %v6304_v15, %v2375_v28  ;;  %v2373_v20 = vmul.f32 %v6298_v32, %v2265_v27 }
 0x333   : > { %2476 = vst.msk [vmem:[#allocation3 + $0x79] sm:$0xff] %vm280_vm0, %v2443_v33  ;;  %v2446_v25 = vmax.f32 %v2414_v21, 0.0  ;;  %v2412_v6 = vadd.f32 %v6304_v15, %v2373_v20  ;;  %2646 = vrot.lane.b32.xlu1 %v6401_v26, %s4892_s8 }
 0x335   : > { %2479 = vst.msk [vmem:[#allocation3 + $0x99] sm:$0xff] %vm280_vm0, %v2446_v25  ;;  %v2444_v18 = vmax.f32 %v2412_v6, 0.0 }
 0x337   : > { %2477 = vst.msk [vmem:[#allocation3 + $0x81] sm:$0xff] %vm280_vm0, %v2444_v18 }
 0x338   : > { %v6409_v58 = vld [vmem:[#allocation3 + $0x90] sm:$0xff] }
 0x339   : > { %2544 = vst.msk [vmem:[#allocation4 + $0x60] sm:$0xff] %vm280_vm0, %v6409_v58  ;;  %v2576_v11 = vld [vmem:[#allocation3 + $0x91] sm:$0xff] }
 0x33a   : > { %v4802_v13 = vpop.f32.mrf.mxu0  ;;  %v6413_v37 = vld [vmem:[#allocation3 + $0x79] sm:$0xff] }
 0x33b   : > { %v6415_v59 = vld [vmem:[#allocation3 + $0x78] sm:$0xff]  ;;  %v2378_v31 = vmul.f32 %v4802_v13, %v6298_v32  ;;  %2648 = vrot.lane.b32.xlu0 %v6413_v37, %s4892_s8 }
 0x33c   : > { %2542 = vst.msk [vmem:[#allocation4 + $0x50] sm:$0xff] %vm280_vm0, %v6415_v59  ;;  %v2278_v17 = vpop.f32.mrf.mxu0  ;;  %v6424_v61 = vld [vmem:[#allocation3 + $0x98] sm:$0xff] }
 0x33d   : > { %v2417_v62 = vadd.f32 %v6304_v15, %v2378_v31  ;;  %v2376_v60 = vmul.f32 %v6298_v32, %v2278_v17  ;;  %2545 = vst.msk [vmem:[#allocation4 + $0x68] sm:$0xff] %vm280_vm0, %v6424_v61  ;;  %v2577_v7 = vld [vmem:[#allocation3 + $0x99] sm:$0xff] }
 0x33e   : > { %v4803_v30 = vpop.f32.mrf.mxu0  ;;  %v6426_v52 = vld [vmem:[#allocation3 + $0x81] sm:$0xff] }
 0x33f   : > { %v2449_v24 = vmax.f32 %v2417_v62, 0.0  ;;  %v2415_v42 = vadd.f32 %v6304_v15, %v2376_v60  ;;  %v2379_v35 = vmul.f32 %v4803_v30, %v6298_v32  ;;  %2652 = vrot.lane.b32.xlu0 %v2576_v11, %s4892_s8  ;;  %2650 = vrot.lane.b32.xlu1 %v6426_v52, %s4892_s8  ;;  %v6435_v1 = vld [vmem:[#allocation3 + $0x80] sm:$0xff] }
 0x340   : > { %v2281_v44 = vpop.f32.mrf.mxu0  ;;  %2543 = vst.msk [vmem:[#allocation4 + $0x58] sm:$0xff] %vm280_vm0, %v6435_v1 }
 0x341   : > { %2482 = vst.msk [vmem:[#allocation3 + $0xc1] sm:$0xff] %vm280_vm0, %v2449_v24  ;;  %v2447_v16 = vmax.f32 %v2415_v42, 0.0  ;;  %v2418_v8 = vadd.f32 %v6304_v15, %v2379_v35  ;;  %v2377_v19 = vmul.f32 %v6298_v32, %v2281_v44 }
 0x343   : > { %2480 = vst.msk [vmem:[#allocation3 + $0xa9] sm:$0xff] %vm280_vm0, %v2447_v16  ;;  %v2450_v14 = vmax.f32 %v2418_v8, 0.0  ;;  %v2416_v4 = vadd.f32 %v6304_v15, %v2377_v19  ;;  %2654 = vrot.lane.b32.xlu1 %v2577_v7, %s4892_s8 }
 0x345   : > { %2483 = vst.msk [vmem:[#allocation3 + $0xc9] sm:$0xff] %vm280_vm0, %v2450_v14  ;;  %v2448_v5 = vmax.f32 %v2416_v4, 0.0 }
 0x347   : > { %2481 = vst.msk [vmem:[#allocation3 + $0xb1] sm:$0xff] %vm280_vm0, %v2448_v5 }
 0x348   : > { %v6447_v36 = vld [vmem:[#allocation3 + $0xc0] sm:$0xff] }
 0x349   : > { %2548 = vst.msk [vmem:[#allocation4 + $0x80] sm:$0xff] %vm280_vm0, %v6447_v36  ;;  %v2580_v47 = vld [vmem:[#allocation3 + $0xc1] sm:$0xff] }
 0x34a   : > { %v4806_v0 = vpop.f32.mrf.mxu0  ;;  %v2578_v50 = vld [vmem:[#allocation3 + $0xa9] sm:$0xff] }
 0x34b   : > { %v6451_v10 = vld [vmem:[#allocation3 + $0xa8] sm:$0xff]  ;;  %v2382_v51 = vmul.f32 %v4806_v0, %v6298_v32  ;;  %2656 = vrot.lane.b32.xlu0 %v2578_v50, %s4892_s8 }
 0x34c   : > { %2546 = vst.msk [vmem:[#allocation4 + $0x70] sm:$0xff] %vm280_vm0, %v6451_v10  ;;  %v2294_v9 = vpop.f32.mrf.mxu0  ;;  %v6459_v43 = vld [vmem:[#allocation3 + $0xc8] sm:$0xff] }
 0x34d   : > { %v2421_v63 = vadd.f32 %v6304_v15, %v2382_v51  ;;  %v2380_v49 = vmul.f32 %v6298_v32, %v2294_v9  ;;  %2549 = vst.msk [vmem:[#allocation4 + $0x88] sm:$0xff] %vm280_vm0, %v6459_v43  ;;  %v2581_v6 = vld [vmem:[#allocation3 + $0xc9] sm:$0xff] }
 0x34e   : > { %v4807_v46 = vpop.f32.mrf.mxu0  ;;  %v2579_v48 = vld [vmem:[#allocation3 + $0xb1] sm:$0xff] }
 0x34f   : > { %v2453_v34 = vmax.f32 %v2421_v63, 0.0  ;;  %v2419_v39 = vadd.f32 %v6304_v15, %v2380_v49  ;;  %v2383_v28 = vmul.f32 %v4807_v46, %v6298_v32  ;;  %2660 = vrot.lane.b32.xlu0 %v2580_v47, %s4892_s8  ;;  %2658 = vrot.lane.b32.xlu1 %v2579_v48, %s4892_s8  ;;  %v6467_v27 = vld [vmem:[#allocation3 + $0xb0] sm:$0xff] }
 0x350   : > { %v2297_v33 = vpop.f32.mrf.mxu0  ;;  %2547 = vst.msk [vmem:[#allocation4 + $0x78] sm:$0xff] %vm280_vm0, %v6467_v27 }
 0x351   : > { %2486 = vst.msk [vmem:[#allocation3 + $0xf1] sm:$0xff] %vm280_vm0, %v2453_v34  ;;  %v2451_v21 = vmax.f32 %v2419_v39, 0.0  ;;  %v2422_v20 = vadd.f32 %v6304_v15, %v2383_v28  ;;  %v2381_v25 = vmul.f32 %v6298_v32, %v2297_v33 }
 0x353   : > { %2484 = vst.msk [vmem:[#allocation3 + $0xd9] sm:$0xff] %vm280_vm0, %v2451_v21  ;;  %v2454_v18 = vmax.f32 %v2422_v20, 0.0  ;;  %v2420_v13 = vadd.f32 %v6304_v15, %v2381_v25  ;;  %2662 = vrot.lane.b32.xlu1 %v2581_v6, %s4892_s8 }
 0x355   : > { %2487 = vst.msk [vmem:[#allocation3 + $0xf9] sm:$0xff] %vm280_vm0, %v2454_v18  ;;  %v2452_v31 = vmax.f32 %v2420_v13, 0.0 }
 0x357   : > { %2485 = vst.msk [vmem:[#allocation3 + $0xe1] sm:$0xff] %vm280_vm0, %v2452_v31 }
 0x358   : > { %v6479_v17 = vld [vmem:[#allocation3 + $0xf0] sm:$0xff] }
 0x359   : > { %2552 = vst.msk [vmem:[#allocation4 + $0xa0] sm:$0xff] %vm280_vm0, %v6479_v17  ;;  %v2584_v8 = vld [vmem:[#allocation3 + $0xf1] sm:$0xff] }
 0x35a   : > { %v4810_v62 = vpop.f32.mrf.mxu0  ;;  %v2582_v60 = vld [vmem:[#allocation3 + $0xd9] sm:$0xff] }
 0x35b   : > { %v6483_v30 = vld [vmem:[#allocation3 + $0xd8] sm:$0xff]  ;;  %v2386_v11 = vmul.f32 %v4810_v62, %v6298_v32  ;;  %2664 = vrot.lane.b32.xlu0 %v2582_v60, %s4892_s8 }
 0x35c   : > { %2550 = vst.msk [vmem:[#allocation4 + $0x90] sm:$0xff] %vm280_vm0, %v6483_v30  ;;  %v2310_v24 = vpop.f32.mrf.mxu0  ;;  %v6491_v44 = vld [vmem:[#allocation3 + $0xf8] sm:$0xff] }
 0x35d   : > { %v2425_v42 = vadd.f32 %v6304_v15, %v2386_v11  ;;  %v2384_v35 = vmul.f32 %v6298_v32, %v2310_v24  ;;  %2553 = vst.msk [vmem:[#allocation4 + $0xa8] sm:$0xff] %vm280_vm0, %v6491_v44  ;;  %v2585_v63 = vld [vmem:[#allocation3 + $0xf9] sm:$0xff] }
 0x35e   : > { %v4811_v16 = vpop.f32.mrf.mxu0  ;;  %v2583_v19 = vld [vmem:[#allocation3 + $0xe1] sm:$0xff] }
 0x35f   : > { %v2457_v7 = vmax.f32 %v2425_v42, 0.0  ;;  %v2423_v14 = vadd.f32 %v6304_v15, %v2384_v35  ;;  %v2387_v4 = vmul.f32 %v4811_v16, %v6298_v32  ;;  %2668 = vrot.lane.b32.xlu0 %v2584_v8, %s4892_s8  ;;  %2666 = vrot.lane.b32.xlu1 %v2583_v19, %s4892_s8  ;;  %v6499_v5 = vld [vmem:[#allocation3 + $0xe0] sm:$0xff] }
 0x360   : > { %v2313_v0 = vpop.f32.mrf.mxu0  ;;  %2551 = vst.msk [vmem:[#allocation4 + $0x98] sm:$0xff] %vm280_vm0, %v6499_v5 }
 0x361   : > { %2490 = vst.msk [vmem:[#allocation3 + $0x121] sm:$0xff] %vm280_vm0, %v2457_v7  ;;  %v2455_v50 = vmax.f32 %v2423_v14, 0.0  ;;  %v2426_v51 = vadd.f32 %v6304_v15, %v2387_v4  ;;  %v2385_v9 = vmul.f32 %v6298_v32, %v2313_v0 }
 0x363   : > { %2488 = vst.msk [vmem:[#allocation3 + $0x109] sm:$0xff] %vm280_vm0, %v2455_v50  ;;  %v2458_v49 = vmax.f32 %v2426_v51, 0.0  ;;  %v2424_v46 = vadd.f32 %v6304_v15, %v2385_v9  ;;  %2670 = vrot.lane.b32.xlu1 %v2585_v63, %s4892_s8 }
 0x365   : > { %2491 = vst.msk [vmem:[#allocation3 + $0x129] sm:$0xff] %vm280_vm0, %v2458_v49  ;;  %v2456_v47 = vmax.f32 %v2424_v46, 0.0 }
 0x367   : > { %2489 = vst.msk [vmem:[#allocation3 + $0x111] sm:$0xff] %vm280_vm0, %v2456_v47 }
 0x368   : > { %v6511_v48 = vld [vmem:[#allocation3 + $0x120] sm:$0xff] }
 0x369   : > { %2556 = vst.msk [vmem:[#allocation4 + $0xc0] sm:$0xff] %vm280_vm0, %v6511_v48  ;;  %v2588_v13 = vld [vmem:[#allocation3 + $0x121] sm:$0xff] }
 0x36a   : > { %v4814_v34 = vpop.f32.mrf.mxu0  ;;  %v2586_v39 = vld [vmem:[#allocation3 + $0x109] sm:$0xff] }
 0x36b   : > { %v6515_v28 = vld [vmem:[#allocation3 + $0x108] sm:$0xff]  ;;  %v2390_v33 = vmul.f32 %v4814_v34, %v6298_v32  ;;  %2672 = vrot.lane.b32.xlu0 %v2586_v39, %s4892_s8 }
 0x36c   : > { %2554 = vst.msk [vmem:[#allocation4 + $0xb0] sm:$0xff] %vm280_vm0, %v6515_v28  ;;  %v2326_v21 = vpop.f32.mrf.mxu0  ;;  %v6523_v6 = vld [vmem:[#allocation3 + $0x128] sm:$0xff] }
 0x36d   : > { %v2429_v20 = vadd.f32 %v6304_v15, %v2390_v33  ;;  %v2388_v25 = vmul.f32 %v6298_v32, %v2326_v21  ;;  %2557 = vst.msk [vmem:[#allocation4 + $0xc8] sm:$0xff] %vm280_vm0, %v6523_v6  ;;  %v2589_v19 = vld [vmem:[#allocation3 + $0x129] sm:$0xff] }
 0x36e   : > { %v4815_v18 = vpop.f32.mrf.mxu0  ;;  %v2587_v31 = vld [vmem:[#allocation3 + $0x111] sm:$0xff] }
 0x36f   : > { %v2461_v62 = vmax.f32 %v2429_v20, 0.0  ;;  %v2427_v60 = vadd.f32 %v6304_v15, %v2388_v25  ;;  %v2391_v11 = vmul.f32 %v4815_v18, %v6298_v32  ;;  %2676 = vrot.lane.b32.xlu0 %v2588_v13, %s4892_s8  ;;  %2674 = vrot.lane.b32.xlu1 %v2587_v31, %s4892_s8  ;;  %v6531_v24 = vld [vmem:[#allocation3 + $0x110] sm:$0xff] }
 0x370   : > { %v2329_v42 = vpop.f32.mrf.mxu0  ;;  %2555 = vst.msk [vmem:[#allocation4 + $0xb8] sm:$0xff] %vm280_vm0, %v6531_v24 }
 0x371   : > { %2494 = vst.msk [vmem:[#allocation3 + $0x151] sm:$0xff] %vm280_vm0, %v2461_v62  ;;  %v2459_v35 = vmax.f32 %v2427_v60, 0.0  ;;  %v2430_v16 = vadd.f32 %v6304_v15, %v2391_v11  ;;  %v2389_v8 = vmul.f32 %v6298_v32, %v2329_v42 }
 0x373   : > { %2492 = vst.msk [vmem:[#allocation3 + $0x139] sm:$0xff] %vm280_vm0, %v2459_v35  ;;  %v2462_v7 = vmax.f32 %v2430_v16, 0.0  ;;  %v2428_v14 = vadd.f32 %v6304_v15, %v2389_v8  ;;  %2678 = vrot.lane.b32.xlu1 %v2589_v19, %s4892_s8 }
 0x375   : > { %2495 = vst.msk [vmem:[#allocation3 + $0x159] sm:$0xff] %vm280_vm0, %v2462_v7  ;;  %v2460_v4 = vmax.f32 %v2428_v14, 0.0 }
 0x377   : > { %2493 = vst.msk [vmem:[#allocation3 + $0x141] sm:$0xff] %vm280_vm0, %v2460_v4  ;;  %v2757_v4 = vld [vmem:[#allocation3 + $0xa] sm:$0xff] }
 0x378   : > { %v2528_v0 = vld [vmem:[#allocation3 + $0x150] sm:$0xff] }
 0x379   : > { %2560 = vst.msk [vmem:[#allocation4 + $0xe0] sm:$0xff] %vm280_vm0, %v2528_v0  ;;  %v2592_v33 = vld [vmem:[#allocation3 + $0x151] sm:$0xff]  ;;  %v6574_v0 = vld [vmem:[#allocation3 + $0x1a] sm:$0xff] }
 0x37a   : > { %v4818_v50 = vpop.f32.mrf.mxu0  ;;  %v2590_v51 = vld [vmem:[#allocation3 + $0x139] sm:$0xff] }
 0x37b   : > { %v6544_v9 = vld [vmem:[#allocation3 + $0x138] sm:$0xff]  ;;  %v2394_v63 = vmul.f32 %v4818_v50, %v6298_v32  ;;  %2680 = vrot.lane.b32.xlu0 %v2590_v51, %s4892_s8 }
 0x37c   : > { %2558 = vst.msk [vmem:[#allocation4 + $0xd0] sm:$0xff] %vm280_vm0, %v6544_v9  ;;  %v2342_v49 = vpop.f32.mrf.mxu0  ;;  %v2529_v34 = vld [vmem:[#allocation3 + $0x158] sm:$0xff] }
 0x37d   : > { %v2433_v46 = vadd.f32 %v6304_v15, %v2394_v63  ;;  %v2392_v47 = vmul.f32 %v6298_v32, %v2342_v49  ;;  %2561 = vst.msk [vmem:[#allocation4 + $0xe8] sm:$0xff] %vm280_vm0, %v2529_v34  ;;  %v2593_v42 = vld [vmem:[#allocation3 + $0x159] sm:$0xff]  ;;  %v6582_v63 = vld [vmem:[#allocation3 + $0x22] sm:$0xff] }
 0x37e   : > { %v4819_v39 = vpop.f32.mrf.mxu0  ;;  %v2591_v21 = vld [vmem:[#allocation3 + $0x141] sm:$0xff]  ;;  %v6580_v51 = vld [vmem:[#allocation3 + $0x32] sm:$0xff] }
 0x37f   : > { %v2465_v20 = vmax.f32 %v2433_v46, 0.0  ;;  %v2431_v25 = vadd.f32 %v6304_v15, %v2392_v47  ;;  %v2395_v18 = vmul.f32 %v4819_v39, %v6298_v32  ;;  %2684 = vrot.lane.b32.xlu0 %v2592_v33, %s4892_s8  ;;  %2682 = vrot.lane.b32.xlu1 %v2591_v21, %s4892_s8  ;;  %v6557_v13 = vld [vmem:[#allocation3 + $0x140] sm:$0xff]  ;;  %v6590_v47 = vld [vmem:[#allocation3 + $0x4a] sm:$0xff] }
 0x380   : > { %v2345_v31 = vpop.f32.mrf.mxu0  ;;  %2559 = vst.msk [vmem:[#allocation4 + $0xd8] sm:$0xff] %vm280_vm0, %v6557_v13  ;;  %v6592_v34 = vld [vmem:[#allocation3 + $0x3a] sm:$0xff]  ;;  %v6600_v21 = vld [vmem:[#allocation3 + $0x62] sm:$0xff] }
 0x381   : > { %2498 = vst.msk [vmem:[#allocation3 + $0x181] sm:$0xff] %vm280_vm0, %v2465_v20  ;;  %v2463_v62 = vmax.f32 %v2431_v25, 0.0  ;;  %v2434_v60 = vadd.f32 %v6304_v15, %v2395_v18  ;;  %v2393_v11 = vmul.f32 %v6298_v32, %v2345_v31  ;;  %v2756_v32 = vld [vmem:[#allocation3 + $0x2] sm:$0xff]  ;;  %v6602_v20 = vld [vmem:[#allocation3 + $0x52] sm:$0xff]  ;;  %v6610_v31 = vld [vmem:[#allocation3 + $0x7a] sm:$0xff] }
 0x383   : > { %2496 = vst.msk [vmem:[#allocation3 + $0x169] sm:$0xff] %vm280_vm0, %v2463_v62  ;;  %v2466_v35 = vmax.f32 %v2434_v60, 0.0  ;;  %v2432_v16 = vadd.f32 %v6304_v15, %v2393_v11  ;;  %2686 = vrot.lane.b32.xlu1 %v2593_v42, %s4892_s8  ;;  %v6612_v62 = vld [vmem:[#allocation3 + $0x6a] sm:$0xff]  ;;  %v6619_v11 = vld [vmem:[#allocation3 + $0x92] sm:$0xff]  ;;  %v6621_v42 = vld [vmem:[#allocation3 + $0x82] sm:$0xff] }
 0x385   : > { %2499 = vst.msk [vmem:[#allocation3 + $0x189] sm:$0xff] %vm280_vm0, %v2466_v35  ;;  %v2464_v8 = vmax.f32 %v2432_v16, 0.0  ;;  %v6627_v35 = vld [vmem:[#allocation3 + $0xaa] sm:$0xff]  ;;  %v6629_v16 = vld [vmem:[#allocation3 + $0x9a] sm:$0xff] }
 0x387   : > { %2497 = vst.msk [vmem:[#allocation3 + $0x171] sm:$0xff] %vm280_vm0, %v2464_v8 }
 0x38a   : > { %v2594_v19 = vld [vmem:[#allocation3 + $0x169] sm:$0xff] }
 0x38b   : > { %v2530_v7 = vld [vmem:[#allocation3 + $0x168] sm:$0xff]  ;;  %2688 = vrot.lane.b32.xlu0 %v2594_v19, %s4892_s8 }
 0x38c   : > { %2562 = vst.msk [vmem:[#allocation4 + $0xf0] sm:$0xff] %vm280_vm0, %v2530_v7  ;;  %v6636_v19 = vld [vmem:[#allocation3 + $0xc2] sm:$0xff]  ;;  %v6638_v7 = vld [vmem:[#allocation3 + $0xb2] sm:$0xff] }
 0x38e   : > { %v2595_v14 = vld [vmem:[#allocation3 + $0x171] sm:$0xff] }
 0x38f   : > { %2820 = vrot.lane.b32.xlu0 %v2756_v32, %s4893_s9  ;;  %2690 = vrot.lane.b32.xlu1 %v2595_v14, %s4892_s8  ;;  %v2531_v15 = vld [vmem:[#allocation3 + $0x170] sm:$0xff] }
 0x390   : > { %2563 = vst.msk [vmem:[#allocation4 + $0xf8] sm:$0xff] %vm280_vm0, %v2531_v15  ;;  %v6646_v15 = vld [vmem:[#allocation3 + $0xda] sm:$0xff] }
 0x393   : > { %2824 = vrot.lane.b32.xlu0 %v6574_v0, %s4893_s9  ;;  %2822 = vrot.lane.b32.xlu1 %v2757_v4, %s4893_s9  ;;  %v6648_v4 = vld [vmem:[#allocation3 + $0xca] sm:$0xff] }
 0x395   : > { %v2633_v50 = vpop.permute.xlu0 %2632 }
 0x396   : > { %2726 = vst.msk [vmem:[#allocation4 + $0x10] sm:$0xff] %vm690_vm3, %v2633_v50 }
 0x397   : > { %2828 = vrot.lane.b32.xlu0 %v6580_v51, %s4893_s9  ;;  %2826 = vrot.lane.b32.xlu1 %v6582_v63, %s4893_s9 }
 0x399   : > { %v2637_v49 = vpop.permute.xlu0 %2636  ;;  %v2635_v46 = vpop.permute.xlu1 %2634 }
 0x39a   : > { %2728 = vst.msk [vmem:[#allocation4 + $0x20] sm:$0xff] %vm690_vm3, %v2637_v49  ;;  %2727 = vst.msk [vmem:[#allocation4 + $0x18] sm:$0xff] %vm690_vm3, %v2635_v46  ;;  %v6655_v49 = vld [vmem:[#allocation3 + $0xf2] sm:$0xff]  ;;  %v6657_v46 = vld [vmem:[#allocation3 + $0xe2] sm:$0xff] }
 0x39b   : > { %2832 = vrot.lane.b32.xlu0 %v6590_v47, %s4893_s9  ;;  %2830 = vrot.lane.b32.xlu1 %v6592_v34, %s4893_s9 }
 0x39d   : > { %v2639_v39 = vpop.permute.xlu1 %2638  ;;  %v2641_v33 = vpop.permute.xlu0 %2640 }
 0x39e   : > { %2729 = vst.msk [vmem:[#allocation4 + $0x28] sm:$0xff] %vm690_vm3, %v2639_v39  ;;  %2730 = vst.msk [vmem:[#allocation4 + $0x30] sm:$0xff] %vm690_vm3, %v2641_v33  ;;  %v2778_v39 = vld [vmem:[#allocation3 + $0x10a] sm:$0xff]  ;;  %v2777_v33 = vld [vmem:[#allocation3 + $0xfa] sm:$0xff] }
 0x39f   : > { %2836 = vrot.lane.b32.xlu0 %v6600_v21, %s4893_s9  ;;  %2834 = vrot.lane.b32.xlu1 %v6602_v20, %s4893_s9 }
 0x3a1   : > { %v2645_v25 = vpop.permute.xlu0 %2644  ;;  %v2643_v18 = vpop.permute.xlu1 %2642 }
 0x3a2   : > { %2732 = vst.msk [vmem:[#allocation4 + $0x40] sm:$0xff] %vm690_vm3, %v2645_v25  ;;  %2731 = vst.msk [vmem:[#allocation4 + $0x38] sm:$0xff] %vm690_vm3, %v2643_v18  ;;  %v2780_v18 = vld [vmem:[#allocation3 + $0x122] sm:$0xff] }
 0x3a3   : > { %2840 = vrot.lane.b32.xlu0 %v6610_v31, %s4893_s9  ;;  %2838 = vrot.lane.b32.xlu1 %v6612_v62, %s4893_s9 }
 0x3a5   : > { %v2647_v60 = vpop.permute.xlu1 %2646 }
 0x3a6   : > { %2733 = vst.msk [vmem:[#allocation4 + $0x48] sm:$0xff] %vm690_vm3, %v2647_v60  ;;  %v2779_v60 = vld [vmem:[#allocation3 + $0x112] sm:$0xff] }
 0x3a7   : > { %2844 = vrot.lane.b32.xlu0 %v6619_v11, %s4893_s9  ;;  %2842 = vrot.lane.b32.xlu1 %v6621_v42, %s4893_s9 }
 0x3ab   : > { %2848 = vrot.lane.b32.xlu0 %v6627_v35, %s4893_s9  ;;  %2846 = vrot.lane.b32.xlu1 %v6629_v16, %s4893_s9 }
 0x3ad   : > { %v2649_v8 = vpop.permute.xlu0 %2648 }
 0x3ae   : > { %2734 = vst.msk [vmem:[#allocation4 + $0x50] sm:$0xff] %vm690_vm3, %v2649_v8 }
 0x3af   : > { %2852 = vrot.lane.b32.xlu0 %v6636_v19, %s4893_s9  ;;  %2850 = vrot.lane.b32.xlu1 %v6638_v7, %s4893_s9 }
 0x3b1   : > { %v2653_v32 = vpop.permute.xlu0 %2652  ;;  %v2651_v14 = vpop.permute.xlu1 %2650 }
 0x3b2   : > { %2736 = vst.msk [vmem:[#allocation4 + $0x60] sm:$0xff] %vm690_vm3, %v2653_v32  ;;  %2735 = vst.msk [vmem:[#allocation4 + $0x58] sm:$0xff] %vm690_vm3, %v2651_v14  ;;  %v2782_v14 = vld [vmem:[#allocation3 + $0x13a] sm:$0xff] }
 0x3b3   : > { %2856 = vrot.lane.b32.xlu0 %v6646_v15, %s4893_s9  ;;  %2854 = vrot.lane.b32.xlu1 %v6648_v4, %s4893_s9 }
 0x3b5   : > { %v2655_v50 = vpop.permute.xlu1 %2654 }
 0x3b6   : > { %2737 = vst.msk [vmem:[#allocation4 + $0x68] sm:$0xff] %vm690_vm3, %v2655_v50  ;;  %v2781_v50 = vld [vmem:[#allocation3 + $0x12a] sm:$0xff] }
 0x3b7   : > { %2860 = vrot.lane.b32.xlu0 %v6655_v49, %s4893_s9  ;;  %2858 = vrot.lane.b32.xlu1 %v6657_v46, %s4893_s9 }
 0x3bb   : > { %2864 = vrot.lane.b32.xlu0 %v2778_v39, %s4893_s9  ;;  %2862 = vrot.lane.b32.xlu1 %v2777_v33, %s4893_s9  ;;  %v2784_v33 = vld [vmem:[#allocation3 + $0x152] sm:$0xff] }
 0x3bd   : > { %v2657_v25 = vpop.permute.xlu0 %2656 }
 0x3be   : > { %2738 = vst.msk [vmem:[#allocation4 + $0x70] sm:$0xff] %vm690_vm3, %v2657_v25  ;;  %v2783_v25 = vld [vmem:[#allocation3 + $0x142] sm:$0xff] }
 0x3bf   : > { %2868 = vrot.lane.b32.xlu0 %v2780_v18, %s4893_s9  ;;  %2866 = vrot.lane.b32.xlu1 %v2779_v60, %s4893_s9  ;;  %v2786_v18 = vld [vmem:[#allocation3 + $0x16a] sm:$0xff]  ;;  %v2785_v60 = vld [vmem:[#allocation3 + $0x15a] sm:$0xff] }
 0x3c1   : > { %v2661_v8 = vpop.permute.xlu0 %2660  ;;  %v2659_v32 = vpop.permute.xlu1 %2658 }
 0x3c2   : > { %2740 = vst.msk [vmem:[#allocation4 + $0x80] sm:$0xff] %vm690_vm3, %v2661_v8  ;;  %2739 = vst.msk [vmem:[#allocation4 + $0x78] sm:$0xff] %vm690_vm3, %v2659_v32  ;;  %v2787_v32 = vld [vmem:[#allocation3 + $0x172] sm:$0xff] }
 0x3c3   : > { %2872 = vrot.lane.b32.xlu0 %v2782_v14, %s4893_s9  ;;  %2870 = vrot.lane.b32.xlu1 %v2781_v50, %s4893_s9 }
 0x3c5   : > { %v2663_v39 = vpop.permute.xlu1 %2662 }
 0x3c6   : > { %2741 = vst.msk [vmem:[#allocation4 + $0x88] sm:$0xff] %vm690_vm3, %v2663_v39 }
 0x3c7   : > { %2876 = vrot.lane.b32.xlu0 %v2784_v33, %s4893_s9  ;;  %2874 = vrot.lane.b32.xlu1 %v2783_v25, %s4893_s9 }
 0x3cb   : > { %2880 = vrot.lane.b32.xlu0 %v2786_v18, %s4893_s9  ;;  %2878 = vrot.lane.b32.xlu1 %v2785_v60, %s4893_s9 }
 0x3cd   : > { %v2665_v8 = vpop.permute.xlu0 %2664 }
 0x3ce   : > { %2742 = vst.msk [vmem:[#allocation4 + $0x90] sm:$0xff] %vm690_vm3, %v2665_v8 }
 0x3cf   : > { %3012 = vrot.lane.b32.xlu0 %v6335_v22, %s4894_s10  ;;  %2882 = vrot.lane.b32.xlu1 %v2787_v32, %s4893_s9 }
 0x3d1   : > { %v2669_v14 = vpop.permute.xlu0 %2668  ;;  %v2667_v50 = vpop.permute.xlu1 %2666 }
 0x3d2   : > { %2744 = vst.msk [vmem:[#allocation4 + $0xa0] sm:$0xff] %vm690_vm3, %v2669_v14  ;;  %2743 = vst.msk [vmem:[#allocation4 + $0x98] sm:$0xff] %vm690_vm3, %v2667_v50 }
 0x3d3   : > { %3016 = vrot.lane.b32.xlu0 %v6326_v29, %s4894_s10  ;;  %3014 = vrot.lane.b32.xlu1 %v6357_v55, %s4894_s10 }
 0x3d5   : > { %v2671_v39 = vpop.permute.xlu1 %2670 }
 0x3d6   : > { %2745 = vst.msk [vmem:[#allocation4 + $0xa8] sm:$0xff] %vm690_vm3, %v2671_v39 }
 0x3d7   : > { %3020 = vrot.lane.b32.xlu0 %v6369_v57, %s4894_s10  ;;  %3018 = vrot.lane.b32.xlu1 %v6344_v53, %s4894_s10 }
 0x3db   : > { %3024 = vrot.lane.b32.xlu0 %v6361_v2, %s4894_s10  ;;  %3022 = vrot.lane.b32.xlu1 %v6394_v38, %s4894_s10 }
 0x3dd   : > { %v2673_v22 = vpop.permute.xlu0 %2672 }
 0x3de   : > { %2746 = vst.msk [vmem:[#allocation4 + $0xb0] sm:$0xff] %vm690_vm3, %v2673_v22 }
 0x3df   : > { %3028 = vrot.lane.b32.xlu0 %v6415_v59, %s4894_s10  ;;  %3026 = vrot.lane.b32.xlu1 %v6380_v41, %s4894_s10 }
 0x3e1   : > { %v2677_v55 = vpop.permute.xlu0 %2676  ;;  %v2675_v33 = vpop.permute.xlu1 %2674 }
 0x3e2   : > { %2748 = vst.msk [vmem:[#allocation4 + $0xc0] sm:$0xff] %vm690_vm3, %v2677_v55  ;;  %2747 = vst.msk [vmem:[#allocation4 + $0xb8] sm:$0xff] %vm690_vm3, %v2675_v33 }
 0x3e3   : > { %3032 = vrot.lane.b32.xlu0 %v6409_v58, %s4894_s10  ;;  %3030 = vrot.lane.b32.xlu1 %v6435_v1, %s4894_s10 }
 0x3e5   : > { %v2679_v25 = vpop.permute.xlu1 %2678 }
 0x3e6   : > { %2749 = vst.msk [vmem:[#allocation4 + $0xc8] sm:$0xff] %vm690_vm3, %v2679_v25 }
 0x3e7   : > { %3036 = vrot.lane.b32.xlu0 %v6451_v10, %s4894_s10  ;;  %3034 = vrot.lane.b32.xlu1 %v6424_v61, %s4894_s10 }
 0x3eb   : > { %3040 = vrot.lane.b32.xlu0 %v6447_v36, %s4894_s10  ;;  %3038 = vrot.lane.b32.xlu1 %v6467_v27, %s4894_s10 }
 0x3ed   : > { %v2681_v18 = vpop.permute.xlu0 %2680 }
 0x3ee   : > { %2750 = vst.msk [vmem:[#allocation4 + $0xd0] sm:$0xff] %vm690_vm3, %v2681_v18 }
 0x3ef   : > { %3044 = vrot.lane.b32.xlu0 %v6483_v30, %s4894_s10  ;;  %3042 = vrot.lane.b32.xlu1 %v6459_v43, %s4894_s10 }
 0x3f1   : > { %v2685_v60 = vpop.permute.xlu0 %2684  ;;  %v2683_v8 = vpop.permute.xlu1 %2682 }
 0x3f2   : > { %2752 = vst.msk [vmem:[#allocation4 + $0xe0] sm:$0xff] %vm690_vm3, %v2685_v60  ;;  %2751 = vst.msk [vmem:[#allocation4 + $0xd8] sm:$0xff] %vm690_vm3, %v2683_v8 }
 0x3f3   : > { %3048 = vrot.lane.b32.xlu0 %v6479_v17, %s4894_s10  ;;  %3046 = vrot.lane.b32.xlu1 %v6499_v5, %s4894_s10 }
 0x3f5   : > { %v2687_v32 = vpop.permute.xlu1 %2686 }
 0x3f6   : > { %2753 = vst.msk [vmem:[#allocation4 + $0xe8] sm:$0xff] %vm690_vm3, %v2687_v32 }
 0x3f7   : > { %3052 = vrot.lane.b32.xlu0 %v6515_v28, %s4894_s10  ;;  %3050 = vrot.lane.b32.xlu1 %v6491_v44, %s4894_s10 }
 0x3fb   : > { %3056 = vrot.lane.b32.xlu0 %v6511_v48, %s4894_s10  ;;  %3054 = vrot.lane.b32.xlu1 %v6531_v24, %s4894_s10 }
 0x3fd   : > { %v2689_v14 = vpop.permute.xlu0 %2688 }
 0x3fe   : > { %2754 = vst.msk [vmem:[#allocation4 + $0xf0] sm:$0xff] %vm690_vm3, %v2689_v14 }
 0x3ff   : > { %3204 = vrot.lane.b32.xlu0 %v6333_v23, %s4895_s11  ;;  %3058 = vrot.lane.b32.xlu1 %v6523_v6, %s4894_s10 }
 0x401   : > { %v2821_v50 = vpop.permute.xlu0 %2820  ;;  %v2691_v39 = vpop.permute.xlu1 %2690 }
 0x402   : > { %2916 = vst.msk [vmem:[#allocation4] sm:$0xff] %vm883_vm4, %v2821_v50 }
 0x403   : > { %2755 = vst.msk [vmem:[#allocation4 + $0xf8] sm:$0xff] %vm690_vm3, %v2691_v39  ;;  %3208 = vrot.lane.b32.xlu0 %v6346_v54, %s4895_s11  ;;  %3206 = vrot.lane.b32.xlu1 %v6348_v3, %s4895_s11 }
 0x405   : > { %v2825_v48 = vpop.permute.xlu0 %2824  ;;  %v2823_v22 = vpop.permute.xlu1 %2822 }
 0x406   : > { %2918 = vst.msk [vmem:[#allocation4 + $0x10] sm:$0xff] %vm883_vm4, %v2825_v48  ;;  %2917 = vst.msk [vmem:[#allocation4 + $0x8] sm:$0xff] %vm883_vm4, %v2823_v22 }
 0x407   : > { %3396 = vrot.lane.b32.xlu0 %v6574_v0, %s4896_s12  ;;  %3210 = vrot.lane.b32.xlu1 %v6365_v56, %s4895_s11 }
 0x409   : > { %v2829_v23 = vpop.permute.xlu0 %2828  ;;  %v2827_v6 = vpop.permute.xlu1 %2826 }
 0x40a   : > { %2920 = vst.msk [vmem:[#allocation4 + $0x20] sm:$0xff] %vm883_vm4, %v2829_v23  ;;  %2919 = vst.msk [vmem:[#allocation4 + $0x18] sm:$0xff] %vm883_vm4, %v2827_v6 }
 0x40b   : > { %3400 = vrot.lane.b32.xlu0 %v6580_v51, %s4896_s12  ;;  %3398 = vrot.lane.b32.xlu1 %v6582_v63, %s4896_s12 }
 0x40d   : > { %v2833_v3 = vpop.permute.xlu0 %2832  ;;  %v2831_v55 = vpop.permute.xlu1 %2830 }
 0x40e   : > { %2922 = vst.msk [vmem:[#allocation4 + $0x30] sm:$0xff] %vm883_vm4, %v2833_v3  ;;  %2921 = vst.msk [vmem:[#allocation4 + $0x28] sm:$0xff] %vm883_vm4, %v2831_v55 }
 0x40f   : > { %3589 = vrot.lane.b32.xlu0 %v6326_v29, %s4897_s13  ;;  %3402 = vrot.lane.b32.xlu1 %v6592_v34, %s4896_s12  ;;  %v4880_v29 = vld [vmem:[%s7443_s2 + $0x10] ss:$0 sps:$4 sm:$0x33]  }
 0x410   : > { %4859 = vmatprep.subr.msk.bf16.mxu1 %vm2192_vm8, %v4880_v29 }
 0x411   : > { %v2837_v0 = vpop.permute.xlu0 %2836  ;;  %v2835_v33 = vpop.permute.xlu1 %2834 }
 0x412   : > { %2924 = vst.msk [vmem:[#allocation4 + $0x40] sm:$0xff] %vm883_vm4, %v2837_v0  ;;  %2923 = vst.msk [vmem:[#allocation4 + $0x38] sm:$0xff] %vm883_vm4, %v2835_v33 }
 0x413   : > { %3593 = vrot.lane.b32.xlu0 %v6369_v57, %s4897_s13  ;;  %3591 = vrot.lane.b32.xlu1 %v6344_v53, %s4897_s13  ;;  %v4218_v53 = vsel %vm2192_vm8, %v4880_v29, 0 }
 0x414   : > { %4821 = vmatpush3.bf16.msra.mxu1 %v4218_v53 }
 0x415   : > { %v2841_v63 = vpop.permute.xlu0 %2840  ;;  %v2839_v25 = vpop.permute.xlu1 %2838 }
 0x416   : > { %2926 = vst.msk [vmem:[#allocation4 + $0x50] sm:$0xff] %vm883_vm4, %v2841_v63  ;;  %2925 = vst.msk [vmem:[#allocation4 + $0x48] sm:$0xff] %vm883_vm4, %v2839_v25  ;;  %v3150_v25 = vld [vmem:[#allocation3 + $0x91] sm:$0xff] }
 0x417   : > { %3781 = vrot.lane.b32.xlu0 %v6346_v54, %s4898_s14  ;;  %3595 = vrot.lane.b32.xlu1 %v6394_v38, %s4897_s13  ;;  %v4881_v54 = vld [vmem:[%s7443_s2 + $0x8] sm:$0xff]  }
 0x418   : > { %4822 = vmatprep.subr.bf16.mxu1 %v4881_v54 }
 0x419   : > { %v2845_v57 = vpop.permute.xlu0 %2844  ;;  %v2843_v18 = vpop.permute.xlu1 %2842  ;;  %4823 = vmatpush3.bf16.msra.mxu1 %v4881_v54 }
 0x41a   : > { %2928 = vst.msk [vmem:[#allocation4 + $0x60] sm:$0xff] %vm883_vm4, %v2845_v57  ;;  %2927 = vst.msk [vmem:[#allocation4 + $0x58] sm:$0xff] %vm883_vm4, %v2843_v18  ;;  %v3151_v18 = vld [vmem:[#allocation3 + $0x99] sm:$0xff] }
 0x41b   : > { %3785 = vrot.lane.b32.xlu0 %v6367_v12, %s4898_s14  ;;  %3783 = vrot.lane.b32.xlu1 %v6365_v56, %s4898_s14  ;;  %v4882_v56 = vld [vmem:[%s7443_s2] sm:$0xff]  }
 0x41c   : > { %4824 = vmatprep.subr.bf16.mxu1 %v4882_v56 }
 0x41d   : > { %v2849_v38 = vpop.permute.xlu0 %2848  ;;  %v2847_v60 = vpop.permute.xlu1 %2846  ;;  %4825 = vmatpush3.bf16.msra.mxu1 %v4882_v56 }
 0x41e   : > { %2930 = vst.msk [vmem:[#allocation4 + $0x70] sm:$0xff] %vm883_vm4, %v2849_v38  ;;  %2929 = vst.msk [vmem:[#allocation4 + $0x68] sm:$0xff] %vm883_vm4, %v2847_v60 }
 0x41f   : > { %3973 = vrot.lane.b32.xlu0 %v6580_v51, %s4899_s21  ;;  %3787 = vrot.lane.b32.xlu1 %v6384_v45, %s4898_s14 }
 0x421   : > { %v2853_v8 = vpop.permute.xlu0 %2852  ;;  %v2851_v32 = vpop.permute.xlu1 %2850 }
 0x422   : > { %2932 = vst.msk [vmem:[#allocation4 + $0x80] sm:$0xff] %vm883_vm4, %v2853_v8  ;;  %2931 = vst.msk [vmem:[#allocation4 + $0x78] sm:$0xff] %vm883_vm4, %v2851_v32 }
 0x423   : > { %3977 = vrot.lane.b32.xlu0 %v6590_v47, %s4899_s21  ;;  %3975 = vrot.lane.b32.xlu1 %v6592_v34, %s4899_s21 }
 0x425   : > { %v2857_v51 = vpop.permute.xlu0 %2856  ;;  %v2855_v14 = vpop.permute.xlu1 %2854 }
 0x426   : > { %2934 = vst.msk [vmem:[#allocation4 + $0x90] sm:$0xff] %vm883_vm4, %v2857_v51  ;;  %2933 = vst.msk [vmem:[#allocation4 + $0x88] sm:$0xff] %vm883_vm4, %v2855_v14  ;;  %v3728_v14 = vld [vmem:[#allocation3 + $0xb1] sm:$0xff] }
 0x427   : > { %3212 = vrot.lane.b32.xlu0 %v6367_v12, %s4895_s11  ;;  %3979 = vrot.lane.b32.xlu1 %v6602_v20, %s4899_s21 }
 0x429   : > { %v2861_v50 = vpop.permute.xlu0 %2860  ;;  %v2859_v39 = vpop.permute.xlu1 %2858 }
 0x42a   : > { %2936 = vst.msk [vmem:[#allocation4 + $0xa0] sm:$0xff] %vm883_vm4, %v2861_v50  ;;  %2935 = vst.msk [vmem:[#allocation4 + $0x98] sm:$0xff] %vm883_vm4, %v2859_v39 }
 0x42b   : > { %3216 = vrot.lane.b32.xlu0 %v6382_v40, %s4895_s11  ;;  %3214 = vrot.lane.b32.xlu1 %v6384_v45, %s4895_s11 }
 0x42d   : > { %v2865_v34 = vpop.permute.xlu0 %2864  ;;  %v2863_v48 = vpop.permute.xlu1 %2862 }
 0x42e   : > { %2938 = vst.msk [vmem:[#allocation4 + $0xb0] sm:$0xff] %vm883_vm4, %v2865_v34  ;;  %2937 = vst.msk [vmem:[#allocation4 + $0xa8] sm:$0xff] %vm883_vm4, %v2863_v48 }
 0x42f   : > { %3404 = vrot.lane.b32.xlu0 %v6590_v47, %s4896_s12  ;;  %3218 = vrot.lane.b32.xlu1 %v6401_v26, %s4895_s11 }
 0x431   : > { %v2869_v12 = vpop.permute.xlu0 %2868  ;;  %v2867_v22 = vpop.permute.xlu1 %2866 }
 0x432   : > { %2940 = vst.msk [vmem:[#allocation4 + $0xc0] sm:$0xff] %vm883_vm4, %v2869_v12  ;;  %2939 = vst.msk [vmem:[#allocation4 + $0xb8] sm:$0xff] %vm883_vm4, %v2867_v22  ;;  %v3154_v12 = vld [vmem:[#allocation3 + $0xc1] sm:$0xff] }
 0x433   : > { %3408 = vrot.lane.b32.xlu0 %v6600_v21, %s4896_s12  ;;  %3406 = vrot.lane.b32.xlu1 %v6602_v20, %s4896_s12 }
 0x435   : > { %v2873_v40 = vpop.permute.xlu0 %2872  ;;  %v2871_v45 = vpop.permute.xlu1 %2870 }
 0x436   : > { %2942 = vst.msk [vmem:[#allocation4 + $0xd0] sm:$0xff] %vm883_vm4, %v2873_v40  ;;  %2941 = vst.msk [vmem:[#allocation4 + $0xc8] sm:$0xff] %vm883_vm4, %v2871_v45  ;;  %v3155_v40 = vld [vmem:[#allocation3 + $0xc9] sm:$0xff] }
 0x437   : > { %3597 = vrot.lane.b32.xlu0 %v6361_v2, %s4897_s13  ;;  %3410 = vrot.lane.b32.xlu1 %v6612_v62, %s4896_s12  ;;  %v3721_v2 = vld [vmem:[#allocation3 + $0x61] sm:$0xff] }
 0x439   : > { %v2877_v26 = vpop.permute.xlu0 %2876  ;;  %v2875_v47 = vpop.permute.xlu1 %2874 }
 0x43a   : > { %2944 = vst.msk [vmem:[#allocation4 + $0xe0] sm:$0xff] %vm883_vm4, %v2877_v26  ;;  %2943 = vst.msk [vmem:[#allocation4 + $0xd8] sm:$0xff] %vm883_vm4, %v2875_v47 }
 0x43b   : > { %3601 = vrot.lane.b32.xlu0 %v6415_v59, %s4897_s13  ;;  %3599 = vrot.lane.b32.xlu1 %v6380_v41, %s4897_s13  ;;  %v3722_v59 = vld [vmem:[#allocation3 + $0x69] sm:$0xff] }
 0x43d   : > { %v2881_v20 = vpop.permute.xlu0 %2880  ;;  %v2879_v23 = vpop.permute.xlu1 %2878 }
 0x43e   : > { %2946 = vst.msk [vmem:[#allocation4 + $0xf0] sm:$0xff] %vm883_vm4, %v2881_v20  ;;  %2945 = vst.msk [vmem:[#allocation4 + $0xe8] sm:$0xff] %vm883_vm4, %v2879_v23 }
 0x43f   : > { %3789 = vrot.lane.b32.xlu0 %v3721_v2, %s4898_s14  ;;  %3603 = vrot.lane.b32.xlu1 %v6435_v1, %s4897_s13 }
 0x441   : > { %v3013_v6 = vpop.permute.xlu0 %3012  ;;  %v2883_v3 = vpop.permute.xlu1 %2882 }
 0x442   : > { %3108 = vst.msk [vmem:[#allocation4] sm:$0xff] %vm1076_vm5, %v3013_v6 }
 0x443   : > { %2947 = vst.msk [vmem:[#allocation4 + $0xf8] sm:$0xff] %vm883_vm4, %v2883_v3  ;;  %3793 = vrot.lane.b32.xlu0 %v6413_v37, %s4898_s14  ;;  %3791 = vrot.lane.b32.xlu1 %v3722_v59, %s4898_s14  ;;  %v3732_v59 = vld [vmem:[#allocation3 + $0xe1] sm:$0xff] }
 0x445   : > { %v3017_v41 = vpop.permute.xlu0 %3016  ;;  %v3015_v55 = vpop.permute.xlu1 %3014 }
 0x446   : > { %3110 = vst.msk [vmem:[#allocation4 + $0x10] sm:$0xff] %vm1076_vm5, %v3017_v41  ;;  %3109 = vst.msk [vmem:[#allocation4 + $0x8] sm:$0xff] %vm1076_vm5, %v3015_v55 }
 0x447   : > { %3981 = vrot.lane.b32.xlu0 %v6600_v21, %s4899_s21  ;;  %3795 = vrot.lane.b32.xlu1 %v6426_v52, %s4898_s14  ;;  %v3148_v21 = vld [vmem:[#allocation3 + $0x79] sm:$0xff] }
 0x449   : > { %v3021_v1 = vpop.permute.xlu0 %3020  ;;  %v3019_v0 = vpop.permute.xlu1 %3018 }
 0x44a   : > { %3112 = vst.msk [vmem:[#allocation4 + $0x20] sm:$0xff] %vm1076_vm5, %v3021_v1  ;;  %3111 = vst.msk [vmem:[#allocation4 + $0x18] sm:$0xff] %vm1076_vm5, %v3019_v0 }
 0x44b   : > { %3985 = vrot.lane.b32.xlu0 %v6610_v31, %s4899_s21  ;;  %3983 = vrot.lane.b32.xlu1 %v6612_v62, %s4899_s21  ;;  %v3149_v62 = vld [vmem:[#allocation3 + $0x81] sm:$0xff] }
 0x44d   : > { %v3025_v37 = vpop.permute.xlu0 %3024  ;;  %v3023_v33 = vpop.permute.xlu1 %3022 }
 0x44e   : > { %3114 = vst.msk [vmem:[#allocation4 + $0x30] sm:$0xff] %vm1076_vm5, %v3025_v37  ;;  %3113 = vst.msk [vmem:[#allocation4 + $0x28] sm:$0xff] %vm1076_vm5, %v3023_v33 }
 0x44f   : > { %3220 = vrot.lane.b32.xlu0 %v3148_v21, %s4895_s11  ;;  %3987 = vrot.lane.b32.xlu1 %v6621_v42, %s4899_s21 }
 0x451   : > { %v3029_v52 = vpop.permute.xlu0 %3028  ;;  %v3027_v63 = vpop.permute.xlu1 %3026 }
 0x452   : > { %3116 = vst.msk [vmem:[#allocation4 + $0x40] sm:$0xff] %vm1076_vm5, %v3029_v52  ;;  %3115 = vst.msk [vmem:[#allocation4 + $0x38] sm:$0xff] %vm1076_vm5, %v3027_v63  ;;  %v3158_v63 = vld [vmem:[#allocation3 + $0xf1] sm:$0xff] }
 0x453   : > { %3224 = vrot.lane.b32.xlu0 %v3150_v25, %s4895_s11  ;;  %3222 = vrot.lane.b32.xlu1 %v3149_v62, %s4895_s11 }
 0x455   : > { %v3033_v29 = vpop.permute.xlu0 %3032  ;;  %v3031_v57 = vpop.permute.xlu1 %3030 }
 0x456   : > { %3118 = vst.msk [vmem:[#allocation4 + $0x50] sm:$0xff] %vm1076_vm5, %v3033_v29  ;;  %3117 = vst.msk [vmem:[#allocation4 + $0x48] sm:$0xff] %vm1076_vm5, %v3031_v57  ;;  %v3159_v57 = vld [vmem:[#allocation3 + $0xf9] sm:$0xff] }
 0x457   : > { %3412 = vrot.lane.b32.xlu0 %v6610_v31, %s4896_s12  ;;  %3226 = vrot.lane.b32.xlu1 %v3151_v18, %s4895_s11 }
 0x459   : > { %v3037_v53 = vpop.permute.xlu0 %3036  ;;  %v3035_v54 = vpop.permute.xlu1 %3034 }
 0x45a   : > { %3120 = vst.msk [vmem:[#allocation4 + $0x60] sm:$0xff] %vm1076_vm5, %v3037_v53  ;;  %3119 = vst.msk [vmem:[#allocation4 + $0x58] sm:$0xff] %vm1076_vm5, %v3035_v54 }
 0x45b   : > { %3416 = vrot.lane.b32.xlu0 %v6619_v11, %s4896_s12  ;;  %3414 = vrot.lane.b32.xlu1 %v6621_v42, %s4896_s12 }
 0x45d   : > { %v3041_v38 = vpop.permute.xlu0 %3040  ;;  %v3039_v60 = vpop.permute.xlu1 %3038 }
 0x45e   : > { %3122 = vst.msk [vmem:[#allocation4 + $0x70] sm:$0xff] %vm1076_vm5, %v3041_v38  ;;  %3121 = vst.msk [vmem:[#allocation4 + $0x68] sm:$0xff] %vm1076_vm5, %v3039_v60 }
 0x45f   : > { %3605 = vrot.lane.b32.xlu0 %v6409_v58, %s4897_s13  ;;  %3418 = vrot.lane.b32.xlu1 %v6629_v16, %s4896_s12 }
 0x461   : > { %v3045_v31 = vpop.permute.xlu0 %3044  ;;  %v3043_v56 = vpop.permute.xlu1 %3042 }
 0x462   : > { %3124 = vst.msk [vmem:[#allocation4 + $0x80] sm:$0xff] %vm1076_vm5, %v3045_v31  ;;  %3123 = vst.msk [vmem:[#allocation4 + $0x78] sm:$0xff] %vm1076_vm5, %v3043_v56 }
 0x463   : > { %3609 = vrot.lane.b32.xlu0 %v6451_v10, %s4897_s13  ;;  %3607 = vrot.lane.b32.xlu1 %v6424_v61, %s4897_s13  ;;  %v3727_v10 = vld [vmem:[#allocation3 + $0xa9] sm:$0xff] }
 0x465   : > { %v3049_v42 = vpop.permute.xlu0 %3048  ;;  %v3047_v8 = vpop.permute.xlu1 %3046 }
 0x466   : > { %3126 = vst.msk [vmem:[#allocation4 + $0x90] sm:$0xff] %vm1076_vm5, %v3049_v42  ;;  %3125 = vst.msk [vmem:[#allocation4 + $0x88] sm:$0xff] %vm1076_vm5, %v3047_v8  ;;  %v3925_v8 = vld [vmem:[#allocation3 + $0xf2] sm:$0xff] }
 0x467   : > { %3797 = vrot.lane.b32.xlu0 %v3150_v25, %s4898_s14  ;;  %3611 = vrot.lane.b32.xlu1 %v6467_v27, %s4897_s13 }
 0x469   : > { %v3053_v58 = vpop.permute.xlu0 %3052  ;;  %v3051_v32 = vpop.permute.xlu1 %3050 }
 0x46a   : > { %3128 = vst.msk [vmem:[#allocation4 + $0xa0] sm:$0xff] %vm1076_vm5, %v3053_v58  ;;  %3127 = vst.msk [vmem:[#allocation4 + $0x98] sm:$0xff] %vm1076_vm5, %v3051_v32  ;;  %v3736_v58 = vld [vmem:[#allocation3 + $0x111] sm:$0xff] }
 0x46b   : > { %3801 = vrot.lane.b32.xlu0 %v3727_v10, %s4898_s14  ;;  %3799 = vrot.lane.b32.xlu1 %v3151_v18, %s4898_s14 }
 0x46d   : > { %v3057_v61 = vpop.permute.xlu0 %3056  ;;  %v3055_v51 = vpop.permute.xlu1 %3054 }
 0x46e   : > { %3130 = vst.msk [vmem:[#allocation4 + $0xb0] sm:$0xff] %vm1076_vm5, %v3057_v61  ;;  %3129 = vst.msk [vmem:[#allocation4 + $0xa8] sm:$0xff] %vm1076_vm5, %v3055_v51 }
 0x46f   : > { %3989 = vrot.lane.b32.xlu0 %v6619_v11, %s4899_s21  ;;  %3803 = vrot.lane.b32.xlu1 %v3728_v14, %s4898_s14 }
 0x471   : > { %v3205_v27 = vpop.permute.xlu0 %3204  ;;  %v3059_v50 = vpop.permute.xlu1 %3058 }
 0x472   : > { %3300 = vst.msk [vmem:[#allocation4] sm:$0xff] %vm1269_vm6, %v3205_v27 }
 0x473   : > { %3131 = vst.msk [vmem:[#allocation4 + $0xb8] sm:$0xff] %vm1076_vm5, %v3059_v50  ;;  %3993 = vrot.lane.b32.xlu0 %v6627_v35, %s4899_s21  ;;  %3991 = vrot.lane.b32.xlu1 %v6629_v16, %s4899_s21  ;;  %v3928_v50 = vld [vmem:[#allocation3 + $0x112] sm:$0xff] }
 0x475   : > { %v3209_v39 = vpop.permute.xlu0 %3208  ;;  %v3207_v34 = vpop.permute.xlu1 %3206 }
 0x476   : > { %3302 = vst.msk [vmem:[#allocation4 + $0x10] sm:$0xff] %vm1269_vm6, %v3209_v39  ;;  %3301 = vst.msk [vmem:[#allocation4 + $0x8] sm:$0xff] %vm1269_vm6, %v3207_v34 }
 0x477   : > { %3228 = vrot.lane.b32.xlu0 %v3727_v10, %s4895_s11  ;;  %3995 = vrot.lane.b32.xlu1 %v6638_v7, %s4899_s21  ;;  %v3927_v10 = vld [vmem:[#allocation3 + $0x10a] sm:$0xff] }
 0x479   : > { %v3397_v11 = vpop.permute.xlu0 %3396  ;;  %v3211_v48 = vpop.permute.xlu1 %3210 }
 0x47a   : > { %3492 = vst.msk [vmem:[#allocation4] sm:$0xff] %vm1462_vm7, %v3397_v11 }
 0x47b   : > { %3303 = vst.msk [vmem:[#allocation4 + $0x18] sm:$0xff] %vm1269_vm6, %v3211_v48  ;;  %3232 = vrot.lane.b32.xlu0 %v3154_v12, %s4895_s11  ;;  %3230 = vrot.lane.b32.xlu1 %v3728_v14, %s4895_s11 }
 0x47d   : > { %v3401_v16 = vpop.permute.xlu0 %3400  ;;  %v3399_v22 = vpop.permute.xlu1 %3398 }
 0x47e   : > { %3494 = vst.msk [vmem:[#allocation4 + $0x10] sm:$0xff] %vm1462_vm7, %v3401_v16  ;;  %3493 = vst.msk [vmem:[#allocation4 + $0x8] sm:$0xff] %vm1462_vm7, %v3399_v22  ;;  %v3162_v16 = vld [vmem:[#allocation3 + $0x121] sm:$0xff] }
 0x47f   : > { %3420 = vrot.lane.b32.xlu0 %v6627_v35, %s4896_s12  ;;  %3234 = vrot.lane.b32.xlu1 %v3155_v40, %s4895_s11 }
 0x481   : > { %v3590_v45 = vpop.permute.xlu0 %3589  ;;  %v3403_v26 = vpop.permute.xlu1 %3402 }
 0x482   : > { %3685 = vst.msk [vmem:[#allocation4] sm:$0xff] %vm1656_vm9, %v3590_v45 }
 0x483   : > { %3495 = vst.msk [vmem:[#allocation4 + $0x18] sm:$0xff] %vm1462_vm7, %v3403_v26  ;;  %3424 = vrot.lane.b32.xlu0 %v6636_v19, %s4896_s12  ;;  %3422 = vrot.lane.b32.xlu1 %v6638_v7, %s4896_s12  ;;  %v3163_v26 = vld [vmem:[#allocation3 + $0x129] sm:$0xff] }
 0x485   : > { %v3594_v47 = vpop.permute.xlu0 %3593  ;;  %v3592_v20 = vpop.permute.xlu1 %3591 }
 0x486   : > { %3687 = vst.msk [vmem:[#allocation4 + $0x10] sm:$0xff] %vm1656_vm9, %v3594_v47  ;;  %3686 = vst.msk [vmem:[#allocation4 + $0x8] sm:$0xff] %vm1656_vm9, %v3592_v20 }
 0x487   : > { %3613 = vrot.lane.b32.xlu0 %v6447_v36, %s4897_s13  ;;  %3426 = vrot.lane.b32.xlu1 %v6648_v4, %s4896_s12 }
 0x489   : > { %v3782_v35 = vpop.permute.xlu0 %3781  ;;  %v3596_v23 = vpop.permute.xlu1 %3595 }
 0x48a   : > { %3877 = vst.msk [vmem:[#allocation4] sm:$0xff] %vm1849_vm10, %v3782_v35  ;;  %v3354_v35 = vld [vmem:[#allocation3 + $0x122] sm:$0xff] }
 0x48b   : > { %3688 = vst.msk [vmem:[#allocation4 + $0x18] sm:$0xff] %vm1656_vm9, %v3596_v23  ;;  %3617 = vrot.lane.b32.xlu0 %v6483_v30, %s4897_s13  ;;  %3615 = vrot.lane.b32.xlu1 %v6459_v43, %s4897_s13  ;;  %v3731_v30 = vld [vmem:[#allocation3 + $0xd9] sm:$0xff] }
 0x48d   : > { %v3786_v7 = vpop.permute.xlu0 %3785  ;;  %v3784_v2 = vpop.permute.xlu1 %3783 }
 0x48e   : > { %3879 = vst.msk [vmem:[#allocation4 + $0x10] sm:$0xff] %vm1849_vm10, %v3786_v7  ;;  %3878 = vst.msk [vmem:[#allocation4 + $0x8] sm:$0xff] %vm1849_vm10, %v3784_v2  ;;  %v3545_v2 = vld [vmem:[#allocation3 + $0x120] sm:$0xff] }
 0x48f   : > { %3805 = vrot.lane.b32.xlu0 %v3154_v12, %s4898_s14  ;;  %3619 = vrot.lane.b32.xlu1 %v6499_v5, %s4897_s13 }
 0x491   : > { %v3974_v36 = vpop.permute.xlu0 %3973  ;;  %v3788_v6 = vpop.permute.xlu1 %3787 }
 0x492   : > { %4069 = vst.msk [vmem:[#allocation4] sm:$0xff] %vm2042_vm11, %v3974_v36  ;;  %v3355_v36 = vld [vmem:[#allocation3 + $0x12a] sm:$0xff] }
 0x493   : > { %3880 = vst.msk [vmem:[#allocation4 + $0x18] sm:$0xff] %vm1849_vm10, %v3788_v6  ;;  %3809 = vrot.lane.b32.xlu0 %v3731_v30, %s4898_s14  ;;  %3807 = vrot.lane.b32.xlu1 %v3155_v40, %s4898_s14 }
 0x495   : > { %v3978_v43 = vpop.permute.xlu0 %3977  ;;  %v3976_v3 = vpop.permute.xlu1 %3975 }
 0x496   : > { %4071 = vst.msk [vmem:[#allocation4 + $0x10] sm:$0xff] %vm2042_vm11, %v3978_v43  ;;  %4070 = vst.msk [vmem:[#allocation4 + $0x8] sm:$0xff] %vm2042_vm11, %v3976_v3  ;;  %v3546_v43 = vld [vmem:[#allocation3 + $0x128] sm:$0xff] }
 0x497   : > { %3997 = vrot.lane.b32.xlu0 %v6636_v19, %s4899_s21  ;;  %3811 = vrot.lane.b32.xlu1 %v3732_v59, %s4898_s14 }
 0x499   : > { %v3213_v5 = vpop.permute.xlu0 %3212  ;;  %v3980_v41 = vpop.permute.xlu1 %3979  ;;  %v4101_v0 = vld [vmem:[#allocation4] sm:$0xff] }
 0x49a   : > { %3304 = vst.msk [vmem:[#allocation4 + $0x20] sm:$0xff] %vm1269_vm6, %v3213_v5 }
 0x49b   : > { %4072 = vst.msk [vmem:[#allocation4 + $0x18] sm:$0xff] %vm2042_vm11, %v3980_v41  ;;  %4001 = vrot.lane.b32.xlu0 %v6646_v15, %s4899_s21  ;;  %3999 = vrot.lane.b32.xlu1 %v6648_v4, %s4899_s21 }
 0x49d   : > { %v3217_v55 = vpop.permute.xlu0 %3216  ;;  %v3215_v1 = vpop.permute.xlu1 %3214  ;;  %v4102_v37 = vld [vmem:[#allocation4 + $0x8] sm:$0xff]  ;;  %v4103_v52 = vld [vmem:[#allocation4 + $0x10] sm:$0xff] }
 0x49e   : > { %3306 = vst.msk [vmem:[#allocation4 + $0x30] sm:$0xff] %vm1269_vm6, %v3217_v55  ;;  %3305 = vst.msk [vmem:[#allocation4 + $0x28] sm:$0xff] %vm1269_vm6, %v3215_v1  ;;  %v4133_v19 = vpack.c.bf16 %v4102_v37, %v4101_v0  ;;  %v3740_v0 = vld [vmem:[#allocation3 + $0x141] sm:$0xff] }
 0x49f   : > { %3236 = vrot.lane.b32.xlu0 %v3731_v30, %s4895_s11  ;;  %4003 = vrot.lane.b32.xlu1 %v6657_v46, %s4899_s21 }
 0x4a0   : > { %4826 = vmatprep.mubr.msk.bf16.mxu1 %vm2143_vm12, %v4133_v19  ;;  %v3931_v19 = vld [vmem:[#allocation3 + $0x13a] sm:$0xff] }
 0x4a1   : > { %v3405_v33 = vpop.permute.xlu0 %3404  ;;  %v3219_v21 = vpop.permute.xlu1 %3218 }
 0x4a2   : > { %v4104_v4 = vld [vmem:[#allocation4 + $0x18] sm:$0xff]  ;;  %3496 = vst.msk [vmem:[#allocation4 + $0x20] sm:$0xff] %vm1462_vm7, %v3405_v33 }
 0x4a3   : > { %3307 = vst.msk [vmem:[#allocation4 + $0x38] sm:$0xff] %vm1269_vm6, %v3219_v21  ;;  %v4134_v25 = vpack.c.bf16 %v4104_v4, %v4103_v52  ;;  %3240 = vrot.lane.b32.xlu0 %v3158_v63, %s4895_s11  ;;  %3238 = vrot.lane.b32.xlu1 %v3732_v59, %s4895_s11 }
 0x4a5   : > { %4827 = vmatmul.mubr.msk.bf16.vlgmr.msra.gmra.mxu1 %vm2143_vm12, %v4134_v25  ;;  %v3409_v62 = vpop.permute.xlu0 %3408  ;;  %v3407_v29 = vpop.permute.xlu1 %3406  ;;  %v3932_v25 = vld [vmem:[#allocation3 + $0x142] sm:$0xff] }
 0x4a6   : > { %3498 = vst.msk [vmem:[#allocation4 + $0x30] sm:$0xff] %vm1462_vm7, %v3409_v62  ;;  %3497 = vst.msk [vmem:[#allocation4 + $0x28] sm:$0xff] %vm1462_vm7, %v3407_v29 }
 0x4a7   : > { %3428 = vrot.lane.b32.xlu0 %v6646_v15, %s4896_s12  ;;  %3242 = vrot.lane.b32.xlu1 %v3159_v57, %s4895_s11  ;;  %v3351_v15 = vld [vmem:[#allocation3 + $0xfa] sm:$0xff] }
 0x4a9   : > { %v3598_v18 = vpop.permute.xlu0 %3597  ;;  %v3411_v53 = vpop.permute.xlu1 %3410 }
 0x4aa   : > { %3689 = vst.msk [vmem:[#allocation4 + $0x20] sm:$0xff] %vm1656_vm9, %v3598_v18 }
 0x4ab   : > { %3499 = vst.msk [vmem:[#allocation4 + $0x38] sm:$0xff] %vm1462_vm7, %v3411_v53  ;;  %3432 = vrot.lane.b32.xlu0 %v6655_v49, %s4896_s12  ;;  %3430 = vrot.lane.b32.xlu1 %v6657_v46, %s4896_s12 }
 0x4ad   : > { %v3602_v54 = vpop.permute.xlu0 %3601  ;;  %v3600_v38 = vpop.permute.xlu1 %3599 }
 0x4ae   : > { %3691 = vst.msk [vmem:[#allocation4 + $0x30] sm:$0xff] %vm1656_vm9, %v3602_v54  ;;  %3690 = vst.msk [vmem:[#allocation4 + $0x28] sm:$0xff] %vm1656_vm9, %v3600_v38  ;;  %v2974_v54 = vld [vmem:[#allocation3 + $0x150] sm:$0xff]  ;;  %v2973_v38 = vld [vmem:[#allocation3 + $0x140] sm:$0xff] }
 0x4af   : > { %3621 = vrot.lane.b32.xlu0 %v6479_v17, %s4897_s13  ;;  %3434 = vrot.lane.b32.xlu1 %v3351_v15, %s4896_s12 }
 0x4b1   : > { %v3790_v60 = vpop.permute.xlu0 %3789  ;;  %v3604_v31 = vpop.permute.xlu1 %3603 }
 0x4b2   : > { %3881 = vst.msk [vmem:[#allocation4 + $0x20] sm:$0xff] %vm1849_vm10, %v3790_v60 }
 0x4b3   : > { %3692 = vst.msk [vmem:[#allocation4 + $0x38] sm:$0xff] %vm1656_vm9, %v3604_v31  ;;  %3625 = vrot.lane.b32.xlu0 %v6515_v28, %s4897_s13  ;;  %3623 = vrot.lane.b32.xlu1 %v6491_v44, %s4897_s13  ;;  %v3735_v28 = vld [vmem:[#allocation3 + $0x109] sm:$0xff] }
 0x4b5   : > { %v3794_v49 = vpop.permute.xlu0 %3793  ;;  %v3792_v46 = vpop.permute.xlu1 %3791 }
 0x4b6   : > { %3883 = vst.msk [vmem:[#allocation4 + $0x30] sm:$0xff] %vm1849_vm10, %v3794_v49  ;;  %3882 = vst.msk [vmem:[#allocation4 + $0x28] sm:$0xff] %vm1849_vm10, %v3792_v46  ;;  %v2975_v49 = vld [vmem:[#allocation3 + $0x158] sm:$0xff] }
 0x4b7   : > { %3813 = vrot.lane.b32.xlu0 %v3158_v63, %s4898_s14  ;;  %3627 = vrot.lane.b32.xlu1 %v6531_v24, %s4897_s13  ;;  %v2972_v63 = vld [vmem:[#allocation3 + $0x138] sm:$0xff] }
 0x4b9   : > { %v3982_v17 = vpop.permute.xlu0 %3981  ;;  %v3796_v56 = vpop.permute.xlu1 %3795 }
 0x4ba   : > { %4073 = vst.msk [vmem:[#allocation4 + $0x20] sm:$0xff] %vm2042_vm11, %v3982_v17 }
 0x4bb   : > { %3884 = vst.msk [vmem:[#allocation4 + $0x38] sm:$0xff] %vm1849_vm10, %v3796_v56  ;;  %3817 = vrot.lane.b32.xlu0 %v3735_v28, %s4898_s14  ;;  %3815 = vrot.lane.b32.xlu1 %v3159_v57, %s4898_s14  ;;  %v3166_v56 = vld [vmem:[#allocation3 + $0x151] sm:$0xff] }
 0x4bd   : > { %v3986_v44 = vpop.permute.xlu0 %3985  ;;  %v3984_v42 = vpop.permute.xlu1 %3983 }
 0x4be   : > { %4075 = vst.msk [vmem:[#allocation4 + $0x30] sm:$0xff] %vm2042_vm11, %v3986_v44  ;;  %4074 = vst.msk [vmem:[#allocation4 + $0x28] sm:$0xff] %vm2042_vm11, %v3984_v42  ;;  %v3167_v42 = vld [vmem:[#allocation3 + $0x159] sm:$0xff] }
 0x4bf   : > { %4005 = vrot.lane.b32.xlu0 %v3925_v8, %s4899_s21  ;;  %3819 = vrot.lane.b32.xlu1 %v3736_v58, %s4898_s14 }
 0x4c1   : > { %v3221_v24 = vpop.permute.xlu0 %3220  ;;  %v3988_v32 = vpop.permute.xlu1 %3987  ;;  %v4105_v14 = vld [vmem:[#allocation4 + $0x20] sm:$0xff] }
 0x4c2   : > { %3308 = vst.msk [vmem:[#allocation4 + $0x40] sm:$0xff] %vm1269_vm6, %v3221_v24  ;;  %v3358_v24 = vld [vmem:[#allocation3 + $0x152] sm:$0xff] }
 0x4c3   : > { %4076 = vst.msk [vmem:[#allocation4 + $0x38] sm:$0xff] %vm2042_vm11, %v3988_v32  ;;  %4009 = vrot.lane.b32.xlu0 %v3927_v10, %s4899_s21  ;;  %4007 = vrot.lane.b32.xlu1 %v3351_v15, %s4899_s21 }
 0x4c5   : > { %v3225_v61 = vpop.permute.xlu0 %3224  ;;  %v3223_v51 = vpop.permute.xlu1 %3222  ;;  %v4106_v27 = vld [vmem:[#allocation4 + $0x28] sm:$0xff]  ;;  %v4107_v48 = vld [vmem:[#allocation4 + $0x30] sm:$0xff] }
 0x4c6   : > { %3310 = vst.msk [vmem:[#allocation4 + $0x50] sm:$0xff] %vm1269_vm6, %v3225_v61  ;;  %3309 = vst.msk [vmem:[#allocation4 + $0x48] sm:$0xff] %vm1269_vm6, %v3223_v51  ;;  %v4135_v39 = vpack.c.bf16 %v4106_v27, %v4105_v14  ;;  %v3359_v61 = vld [vmem:[#allocation3 + $0x15a] sm:$0xff]  ;;  %v3551_v27 = vld [vmem:[#allocation3 + $0x168] sm:$0xff] }
 0x4c7   : > { %3244 = vrot.lane.b32.xlu0 %v3735_v28, %s4895_s11  ;;  %4011 = vrot.lane.b32.xlu1 %v3928_v50, %s4899_s21 }
 0x4c8   : > { %4830 = vmatprep.mubr.msk.bf16.mxu1 %vm2143_vm12, %v4135_v39 }
 0x4c9   : > { %v3413_v34 = vpop.permute.xlu0 %3412  ;;  %v3227_v11 = vpop.permute.xlu1 %3226 }
 0x4ca   : > { %v4108_v12 = vld [vmem:[#allocation4 + $0x38] sm:$0xff]  ;;  %3500 = vst.msk [vmem:[#allocation4 + $0x40] sm:$0xff] %vm1462_vm7, %v3413_v34  ;;  %v3552_v34 = vld [vmem:[#allocation3 + $0x170] sm:$0xff] }
 0x4cb   : > { %3311 = vst.msk [vmem:[#allocation4 + $0x58] sm:$0xff] %vm1269_vm6, %v3227_v11  ;;  %v4136_v22 = vpack.c.bf16 %v4108_v12, %v4107_v48  ;;  %3248 = vrot.lane.b32.xlu0 %v3162_v16, %s4895_s11  ;;  %3246 = vrot.lane.b32.xlu1 %v3736_v58, %s4895_s11  ;;  %v3743_v12 = vld [vmem:[#allocation3 + $0x169] sm:$0xff] }
 0x4cd   : > { %4831 = vmatmul.mubr.msk.bf16.gmra.mxu1 %vm2143_vm12, %v4136_v22  ;;  %v3417_v40 = vpop.permute.xlu0 %3416  ;;  %v3415_v45 = vpop.permute.xlu1 %3414 }
 0x4ce   : > { %3502 = vst.msk [vmem:[#allocation4 + $0x50] sm:$0xff] %vm1462_vm7, %v3417_v40  ;;  %3501 = vst.msk [vmem:[#allocation4 + $0x48] sm:$0xff] %vm1462_vm7, %v3415_v45 }
 0x4cf   : > { %3436 = vrot.lane.b32.xlu0 %v3927_v10, %s4896_s12  ;;  %3250 = vrot.lane.b32.xlu1 %v3163_v26, %s4895_s11 }
 0x4d1   : > { %v3606_v47 = vpop.permute.xlu0 %3605  ;;  %v3419_v20 = vpop.permute.xlu1 %3418 }
 0x4d2   : > { %3693 = vst.msk [vmem:[#allocation4 + $0x40] sm:$0xff] %vm1656_vm9, %v3606_v47 }
 0x4d3   : > { %3503 = vst.msk [vmem:[#allocation4 + $0x58] sm:$0xff] %vm1462_vm7, %v3419_v20  ;;  %3440 = vrot.lane.b32.xlu0 %v3354_v35, %s4896_s12  ;;  %3438 = vrot.lane.b32.xlu1 %v3928_v50, %s4896_s12 }
 0x4d5   : > { %v3610_v23 = vpop.permute.xlu0 %3609  ;;  %v3608_v7 = vpop.permute.xlu1 %3607 }
 0x4d6   : > { %3695 = vst.msk [vmem:[#allocation4 + $0x50] sm:$0xff] %vm1656_vm9, %v3610_v23  ;;  %3694 = vst.msk [vmem:[#allocation4 + $0x48] sm:$0xff] %vm1656_vm9, %v3608_v7 }
 0x4d7   : > { %3629 = vrot.lane.b32.xlu0 %v3545_v2, %s4897_s13  ;;  %3442 = vrot.lane.b32.xlu1 %v3355_v36, %s4896_s12  ;;  %v3935_v2 = vld [vmem:[#allocation3 + $0x16a] sm:$0xff] }
 0x4d9   : > { %v3798_v6 = vpop.permute.xlu0 %3797  ;;  %v3612_v30 = vpop.permute.xlu1 %3611 }
 0x4da   : > { %3885 = vst.msk [vmem:[#allocation4 + $0x40] sm:$0xff] %vm1849_vm10, %v3798_v6 }
 0x4db   : > { %3696 = vst.msk [vmem:[#allocation4 + $0x58] sm:$0xff] %vm1656_vm9, %v3612_v30  ;;  %3633 = vrot.lane.b32.xlu0 %v6544_v9, %s4897_s13  ;;  %3631 = vrot.lane.b32.xlu1 %v3546_v43, %s4897_s13  ;;  %v3739_v9 = vld [vmem:[#allocation3 + $0x139] sm:$0xff] }
 0x4dc   : > { %v3936_v43 = vld [vmem:[#allocation3 + $0x172] sm:$0xff] }
 0x4dd   : > { %v3802_v3 = vpop.permute.xlu0 %3801  ;;  %v3800_v59 = vpop.permute.xlu1 %3799 }
 0x4de   : > { %3887 = vst.msk [vmem:[#allocation4 + $0x50] sm:$0xff] %vm1849_vm10, %v3802_v3  ;;  %3886 = vst.msk [vmem:[#allocation4 + $0x48] sm:$0xff] %vm1849_vm10, %v3800_v59 }
 0x4df   : > { %3821 = vrot.lane.b32.xlu0 %v3162_v16, %s4898_s14  ;;  %3635 = vrot.lane.b32.xlu1 %v6557_v13, %s4897_s13 }
 0x4e1   : > { %v3990_v5 = vpop.permute.xlu0 %3989  ;;  %v3804_v41 = vpop.permute.xlu1 %3803 }
 0x4e2   : > { %4077 = vst.msk [vmem:[#allocation4 + $0x40] sm:$0xff] %vm2042_vm11, %v3990_v5  ;;  %v2978_v5 = vld [vmem:[#allocation3 + $0x180] sm:$0xff] }
 0x4e3   : > { %3888 = vst.msk [vmem:[#allocation4 + $0x58] sm:$0xff] %vm1849_vm10, %v3804_v41  ;;  %3825 = vrot.lane.b32.xlu0 %v3739_v9, %s4898_s14  ;;  %3823 = vrot.lane.b32.xlu1 %v3163_v26, %s4898_s14  ;;  %v3744_v26 = vld [vmem:[#allocation3 + $0x171] sm:$0xff] }
 0x4e5   : > { %v3994_v55 = vpop.permute.xlu0 %3993  ;;  %v3992_v1 = vpop.permute.xlu1 %3991 }
 0x4e6   : > { %4079 = vst.msk [vmem:[#allocation4 + $0x50] sm:$0xff] %vm2042_vm11, %v3994_v55  ;;  %4078 = vst.msk [vmem:[#allocation4 + $0x48] sm:$0xff] %vm2042_vm11, %v3992_v1  ;;  %v2979_v55 = vld [vmem:[#allocation3 + $0x188] sm:$0xff] }
 0x4e7   : > { %4013 = vrot.lane.b32.xlu0 %v3354_v35, %s4899_s21  ;;  %3827 = vrot.lane.b32.xlu1 %v3740_v0, %s4898_s14 }
 0x4e9   : > { %v3229_v13 = vpop.permute.xlu0 %3228  ;;  %v3996_v37 = vpop.permute.xlu1 %3995  ;;  %v4109_v52 = vld [vmem:[#allocation4 + $0x40] sm:$0xff] }
 0x4ea   : > { %3312 = vst.msk [vmem:[#allocation4 + $0x60] sm:$0xff] %vm1269_vm6, %v3229_v13  ;;  %v3170_v13 = vld [vmem:[#allocation3 + $0x181] sm:$0xff] }
 0x4eb   : > { %4080 = vst.msk [vmem:[#allocation4 + $0x58] sm:$0xff] %vm2042_vm11, %v3996_v37  ;;  %4017 = vrot.lane.b32.xlu0 %v3931_v19, %s4899_s21  ;;  %4015 = vrot.lane.b32.xlu1 %v3355_v36, %s4899_s21 }
 0x4ed   : > { %v3233_v33 = vpop.permute.xlu0 %3232  ;;  %v3231_v21 = vpop.permute.xlu1 %3230  ;;  %v4110_v4 = vld [vmem:[#allocation4 + $0x48] sm:$0xff]  ;;  %v4111_v18 = vld [vmem:[#allocation4 + $0x50] sm:$0xff] }
 0x4ee   : > { %3314 = vst.msk [vmem:[#allocation4 + $0x70] sm:$0xff] %vm1269_vm6, %v3233_v33  ;;  %3313 = vst.msk [vmem:[#allocation4 + $0x68] sm:$0xff] %vm1269_vm6, %v3231_v21  ;;  %v4137_v62 = vpack.c.bf16 %v4110_v4, %v4109_v52  ;;  %v3171_v33 = vld [vmem:[#allocation3 + $0x189] sm:$0xff] }
 0x4ef   : > { %3060 = vrot.lane.b32.xlu0 %v2972_v63, %s4894_s10  ;;  %4019 = vrot.lane.b32.xlu1 %v3932_v25, %s4899_s21  ;;  %v3362_v4 = vld [vmem:[#allocation3 + $0x182] sm:$0xff] }
 0x4f0   : > { %4834 = vmatprep.mubr.msk.bf16.mxu1 %vm2143_vm12, %v4137_v62  ;;  %v3363_v62 = vld [vmem:[#allocation3 + $0x18a] sm:$0xff] }
 0x4f1   : > { %v3421_v29 = vpop.permute.xlu0 %3420  ;;  %v3235_v57 = vpop.permute.xlu1 %3234 }
 0x4f2   : > { %v4112_v53 = vld [vmem:[#allocation4 + $0x58] sm:$0xff]  ;;  %3504 = vst.msk [vmem:[#allocation4 + $0x60] sm:$0xff] %vm1462_vm7, %v3421_v29  ;;  %v3555_v29 = vld [vmem:[#allocation3 + $0x198] sm:$0xff] }
 0x4f3   : > { %3315 = vst.msk [vmem:[#allocation4 + $0x78] sm:$0xff] %vm1269_vm6, %v3235_v57  ;;  %v4138_v15 = vpack.c.bf16 %v4112_v53, %v4111_v18  ;;  %3064 = vrot.lane.b32.xlu0 %v2974_v54, %s4894_s10  ;;  %3062 = vrot.lane.b32.xlu1 %v2973_v38, %s4894_s10  ;;  %v3556_v53 = vld [vmem:[#allocation3 + $0x1a0] sm:$0xff] }
 0x4f5   : > { %4835 = vmatmul.mubr.msk.bf16.gmra.mxu1 %vm2143_vm12, %v4138_v15  ;;  %v3425_v60 = vpop.permute.xlu0 %3424  ;;  %v3423_v31 = vpop.permute.xlu1 %3422 }
 0x4f6   : > { %3506 = vst.msk [vmem:[#allocation4 + $0x70] sm:$0xff] %vm1462_vm7, %v3425_v60  ;;  %3505 = vst.msk [vmem:[#allocation4 + $0x68] sm:$0xff] %vm1462_vm7, %v3423_v31 }
 0x4f7   : > { %3252 = vrot.lane.b32.xlu0 %v3739_v9, %s4895_s11  ;;  %3066 = vrot.lane.b32.xlu1 %v2975_v49, %s4894_s10 }
 0x4f9   : > { %v3614_v46 = vpop.permute.xlu0 %3613  ;;  %v3427_v17 = vpop.permute.xlu1 %3426 }
 0x4fa   : > { %3697 = vst.msk [vmem:[#allocation4 + $0x60] sm:$0xff] %vm1656_vm9, %v3614_v46 }
 0x4fb   : > { %3507 = vst.msk [vmem:[#allocation4 + $0x78] sm:$0xff] %vm1462_vm7, %v3427_v17  ;;  %3256 = vrot.lane.b32.xlu0 %v3166_v56, %s4895_s11  ;;  %3254 = vrot.lane.b32.xlu1 %v3740_v0, %s4895_s11 }
 0x4fd   : > { %v3618_v28 = vpop.permute.xlu0 %3617  ;;  %v3616_v44 = vpop.permute.xlu1 %3615 }
 0x4fe   : > { %3699 = vst.msk [vmem:[#allocation4 + $0x70] sm:$0xff] %vm1656_vm9, %v3618_v28  ;;  %3698 = vst.msk [vmem:[#allocation4 + $0x68] sm:$0xff] %vm1656_vm9, %v3616_v44 }
 0x4ff   : > { %3444 = vrot.lane.b32.xlu0 %v3931_v19, %s4896_s12  ;;  %3258 = vrot.lane.b32.xlu1 %v3167_v42, %s4895_s11 }
 0x501   : > { %v3806_v8 = vpop.permute.xlu0 %3805  ;;  %v3620_v58 = vpop.permute.xlu1 %3619 }
 0x502   : > { %3889 = vst.msk [vmem:[#allocation4 + $0x60] sm:$0xff] %vm1849_vm10, %v3806_v8 }
 0x503   : > { %3700 = vst.msk [vmem:[#allocation4 + $0x78] sm:$0xff] %vm1656_vm9, %v3620_v58  ;;  %3448 = vrot.lane.b32.xlu0 %v3358_v24, %s4896_s12  ;;  %3446 = vrot.lane.b32.xlu1 %v3932_v25, %s4896_s12 }
 0x505   : > { %v3810_v32 = vpop.permute.xlu0 %3809  ;;  %v3808_v10 = vpop.permute.xlu1 %3807 }
 0x506   : > { %3891 = vst.msk [vmem:[#allocation4 + $0x70] sm:$0xff] %vm1849_vm10, %v3810_v32  ;;  %3890 = vst.msk [vmem:[#allocation4 + $0x68] sm:$0xff] %vm1849_vm10, %v3808_v10 }
 0x507   : > { %3637 = vrot.lane.b32.xlu0 %v2974_v54, %s4897_s13  ;;  %3450 = vrot.lane.b32.xlu1 %v3359_v61, %s4896_s12 }
 0x509   : > { %v3998_v51 = vpop.permute.xlu0 %3997  ;;  %v3812_v14 = vpop.permute.xlu1 %3811 }
 0x50a   : > { %4081 = vst.msk [vmem:[#allocation4 + $0x60] sm:$0xff] %vm2042_vm11, %v3998_v51 }
 0x50b   : > { %3892 = vst.msk [vmem:[#allocation4 + $0x78] sm:$0xff] %vm1849_vm10, %v3812_v14  ;;  %3641 = vrot.lane.b32.xlu0 %v3551_v27, %s4897_s13  ;;  %3639 = vrot.lane.b32.xlu1 %v2975_v49, %s4897_s13  ;;  %v3747_v49 = vld [vmem:[#allocation3 + $0x199] sm:$0xff] }
 0x50d   : > { %v4002_v50 = vpop.permute.xlu0 %4001  ;;  %v4000_v39 = vpop.permute.xlu1 %3999 }
 0x50e   : > { %4083 = vst.msk [vmem:[#allocation4 + $0x70] sm:$0xff] %vm2042_vm11, %v4002_v50  ;;  %4082 = vst.msk [vmem:[#allocation4 + $0x68] sm:$0xff] %vm2042_vm11, %v4000_v39 }
 0x50f   : > { %3829 = vrot.lane.b32.xlu0 %v3166_v56, %s4898_s14  ;;  %3643 = vrot.lane.b32.xlu1 %v3552_v34, %s4897_s13 }
 0x511   : > { %v3237_v11 = vpop.permute.xlu0 %3236  ;;  %v4004_v48 = vpop.permute.xlu1 %4003  ;;  %v4113_v40 = vld [vmem:[#allocation4 + $0x60] sm:$0xff] }
 0x512   : > { %3316 = vst.msk [vmem:[#allocation4 + $0x80] sm:$0xff] %vm1269_vm6, %v3237_v11 }
 0x513   : > { %4084 = vst.msk [vmem:[#allocation4 + $0x78] sm:$0xff] %vm2042_vm11, %v4004_v48  ;;  %3833 = vrot.lane.b32.xlu0 %v3743_v12, %s4898_s14  ;;  %3831 = vrot.lane.b32.xlu1 %v3167_v42, %s4898_s14  ;;  %v3748_v42 = vld [vmem:[#allocation3 + $0x1a1] sm:$0xff] }
 0x515   : > { %v3241_v16 = vpop.permute.xlu0 %3240  ;;  %v3239_v22 = vpop.permute.xlu1 %3238  ;;  %v4114_v45 = vld [vmem:[#allocation4 + $0x68] sm:$0xff]  ;;  %v4115_v23 = vld [vmem:[#allocation4 + $0x70] sm:$0xff] }
 0x516   : > { %3318 = vst.msk [vmem:[#allocation4 + $0x90] sm:$0xff] %vm1269_vm6, %v3241_v16  ;;  %3317 = vst.msk [vmem:[#allocation4 + $0x88] sm:$0xff] %vm1269_vm6, %v3239_v22  ;;  %v4139_v47 = vpack.c.bf16 %v4114_v45, %v4113_v40  ;;  %v7180_v45 = vld [vmem:[%s7446_s5] ss:$0 sm:$0xff] }
 0x517   : > { %4021 = vrot.lane.b32.xlu0 %v3358_v24, %s4899_s21  ;;  %3835 = vrot.lane.b32.xlu1 %v3744_v26, %s4898_s14  ;;  %v3939_v24 = vld [vmem:[#allocation3 + $0x19a] sm:$0xff] }
 0x518   : > { %4838 = vmatprep.mubr.msk.bf16.mxu1 %vm2143_vm12, %v4139_v47  ;;  %v7185_v47 = vld [vmem:[%s7447_s6] ss:$0 sm:$0xff] }
 0x519   : > { %v3429_v20 = vpop.permute.xlu0 %3428  ;;  %v3243_v35 = vpop.permute.xlu1 %3242 }
 0x51a   : > { %v4116_v7 = vld [vmem:[#allocation4 + $0x78] sm:$0xff]  ;;  %3508 = vst.msk [vmem:[#allocation4 + $0x80] sm:$0xff] %vm1462_vm7, %v3429_v20 }
 0x51b   : > { %3319 = vst.msk [vmem:[#allocation4 + $0x98] sm:$0xff] %vm1269_vm6, %v3243_v35  ;;  %v4140_v36 = vpack.c.bf16 %v4116_v7, %v4115_v23  ;;  %4025 = vrot.lane.b32.xlu0 %v3935_v2, %s4899_s21  ;;  %4023 = vrot.lane.b32.xlu1 %v3359_v61, %s4899_s21  ;;  %v3940_v61 = vld [vmem:[#allocation3 + $0x1a2] sm:$0xff] }
 0x51d   : > { %4839 = vmatmul.mubr.msk.bf16.gmra.mxu1 %vm2143_vm12, %v4140_v36  ;;  %v3433_v6 = vpop.permute.xlu0 %3432  ;;  %v3431_v30 = vpop.permute.xlu1 %3430 }
 0x51e   : > { %3510 = vst.msk [vmem:[#allocation4 + $0x90] sm:$0xff] %vm1462_vm7, %v3433_v6  ;;  %3509 = vst.msk [vmem:[#allocation4 + $0x88] sm:$0xff] %vm1462_vm7, %v3431_v30 }
 0x51f   : > { %3068 = vrot.lane.b32.xlu0 %v3551_v27, %s4894_s10  ;;  %4027 = vrot.lane.b32.xlu1 %v3936_v43, %s4899_s21 }
 0x521   : > { %v3622_v3 = vpop.permute.xlu0 %3621  ;;  %v3435_v59 = vpop.permute.xlu1 %3434 }
 0x522   : > { %3701 = vst.msk [vmem:[#allocation4 + $0x80] sm:$0xff] %vm1656_vm9, %v3622_v3 }
 0x523   : > { %3511 = vst.msk [vmem:[#allocation4 + $0x98] sm:$0xff] %vm1462_vm7, %v3435_v59  ;;  %3072 = vrot.lane.b32.xlu0 %v2978_v5, %s4894_s10  ;;  %3070 = vrot.lane.b32.xlu1 %v3552_v34, %s4894_s10  ;;  %v7620_v59 = vld [vmem:[#allocation6_spill] sm:$0xff] }
 0x525   : > { %v3626_v41 = vpop.permute.xlu0 %3625  ;;  %v3624_v9 = vpop.permute.xlu1 %3623 }
 0x526   : > { %3703 = vst.msk [vmem:[#allocation4 + $0x90] sm:$0xff] %vm1656_vm9, %v3626_v41  ;;  %3702 = vst.msk [vmem:[#allocation4 + $0x88] sm:$0xff] %vm1656_vm9, %v3624_v9 }
 0x527   : > { %3260 = vrot.lane.b32.xlu0 %v3743_v12, %s4895_s11  ;;  %3074 = vrot.lane.b32.xlu1 %v2979_v55, %s4894_s10 }
 0x529   : > { %v3814_v1 = vpop.permute.xlu0 %3813  ;;  %v3628_v0 = vpop.permute.xlu1 %3627 }
 0x52a   : > { %3893 = vst.msk [vmem:[#allocation4 + $0x80] sm:$0xff] %vm1849_vm10, %v3814_v1 }
 0x52b   : > { %3704 = vst.msk [vmem:[#allocation4 + $0x98] sm:$0xff] %vm1656_vm9, %v3628_v0  ;;  %3264 = vrot.lane.b32.xlu0 %v3170_v13, %s4895_s11  ;;  %3262 = vrot.lane.b32.xlu1 %v3744_v26, %s4895_s11 }
 0x52d   : > { %v3818_v37 = vpop.permute.xlu0 %3817  ;;  %v3816_v19 = vpop.permute.xlu1 %3815 }
 0x52e   : > { %3895 = vst.msk [vmem:[#allocation4 + $0x90] sm:$0xff] %vm1849_vm10, %v3818_v37  ;;  %3894 = vst.msk [vmem:[#allocation4 + $0x88] sm:$0xff] %vm1849_vm10, %v3816_v19 }
 0x52f   : > { %3452 = vrot.lane.b32.xlu0 %v3935_v2, %s4896_s12  ;;  %3266 = vrot.lane.b32.xlu1 %v3171_v33, %s4895_s11 }
 0x531   : > { %v4006_v21 = vpop.permute.xlu0 %4005  ;;  %v3820_v52 = vpop.permute.xlu1 %3819 }
 0x532   : > { %4085 = vst.msk [vmem:[#allocation4 + $0x80] sm:$0xff] %vm2042_vm11, %v4006_v21 }
 0x533   : > { %3896 = vst.msk [vmem:[#allocation4 + $0x98] sm:$0xff] %vm1849_vm10, %v3820_v52  ;;  %3456 = vrot.lane.b32.xlu0 %v3362_v4, %s4896_s12  ;;  %3454 = vrot.lane.b32.xlu1 %v3936_v43, %s4896_s12  ;;  %v7622_v52 = vld [vmem:[#allocation5_spill] sm:$0xff] }
 0x535   : > { %v4010_v63 = vpop.permute.xlu0 %4009  ;;  %v4008_v25 = vpop.permute.xlu1 %4007 }
 0x536   : > { %4087 = vst.msk [vmem:[#allocation4 + $0x90] sm:$0xff] %vm2042_vm11, %v4010_v63  ;;  %4086 = vst.msk [vmem:[#allocation4 + $0x88] sm:$0xff] %vm2042_vm11, %v4008_v25 }
 0x537   : > { %3645 = vrot.lane.b32.xlu0 %v2978_v5, %s4897_s13  ;;  %3458 = vrot.lane.b32.xlu1 %v3363_v62, %s4896_s12  ;;  %v7621_v5 = vunpack.c.l.bf16 %v7620_v59 }
 0x539   : > { %v3245_v57 = vpop.permute.xlu0 %3244  ;;  %v4012_v18 = vpop.permute.xlu1 %4011  ;;  %v4117_v15 = vld [vmem:[#allocation4 + $0x80] sm:$0xff] }
 0x53a   : > { %3320 = vst.msk [vmem:[#allocation4 + $0xa0] sm:$0xff] %vm1269_vm6, %v3245_v57  ;;  %v7624_v57 = vunpack.c.h.bf16 %v7620_v59 }
 0x53b   : > { %4088 = vst.msk [vmem:[#allocation4 + $0x98] sm:$0xff] %vm2042_vm11, %v4012_v18  ;;  %3649 = vrot.lane.b32.xlu0 %v3555_v29, %s4897_s13  ;;  %3647 = vrot.lane.b32.xlu1 %v2979_v55, %s4897_s13 }
 0x53d   : > { %v3249_v54 = vpop.permute.xlu0 %3248  ;;  %v3247_v38 = vpop.permute.xlu1 %3246  ;;  %v4118_v60 = vld [vmem:[#allocation4 + $0x88] sm:$0xff]  ;;  %v4119_v56 = vld [vmem:[#allocation4 + $0x90] sm:$0xff] }
 0x53e   : > { %3322 = vst.msk [vmem:[#allocation4 + $0xb0] sm:$0xff] %vm1269_vm6, %v3249_v54  ;;  %3321 = vst.msk [vmem:[#allocation4 + $0xa8] sm:$0xff] %vm1269_vm6, %v3247_v38  ;;  %v4141_v31 = vpack.c.bf16 %v4118_v60, %v4117_v15  ;;  %v7625_v60 = vunpack.c.h.bf16 %v7622_v52 }
 0x53f   : > { %3837 = vrot.lane.b32.xlu0 %v3170_v13, %s4898_s14  ;;  %3651 = vrot.lane.b32.xlu1 %v3556_v53, %s4897_s13 }
 0x540   : > { %4842 = vmatprep.mubr.msk.bf16.mxu1 %vm2143_vm12, %v4141_v31 }
 0x541   : > { %v3437_v46 = vpop.permute.xlu0 %3436  ;;  %v3251_v17 = vpop.permute.xlu1 %3250 }
 0x542   : > { %v4120_v28 = vld [vmem:[#allocation4 + $0x98] sm:$0xff]  ;;  %3512 = vst.msk [vmem:[#allocation4 + $0xa0] sm:$0xff] %vm1462_vm7, %v3437_v46 }
 0x543   : > { %3323 = vst.msk [vmem:[#allocation4 + $0xb8] sm:$0xff] %vm1269_vm6, %v3251_v17  ;;  %v4142_v44 = vpack.c.bf16 %v4120_v28, %v4119_v56  ;;  %3841 = vrot.lane.b32.xlu0 %v3747_v49, %s4898_s14  ;;  %3839 = vrot.lane.b32.xlu1 %v3171_v33, %s4898_s14 }
 0x545   : > { %4843 = vmatmul.mubr.msk.bf16.gmra.mxu1 %vm2143_vm12, %v4142_v44  ;;  %v3441_v8 = vpop.permute.xlu0 %3440  ;;  %v3439_v58 = vpop.permute.xlu1 %3438 }
 0x546   : > { %3514 = vst.msk [vmem:[#allocation4 + $0xb0] sm:$0xff] %vm1462_vm7, %v3441_v8  ;;  %3513 = vst.msk [vmem:[#allocation4 + $0xa8] sm:$0xff] %vm1462_vm7, %v3439_v58 }
 0x547   : > { %4029 = vrot.lane.b32.xlu0 %v3362_v4, %s4899_s21  ;;  %3843 = vrot.lane.b32.xlu1 %v3748_v42, %s4898_s14  ;;  %s4664_s14 = sshll.u32 %s7669_s25, 8  ;;  %v7623_v4 = vunpack.c.l.bf16 %v7622_v52 }
 0x548   : > { %s7201_s17 = scalar_lea.vmem %s7448_s7, %s4664_s14 }
 0x549   : > { %v3630_v32 = vpop.permute.xlu0 %3629  ;;  %v3443_v10 = vpop.permute.xlu1 %3442 }
 0x54a   : > { %3705 = vst.msk [vmem:[#allocation4 + $0xa0] sm:$0xff] %vm1656_vm9, %v3630_v32 }
 0x54b   : > { %3515 = vst.msk [vmem:[#allocation4 + $0xb8] sm:$0xff] %vm1462_vm7, %v3443_v10  ;;  %4031 = vrot.lane.b32.xlu1 %v3363_v62, %s4899_s21  ;;  %4033 = vrot.lane.b32.xlu0 %v3939_v24, %s4899_s21 }
 0x54d   : > { %v3634_v51 = vpop.permute.xlu0 %3633  ;;  %v3632_v14 = vpop.permute.xlu1 %3631 }
 0x54e   : > { %3707 = vst.msk [vmem:[#allocation4 + $0xb0] sm:$0xff] %vm1656_vm9, %v3634_v51  ;;  %3706 = vst.msk [vmem:[#allocation4 + $0xa8] sm:$0xff] %vm1656_vm9, %v3632_v14 }
 0x54f   : > { %4035 = vrot.lane.b32.xlu1 %v3940_v61, %s4899_s21 }
 0x551   : > { %v3822_v27 = vpop.permute.xlu0 %3821  ;;  %v3636_v50 = vpop.permute.xlu1 %3635 }
 0x552   : > { %3897 = vst.msk [vmem:[#allocation4 + $0xa0] sm:$0xff] %vm1849_vm10, %v3822_v27 }
 0x553   : > { %3708 = vst.msk [vmem:[#allocation4 + $0xb8] sm:$0xff] %vm1656_vm9, %v3636_v50 }
 0x555   : > { %v3826_v39 = vpop.permute.xlu0 %3825  ;;  %v3824_v34 = vpop.permute.xlu1 %3823 }
 0x556   : > { %3899 = vst.msk [vmem:[#allocation4 + $0xb0] sm:$0xff] %vm1849_vm10, %v3826_v39  ;;  %3898 = vst.msk [vmem:[#allocation4 + $0xa8] sm:$0xff] %vm1849_vm10, %v3824_v34 }
 0x559   : > { %v4014_v11 = vpop.permute.xlu0 %4013  ;;  %v3828_v48 = vpop.permute.xlu1 %3827 }
 0x55a   : > { %4089 = vst.msk [vmem:[#allocation4 + $0xa0] sm:$0xff] %vm2042_vm11, %v4014_v11 }
 0x55b   : > { %3900 = vst.msk [vmem:[#allocation4 + $0xb8] sm:$0xff] %vm1849_vm10, %v3828_v48 }
 0x55d   : > { %v4018_v12 = vpop.permute.xlu0 %4017  ;;  %v4016_v16 = vpop.permute.xlu1 %4015 }
 0x55e   : > { %4091 = vst.msk [vmem:[#allocation4 + $0xb0] sm:$0xff] %vm2042_vm11, %v4018_v12  ;;  %4090 = vst.msk [vmem:[#allocation4 + $0xa8] sm:$0xff] %vm2042_vm11, %v4016_v16 }
 0x561   : > { %v3061_v22 = vpop.permute.xlu0 %3060  ;;  %v4020_v40 = vpop.permute.xlu1 %4019  ;;  %v4121_v7 = vld [vmem:[#allocation4 + $0xa0] sm:$0xff] }
 0x562   : > { %3132 = vst.msk [vmem:[#allocation4 + $0xc0] sm:$0xff] %vm1076_vm5, %v3061_v22  ;;  %v7626_v22 = vld [vmem:[#allocation8_spill] sm:$0xff] }
 0x563   : > { %4092 = vst.msk [vmem:[#allocation4 + $0xb8] sm:$0xff] %vm2042_vm11, %v4020_v40  ;;  %v7627_v40 = vunpack.c.l.bf16 %v7626_v22 }
 0x565   : > { %v4828_v26 = vpop.f32.mrf.mxu1  ;;  %v3065_v35 = vpop.permute.xlu0 %3064  ;;  %v4122_v2 = vld [vmem:[#allocation4 + $0xa8] sm:$0xff]  ;;  %v4123_v13 = vld [vmem:[#allocation4 + $0xb0] sm:$0xff] }
 0x566   : > { %v4390_v20 = vmul.f32 %v4828_v26, %v7180_v45  ;;  %v3063_v23 = vpop.permute.xlu1 %3062  ;;  %3134 = vst.msk [vmem:[#allocation4 + $0xd0] sm:$0xff] %vm1076_vm5, %v3065_v35  ;;  %v4143_v6 = vpack.c.bf16 %v4122_v2, %v4121_v7 }
 0x567   : > { %3133 = vst.msk [vmem:[#allocation4 + $0xc8] sm:$0xff] %vm1076_vm5, %v3063_v23  ;;  %v4254_v36 = vpop.f32.mrf.mxu1 }
 0x568   : > { %v4429_v30 = vadd.f32 %v7185_v47, %v4390_v20  ;;  %v4388_v43 = vmul.f32 %v7180_v45, %v4254_v36  ;;  %4846 = vmatprep.mubr.msk.bf16.mxu1 %vm2143_vm12, %v4143_v6  ;;  %v7628_v6 = vld [vmem:[#allocation7_spill] sm:$0xff] }
 0x569   : > { %v4829_v3 = vpop.f32.mrf.mxu1  ;;  %v3253_v1 = vpop.permute.xlu0 %3252 }
 0x56a   : > { %v4461_v41 = vadd.f32 %v7621_v5, %v4429_v30  ;;  %v4427_v9 = vadd.f32 %v7185_v47, %v4388_v43  ;;  %v4391_v55 = vmul.f32 %v4829_v3, %v7180_v45  ;;  %v3067_v0 = vpop.permute.xlu1 %3066  ;;  %v4124_v37 = vld [vmem:[#allocation4 + $0xb8] sm:$0xff]  ;;  %3324 = vst.msk [vmem:[#allocation4 + $0xc0] sm:$0xff] %vm1269_vm6, %v3253_v1  ;;  %v7629_v30 = vunpack.c.l.bf16 %v7628_v6 }
 0x56b   : > { %3135 = vst.msk [vmem:[#allocation4 + $0xd8] sm:$0xff] %vm1076_vm5, %v3067_v0  ;;  %v4257_v19 = vpop.f32.mrf.mxu1  ;;  %v4144_v33 = vpack.c.bf16 %v4124_v37, %v4123_v13 }
 0x56c   : > { %v4493_v21 = vmax.f32 %v4461_v41, 0.0  ;;  %v4459_v63 = vadd.f32 %v7623_v4, %v4427_v9  ;;  %v4430_v25 = vadd.f32 %v7185_v47, %v4391_v55  ;;  %v4389_v62 = vmul.f32 %v7180_v45, %v4257_v19 }
 0x56d   : > { %4847 = vmatmul.mubr.msk.bf16.gmra.mxu1 %vm2143_vm12, %v4144_v33  ;;  %v3257_v54 = vpop.permute.xlu0 %3256  ;;  %v7630_v41 = vunpack.c.h.bf16 %v7626_v22 }
 0x56e   : > { %4525 = vst.msk [vmem:[%s7201_s17 + $0x10] sm:$0xff] %vm280_vm0, %v4493_v21  ;;  %v4491_v29 = vmax.f32 %v4459_v63, 0.0  ;;  %v4462_v18 = vadd.f32 %v7624_v57, %v4430_v25  ;;  %v4428_v53 = vadd.f32 %v7185_v47, %v4389_v62  ;;  %v3255_v38 = vpop.permute.xlu1 %3254  ;;  %v7631_v21 = vunpack.c.h.bf16 %v7628_v6 }
 0x56f   : > { %3326 = vst.msk [vmem:[#allocation4 + $0xd0] sm:$0xff] %vm1269_vm6, %v3257_v54  ;;  %3325 = vst.msk [vmem:[#allocation4 + $0xc8] sm:$0xff] %vm1269_vm6, %v3255_v38 }
 0x570   : > { %4523 = vst.msk [vmem:[%s7201_s17] sm:$0xff] %vm280_vm0, %v4491_v29  ;;  %v4494_v15 = vmax.f32 %v4462_v18, 0.0  ;;  %v4460_v31 = vadd.f32 %v7625_v60, %v4428_v53 }
 0x571   : > { %v3445_v46 = vpop.permute.xlu0 %3444 }
 0x572   : > { %4526 = vst.msk [vmem:[%s7201_s17 + $0x18] sm:$0xff] %vm280_vm0, %v4494_v15  ;;  %v4492_v49 = vmax.f32 %v4460_v31, 0.0  ;;  %v3259_v17 = vpop.permute.xlu1 %3258 }
 0x573   : > { %3516 = vst.msk [vmem:[#allocation4 + $0xc0] sm:$0xff] %vm1462_vm7, %v3445_v46 }
 0x574   : > { %3327 = vst.msk [vmem:[#allocation4 + $0xd8] sm:$0xff] %vm1269_vm6, %v3259_v17 }
 0x575   : > { %4524 = vst.msk [vmem:[%s7201_s17 + $0x8] sm:$0xff] %vm280_vm0, %v4492_v49  ;;  %v3449_v56 = vpop.permute.xlu0 %3448 }
 0x576   : > { %v3447_v28 = vpop.permute.xlu1 %3446  ;;  %3518 = vst.msk [vmem:[#allocation4 + $0xd0] sm:$0xff] %vm1462_vm7, %v3449_v56 }
 0x577   : > { %3517 = vst.msk [vmem:[#allocation4 + $0xc8] sm:$0xff] %vm1462_vm7, %v3447_v28 }
 0x579   : > { %v3638_v44 = vpop.permute.xlu0 %3637 }
 0x57a   : > { %v3451_v42 = vpop.permute.xlu1 %3450  ;;  %3709 = vst.msk [vmem:[#allocation4 + $0xc0] sm:$0xff] %vm1656_vm9, %v3638_v44 }
 0x57b   : > { %3519 = vst.msk [vmem:[#allocation4 + $0xd8] sm:$0xff] %vm1462_vm7, %v3451_v42 }
 0x57d   : > { %v3642_v8 = vpop.permute.xlu0 %3641 }
 0x57e   : > { %v3640_v58 = vpop.permute.xlu1 %3639  ;;  %3711 = vst.msk [vmem:[#allocation4 + $0xd0] sm:$0xff] %vm1656_vm9, %v3642_v8 }
 0x57f   : > { %3710 = vst.msk [vmem:[#allocation4 + $0xc8] sm:$0xff] %vm1656_vm9, %v3640_v58 }
 0x581   : > { %v3830_v24 = vpop.permute.xlu0 %3829 }
 0x582   : > { %v3644_v32 = vpop.permute.xlu1 %3643  ;;  %3901 = vst.msk [vmem:[#allocation4 + $0xc0] sm:$0xff] %vm1849_vm10, %v3830_v24 }
 0x583   : > { %3712 = vst.msk [vmem:[#allocation4 + $0xd8] sm:$0xff] %vm1656_vm9, %v3644_v32 }
 0x585   : > { %v3834_v10 = vpop.permute.xlu0 %3833 }
 0x586   : > { %v3832_v61 = vpop.permute.xlu1 %3831  ;;  %3903 = vst.msk [vmem:[#allocation4 + $0xd0] sm:$0xff] %vm1849_vm10, %v3834_v10 }
 0x587   : > { %3902 = vst.msk [vmem:[#allocation4 + $0xc8] sm:$0xff] %vm1849_vm10, %v3832_v61 }
 0x589   : > { %v4022_v51 = vpop.permute.xlu0 %4021 }
 0x58a   : > { %v3836_v14 = vpop.permute.xlu1 %3835  ;;  %4093 = vst.msk [vmem:[#allocation4 + $0xc0] sm:$0xff] %vm2042_vm11, %v4022_v51  ;;  %v7632_v51 = vld [vmem:[#allocation10_spill] sm:$0xff] }
 0x58b   : > { %3904 = vst.msk [vmem:[#allocation4 + $0xd8] sm:$0xff] %vm1849_vm10, %v3836_v14  ;;  %v7633_v14 = vunpack.c.l.bf16 %v7632_v51 }
 0x58d   : > { %v4832_v27 = vpop.f32.mrf.mxu1  ;;  %v4026_v39 = vpop.permute.xlu0 %4025 }
 0x58e   : > { %v4394_v50 = vmul.f32 %v4832_v27, %v7180_v45  ;;  %v4024_v34 = vpop.permute.xlu1 %4023  ;;  %4095 = vst.msk [vmem:[#allocation4 + $0xd0] sm:$0xff] %vm2042_vm11, %v4026_v39 }
 0x58f   : > { %4094 = vst.msk [vmem:[#allocation4 + $0xc8] sm:$0xff] %vm2042_vm11, %v4024_v34  ;;  %v4270_v11 = vpop.f32.mrf.mxu1 }
 0x590   : > { %v4433_v48 = vadd.f32 %v7185_v47, %v4394_v50  ;;  %v4392_v12 = vmul.f32 %v7180_v45, %v4270_v11 }
 0x591   : > { %v4833_v16 = vpop.f32.mrf.mxu1  ;;  %v3069_v23 = vpop.permute.xlu0 %3068  ;;  %v4125_v13 = vld [vmem:[#allocation4 + $0xc0] sm:$0xff] }
 0x592   : > { %v4465_v26 = vadd.f32 %v7627_v40, %v4433_v48  ;;  %v4431_v20 = vadd.f32 %v7185_v47, %v4392_v12  ;;  %v4395_v35 = vmul.f32 %v4833_v16, %v7180_v45  ;;  %v4028_v7 = vpop.permute.xlu1 %4027  ;;  %3136 = vst.msk [vmem:[#allocation4 + $0xe0] sm:$0xff] %vm1076_vm5, %v3069_v23  ;;  %v7634_v16 = vld [vmem:[#allocation9_spill] sm:$0xff]  ;;  %v7636_v23 = vunpack.c.h.bf16 %v7632_v51 }
 0x593   : > { %4096 = vst.msk [vmem:[#allocation4 + $0xd8] sm:$0xff] %vm2042_vm11, %v4028_v7  ;;  %v4273_v2 = vpop.f32.mrf.mxu1  ;;  %v7635_v22 = vunpack.c.l.bf16 %v7634_v16 }
 0x594   : > { %v4497_v36 = vmax.f32 %v4465_v26, 0.0  ;;  %v4463_v43 = vadd.f32 %v7629_v30, %v4431_v20  ;;  %v4434_v3 = vadd.f32 %v7185_v47, %v4395_v35  ;;  %v4393_v59 = vmul.f32 %v7180_v45, %v4273_v2 }
 0x595   : > { %v3073_v1 = vpop.permute.xlu0 %3072  ;;  %v4127_v62 = vld [vmem:[#allocation4 + $0xd0] sm:$0xff] }
 0x596   : > { %4529 = vst.msk [vmem:[%s7201_s17 + $0x30] sm:$0xff] %vm280_vm0, %v4497_v36  ;;  %v4495_v5 = vmax.f32 %v4463_v43, 0.0  ;;  %v4466_v9 = vadd.f32 %v7630_v41, %v4434_v3  ;;  %v4432_v55 = vadd.f32 %v7185_v47, %v4393_v59  ;;  %v3071_v0 = vpop.permute.xlu1 %3070  ;;  %v4126_v37 = vld [vmem:[#allocation4 + $0xc8] sm:$0xff]  ;;  %v7637_v43 = vunpack.c.h.bf16 %v7634_v16 }
 0x597   : > { %3138 = vst.msk [vmem:[#allocation4 + $0xf0] sm:$0xff] %vm1076_vm5, %v3073_v1  ;;  %3137 = vst.msk [vmem:[#allocation4 + $0xe8] sm:$0xff] %vm1076_vm5, %v3071_v0  ;;  %v4145_v19 = vpack.c.bf16 %v4126_v37, %v4125_v13 }
 0x598   : > { %4527 = vst.msk [vmem:[%s7201_s17 + $0x20] sm:$0xff] %vm280_vm0, %v4495_v5  ;;  %v4498_v33 = vmax.f32 %v4466_v9, 0.0  ;;  %v4464_v52 = vadd.f32 %v7631_v21, %v4432_v55 }
 0x599   : > { %4850 = vmatprep.mubr.msk.bf16.mxu1 %vm2143_vm12, %v4145_v19  ;;  %v3261_v63 = vpop.permute.xlu0 %3260 }
 0x59a   : > { %4530 = vst.msk [vmem:[%s7201_s17 + $0x38] sm:$0xff] %vm280_vm0, %v4498_v33  ;;  %v4496_v4 = vmax.f32 %v4464_v52, 0.0  ;;  %v3075_v25 = vpop.permute.xlu1 %3074  ;;  %v4128_v29 = vld [vmem:[#allocation4 + $0xd8] sm:$0xff] }
 0x59b   : > { %3328 = vst.msk [vmem:[#allocation4 + $0xe0] sm:$0xff] %vm1269_vm6, %v3261_v63  ;;  %v4146_v57 = vpack.c.bf16 %v4128_v29, %v4127_v62  ;;  %v7638_v63 = vld [vmem:[#allocation12_spill] sm:$0xff] }
 0x59c   : > { %3139 = vst.msk [vmem:[#allocation4 + $0xf8] sm:$0xff] %vm1076_vm5, %v3075_v25  ;;  %v7639_v25 = vunpack.c.l.bf16 %v7638_v63 }
 0x59d   : > { %4528 = vst.msk [vmem:[%s7201_s17 + $0x28] sm:$0xff] %vm280_vm0, %v4496_v4  ;;  %4851 = vmatmul.mubr.msk.bf16.gmra.mxu1 %vm2143_vm12, %v4146_v57  ;;  %v3265_v18 = vpop.permute.xlu0 %3264 }
 0x59e   : > { %v3263_v53 = vpop.permute.xlu1 %3262  ;;  %3330 = vst.msk [vmem:[#allocation4 + $0xf0] sm:$0xff] %vm1269_vm6, %v3265_v18 }
 0x59f   : > { %3329 = vst.msk [vmem:[#allocation4 + $0xe8] sm:$0xff] %vm1269_vm6, %v3263_v53 }
 0x5a1   : > { %v3453_v54 = vpop.permute.xlu0 %3452 }
 0x5a2   : > { %v3267_v38 = vpop.permute.xlu1 %3266  ;;  %3520 = vst.msk [vmem:[#allocation4 + $0xe0] sm:$0xff] %vm1462_vm7, %v3453_v54  ;;  %v7640_v54 = vld [vmem:[#allocation11_spill] sm:$0xff] }
 0x5a3   : > { %3331 = vst.msk [vmem:[#allocation4 + $0xf8] sm:$0xff] %vm1269_vm6, %v3267_v38  ;;  %v7641_v38 = vunpack.c.l.bf16 %v7640_v54 }
 0x5a5   : > { %v3457_v15 = vpop.permute.xlu0 %3456 }
 0x5a6   : > { %v3455_v60 = vpop.permute.xlu1 %3454  ;;  %3522 = vst.msk [vmem:[#allocation4 + $0xf0] sm:$0xff] %vm1462_vm7, %v3457_v15 }
 0x5a7   : > { %3521 = vst.msk [vmem:[#allocation4 + $0xe8] sm:$0xff] %vm1462_vm7, %v3455_v60 }
 0x5a9   : > { %v3646_v31 = vpop.permute.xlu0 %3645 }
 0x5aa   : > { %v3459_v49 = vpop.permute.xlu1 %3458  ;;  %3713 = vst.msk [vmem:[#allocation4 + $0xe0] sm:$0xff] %vm1656_vm9, %v3646_v31 }
 0x5ab   : > { %3523 = vst.msk [vmem:[#allocation4 + $0xf8] sm:$0xff] %vm1462_vm7, %v3459_v49 }
 0x5ad   : > { %v3650_v46 = vpop.permute.xlu0 %3649 }
 0x5ae   : > { %v3648_v17 = vpop.permute.xlu1 %3647  ;;  %3715 = vst.msk [vmem:[#allocation4 + $0xf0] sm:$0xff] %vm1656_vm9, %v3650_v46  ;;  %v7642_v46 = vunpack.c.h.bf16 %v7638_v63 }
 0x5af   : > { %3714 = vst.msk [vmem:[#allocation4 + $0xe8] sm:$0xff] %vm1656_vm9, %v3648_v17 }
 0x5b1   : > { %v3838_v56 = vpop.permute.xlu0 %3837 }
 0x5b2   : > { %v3652_v28 = vpop.permute.xlu1 %3651  ;;  %3905 = vst.msk [vmem:[#allocation4 + $0xe0] sm:$0xff] %vm1849_vm10, %v3838_v56 }
 0x5b3   : > { %3716 = vst.msk [vmem:[#allocation4 + $0xf8] sm:$0xff] %vm1656_vm9, %v3652_v28 }
 0x5b5   : > { %v4836_v44 = vpop.f32.mrf.mxu1  ;;  %v3842_v8 = vpop.permute.xlu0 %3841 }
 0x5b6   : > { %v4398_v42 = vmul.f32 %v4836_v44, %v7180_v45  ;;  %v3840_v58 = vpop.permute.xlu1 %3839  ;;  %3907 = vst.msk [vmem:[#allocation4 + $0xf0] sm:$0xff] %vm1849_vm10, %v3842_v8  ;;  %v7643_v44 = vunpack.c.h.bf16 %v7640_v54 }
 0x5b7   : > { %3906 = vst.msk [vmem:[#allocation4 + $0xe8] sm:$0xff] %vm1849_vm10, %v3840_v58  ;;  %v4286_v24 = vpop.f32.mrf.mxu1 }
 0x5b8   : > { %v4437_v32 = vadd.f32 %v7185_v47, %v4398_v42  ;;  %v4396_v10 = vmul.f32 %v7180_v45, %v4286_v24 }
 0x5b9   : > { %v4837_v61 = vpop.f32.mrf.mxu1  ;;  %v4030_v34 = vpop.permute.xlu0 %4029 }
 0x5ba   : > { %v4469_v27 = vadd.f32 %v7633_v14, %v4437_v32  ;;  %v4435_v50 = vadd.f32 %v7185_v47, %v4396_v10  ;;  %v4399_v39 = vmul.f32 %v4837_v61, %v7180_v45  ;;  %v3844_v11 = vpop.permute.xlu1 %3843  ;;  %4097 = vst.msk [vmem:[#allocation4 + $0xe0] sm:$0xff] %vm2042_vm11, %v4030_v34  ;;  %v7644_v14 = vld [vmem:[#allocation14_spill] sm:$0xff] }
 0x5bb   : > { %3908 = vst.msk [vmem:[#allocation4 + $0xf8] sm:$0xff] %vm1849_vm10, %v3844_v11  ;;  %v4289_v48 = vpop.f32.mrf.mxu1 }
 0x5bc   : > { %v4501_v12 = vmax.f32 %v4469_v27, 0.0  ;;  %v4467_v40 = vadd.f32 %v7635_v22, %v4435_v50  ;;  %v4438_v26 = vadd.f32 %v7185_v47, %v4399_v39  ;;  %v4397_v20 = vmul.f32 %v7180_v45, %v4289_v48 }
 0x5bd   : > { %v4034_v6 = vpop.permute.xlu0 %4033  ;;  %v7645_v27 = vunpack.c.l.bf16 %v7644_v14 }
 0x5be   : > { %4533 = vst.msk [vmem:[%s7201_s17 + $0x50] sm:$0xff] %vm280_vm0, %v4501_v12  ;;  %v4499_v35 = vmax.f32 %v4467_v40, 0.0  ;;  %v4470_v7 = vadd.f32 %v7636_v23, %v4438_v26  ;;  %v4436_v2 = vadd.f32 %v7185_v47, %v4397_v20  ;;  %v4032_v36 = vpop.permute.xlu1 %4031  ;;  %v7646_v12 = vld [vmem:[#allocation13_spill] sm:$0xff] }
 0x5bf   : > { %4098 = vst.msk [vmem:[#allocation4 + $0xe8] sm:$0xff] %vm2042_vm11, %v4032_v36  ;;  %4099 = vst.msk [vmem:[#allocation4 + $0xf0] sm:$0xff] %vm2042_vm11, %v4034_v6  ;;  %v7647_v16 = vunpack.c.l.bf16 %v7646_v12  ;;  %v7649_v36 = vunpack.c.h.bf16 %v7646_v12 }
 0x5c0   : > { %4531 = vst.msk [vmem:[%s7201_s17 + $0x40] sm:$0xff] %vm280_vm0, %v4499_v35  ;;  %v4502_v30 = vmax.f32 %v4470_v7, 0.0  ;;  %v4468_v3 = vadd.f32 %v7637_v43, %v4436_v2  ;;  %v7648_v35 = vunpack.c.h.bf16 %v7644_v14 }
 0x5c1   : > { %v4129_v41 = vld [vmem:[#allocation4 + $0xe0] sm:$0xff] }
 0x5c2   : > { %4534 = vst.msk [vmem:[%s7201_s17 + $0x58] sm:$0xff] %vm280_vm0, %v4502_v30  ;;  %v4500_v59 = vmax.f32 %v4468_v3, 0.0  ;;  %v4036_v5 = vpop.permute.xlu1 %4035 }
 0x5c3   : > { %4100 = vst.msk [vmem:[#allocation4 + $0xf8] sm:$0xff] %vm2042_vm11, %v4036_v5 }
 0x5c4   : > { %4532 = vst.msk [vmem:[%s7201_s17 + $0x48] sm:$0xff] %vm280_vm0, %v4500_v59 }
 0x5c6   : > { %v4130_v9 = vld [vmem:[#allocation4 + $0xe8] sm:$0xff]  ;;  %v4131_v1 = vld [vmem:[#allocation4 + $0xf0] sm:$0xff] }
 0x5c7   : > { %v4147_v55 = vpack.c.bf16 %v4130_v9, %v4129_v41 }
 0x5c9   : > { %4854 = vmatprep.mubr.msk.bf16.mxu1 %vm2143_vm12, %v4147_v55  ;;  %v7650_v55 = vld [vmem:[#allocation16_spill] sm:$0xff] }
 0x5ca   : > { %v4132_v0 = vld [vmem:[#allocation4 + $0xf8] sm:$0xff] }
 0x5cb   : > { %v4148_v13 = vpack.c.bf16 %v4132_v0, %v4131_v1  ;;  %v7651_v1 = vunpack.c.l.bf16 %v7650_v55 }
 0x5cd   : > { %4855 = vmatmul.mubr.msk.bf16.gmra.mxu1 %vm2143_vm12, %v4148_v13 }
 0x5dd   : > { %v4840_v37 = vpop.f32.mrf.mxu1 }
 0x5de   : > { %v4402_v19 = vmul.f32 %v4840_v37, %v7180_v45 }
 0x5df   : > { %v4302_v33 = vpop.f32.mrf.mxu1 }
 0x5e0   : > { %v4441_v21 = vadd.f32 %v7185_v47, %v4402_v19  ;;  %v4400_v52 = vmul.f32 %v7180_v45, %v4302_v33 }
 0x5e1   : > { %v4841_v4 = vpop.f32.mrf.mxu1 }
 0x5e2   : > { %v4473_v62 = vadd.f32 %v7639_v25, %v4441_v21  ;;  %v4439_v29 = vadd.f32 %v7185_v47, %v4400_v52  ;;  %v4403_v57 = vmul.f32 %v4841_v4, %v7180_v45  ;;  %v7652_v21 = vld [vmem:[#allocation15_spill] sm:$0xff] }
 0x5e3   : > { %v4305_v18 = vpop.f32.mrf.mxu1  ;;  %v7653_v52 = vunpack.c.l.bf16 %v7652_v21  ;;  %v7655_v54 = vunpack.c.h.bf16 %v7652_v21 }
 0x5e4   : > { %v4505_v53 = vmax.f32 %v4473_v62, 0.0  ;;  %v4471_v15 = vadd.f32 %v7641_v38, %v4439_v29  ;;  %v4442_v60 = vadd.f32 %v7185_v47, %v4403_v57  ;;  %v4401_v31 = vmul.f32 %v7180_v45, %v4305_v18 }
 0x5e5   : > { %v7654_v29 = vunpack.c.h.bf16 %v7650_v55 }
 0x5e6   : > { %4537 = vst.msk [vmem:[%s7201_s17 + $0x70] sm:$0xff] %vm280_vm0, %v4505_v53  ;;  %v4503_v49 = vmax.f32 %v4471_v15, 0.0  ;;  %v4474_v17 = vadd.f32 %v7642_v46, %v4442_v60  ;;  %v4440_v56 = vadd.f32 %v7185_v47, %v4401_v31 }
 0x5e8   : > { %4535 = vst.msk [vmem:[%s7201_s17 + $0x60] sm:$0xff] %vm280_vm0, %v4503_v49  ;;  %v4506_v28 = vmax.f32 %v4474_v17, 0.0  ;;  %v4472_v42 = vadd.f32 %v7643_v44, %v4440_v56 }
 0x5ea   : > { %4538 = vst.msk [vmem:[%s7201_s17 + $0x78] sm:$0xff] %vm280_vm0, %v4506_v28  ;;  %v4504_v8 = vmax.f32 %v4472_v42, 0.0  ;;  %v7656_v28 = vld [vmem:[#allocation18_spill] sm:$0xff] }
 0x5eb   : > { %v7657_v44 = vunpack.c.l.bf16 %v7656_v28 }
 0x5ec   : > { %4536 = vst.msk [vmem:[%s7201_s17 + $0x68] sm:$0xff] %vm280_vm0, %v4504_v8 }
 0x605   : > { %v4844_v58 = vpop.f32.mrf.mxu1 }
 0x606   : > { %v4406_v24 = vmul.f32 %v4844_v58, %v7180_v45 }
 0x607   : > { %v4318_v32 = vpop.f32.mrf.mxu1 }
 0x608   : > { %v4445_v10 = vadd.f32 %v7185_v47, %v4406_v24  ;;  %v4404_v61 = vmul.f32 %v7180_v45, %v4318_v32 }
 0x609   : > { %v4845_v51 = vpop.f32.mrf.mxu1 }
 0x60a   : > { %v4477_v50 = vadd.f32 %v7645_v27, %v4445_v10  ;;  %v4443_v39 = vadd.f32 %v7185_v47, %v4404_v61  ;;  %v4407_v34 = vmul.f32 %v4845_v51, %v7180_v45  ;;  %v7658_v10 = vld [vmem:[#allocation17_spill] sm:$0xff] }
 0x60b   : > { %v4321_v11 = vpop.f32.mrf.mxu1  ;;  %v7659_v61 = vunpack.c.l.bf16 %v7658_v10  ;;  %v7661_v12 = vunpack.c.h.bf16 %v7658_v10 }
 0x60c   : > { %v4509_v48 = vmax.f32 %v4477_v50, 0.0  ;;  %v4475_v22 = vadd.f32 %v7647_v16, %v4443_v39  ;;  %v4446_v40 = vadd.f32 %v7185_v47, %v4407_v34  ;;  %v4405_v26 = vmul.f32 %v7180_v45, %v4321_v11 }
 0x60d   : > { %v7660_v39 = vunpack.c.h.bf16 %v7656_v28 }
 0x60e   : > { %4541 = vst.msk [vmem:[%s7201_s17 + $0x90] sm:$0xff] %vm280_vm0, %v4509_v48  ;;  %v4507_v20 = vmax.f32 %v4475_v22, 0.0  ;;  %v4478_v23 = vadd.f32 %v7648_v35, %v4446_v40  ;;  %v4444_v7 = vadd.f32 %v7185_v47, %v4405_v26 }
 0x610   : > { %4539 = vst.msk [vmem:[%s7201_s17 + $0x80] sm:$0xff] %vm280_vm0, %v4507_v20  ;;  %v4510_v2 = vmax.f32 %v4478_v23, 0.0  ;;  %v4476_v6 = vadd.f32 %v7649_v36, %v4444_v7 }
 0x612   : > { %4542 = vst.msk [vmem:[%s7201_s17 + $0x98] sm:$0xff] %vm280_vm0, %v4510_v2  ;;  %v4508_v30 = vmax.f32 %v4476_v6, 0.0  ;;  %v7662_v2 = vld [vmem:[#allocation20_spill] sm:$0xff] }
 0x613   : > { %v7663_v36 = vunpack.c.l.bf16 %v7662_v2 }
 0x614   : > { %4540 = vst.msk [vmem:[%s7201_s17 + $0x88] sm:$0xff] %vm280_vm0, %v4508_v30 }
 0x62d   : > { %v4848_v43 = vpop.f32.mrf.mxu1 }
 0x62e   : > { %v4410_v3 = vmul.f32 %v4848_v43, %v7180_v45 }
 0x62f   : > { %v4334_v59 = vpop.f32.mrf.mxu1 }
 0x630   : > { %v4449_v5 = vadd.f32 %v7185_v47, %v4410_v3  ;;  %v4408_v41 = vmul.f32 %v7180_v45, %v4334_v59 }
 0x631   : > { %v4849_v9 = vpop.f32.mrf.mxu1 }
 0x632   : > { %v4481_v0 = vadd.f32 %v7651_v1, %v4449_v5  ;;  %v4447_v13 = vadd.f32 %v7185_v47, %v4408_v41  ;;  %v4411_v37 = vmul.f32 %v4849_v9, %v7180_v45  ;;  %v7664_v5 = vld [vmem:[#allocation19_spill] sm:$0xff] }
 0x633   : > { %v4337_v19 = vpop.f32.mrf.mxu1  ;;  %v7665_v41 = vunpack.c.l.bf16 %v7664_v5  ;;  %v7667_v21 = vunpack.c.h.bf16 %v7664_v5 }
 0x634   : > { %v4513_v33 = vmax.f32 %v4481_v0, 0.0  ;;  %v4479_v4 = vadd.f32 %v7653_v52, %v4447_v13  ;;  %v4450_v63 = vadd.f32 %v7185_v47, %v4411_v37  ;;  %v4409_v25 = vmul.f32 %v7180_v45, %v4337_v19 }
 0x635   : > { %v7666_v13 = vunpack.c.h.bf16 %v7662_v2 }
 0x636   : > { %4545 = vst.msk [vmem:[%s7201_s17 + $0xb0] sm:$0xff] %vm280_vm0, %v4513_v33  ;;  %v4511_v62 = vmax.f32 %v4479_v4, 0.0  ;;  %v4482_v57 = vadd.f32 %v7654_v29, %v4450_v63  ;;  %v4448_v18 = vadd.f32 %v7185_v47, %v4409_v25 }
 0x638   : > { %4543 = vst.msk [vmem:[%s7201_s17 + $0xa0] sm:$0xff] %vm280_vm0, %v4511_v62  ;;  %v4514_v53 = vmax.f32 %v4482_v57, 0.0  ;;  %v4480_v38 = vadd.f32 %v7655_v54, %v4448_v18 }
 0x63a   : > { %4546 = vst.msk [vmem:[%s7201_s17 + $0xb8] sm:$0xff] %vm280_vm0, %v4514_v53  ;;  %v4512_v15 = vmax.f32 %v4480_v38, 0.0 }
 0x63c   : > { %4544 = vst.msk [vmem:[%s7201_s17 + $0xa8] sm:$0xff] %vm280_vm0, %v4512_v15 }
 0x65d   : > { %v4852_v60 = vpop.f32.mrf.mxu1 }
 0x65e   : > { %v4414_v31 = vmul.f32 %v4852_v60, %v7180_v45 }
 0x65f   : > { %v4350_v49 = vpop.f32.mrf.mxu1 }
 0x660   : > { %v4453_v46 = vadd.f32 %v7185_v47, %v4414_v31  ;;  %v4412_v17 = vmul.f32 %v7180_v45, %v4350_v49 }
 0x661   : > { %v4853_v56 = vpop.f32.mrf.mxu1 }
 0x662   : > { %v4485_v42 = vadd.f32 %v7657_v44, %v4453_v46  ;;  %v4451_v8 = vadd.f32 %v7185_v47, %v4412_v17  ;;  %v4415_v58 = vmul.f32 %v4853_v56, %v7180_v45 }
 0x663   : > { %v4353_v24 = vpop.f32.mrf.mxu1 }
 0x664   : > { %v4517_v32 = vmax.f32 %v4485_v42, 0.0  ;;  %v4483_v51 = vadd.f32 %v7659_v61, %v4451_v8  ;;  %v4454_v14 = vadd.f32 %v7185_v47, %v4415_v58  ;;  %v4413_v27 = vmul.f32 %v7180_v45, %v4353_v24 }
 0x666   : > { %4549 = vst.msk [vmem:[%s7201_s17 + $0xd0] sm:$0xff] %vm280_vm0, %v4517_v32  ;;  %v4515_v50 = vmax.f32 %v4483_v51, 0.0  ;;  %v4486_v34 = vadd.f32 %v7660_v39, %v4454_v14  ;;  %v4452_v11 = vadd.f32 %v7185_v47, %v4413_v27 }
 0x668   : > { %4547 = vst.msk [vmem:[%s7201_s17 + $0xc0] sm:$0xff] %vm280_vm0, %v4515_v50  ;;  %v4518_v48 = vmax.f32 %v4486_v34, 0.0  ;;  %v4484_v16 = vadd.f32 %v7661_v12, %v4452_v11 }
 0x66a   : > { %4550 = vst.msk [vmem:[%s7201_s17 + $0xd8] sm:$0xff] %vm280_vm0, %v4518_v48  ;;  %v4516_v22 = vmax.f32 %v4484_v16, 0.0 }
 0x66c   : > { %4548 = vst.msk [vmem:[%s7201_s17 + $0xc8] sm:$0xff] %vm280_vm0, %v4516_v22 }
 0x68d   : > { %v4856_v40 = vpop.f32.mrf.mxu1 }
 0x68e   : > { %v4418_v26 = vmul.f32 %v4856_v40, %v7180_v45 }
 0x68f   : > { %v4366_v20 = vpop.f32.mrf.mxu1 }
 0x690   : > { %v4457_v35 = vadd.f32 %v7185_v47, %v4418_v26  ;;  %v4416_v23 = vmul.f32 %v7180_v45, %v4366_v20 }
 0x691   : > { %v4857_v7 = vpop.f32.mrf.mxu1 }
 0x692   : > { %v4489_v6 = vadd.f32 %v7663_v36, %v4457_v35  ;;  %v4455_v30 = vadd.f32 %v7185_v47, %v4416_v23  ;;  %v4419_v43 = vmul.f32 %v4857_v7, %v7180_v45 }
 0x693   : > { %v4369_v3 = vpop.f32.mrf.mxu1 }
 0x694   : > { %v4521_v59 = vmax.f32 %v4489_v6, 0.0  ;;  %v4487_v9 = vadd.f32 %v7665_v41, %v4455_v30  ;;  %v4458_v55 = vadd.f32 %v7185_v47, %v4419_v43  ;;  %v4417_v1 = vmul.f32 %v7180_v45, %v4369_v3 }
 0x696   : > { %4553 = vst.msk [vmem:[%s7201_s17 + $0xf0] sm:$0xff] %vm280_vm0, %v4521_v59  ;;  %v4519_v0 = vmax.f32 %v4487_v9, 0.0  ;;  %v4490_v37 = vadd.f32 %v7666_v13, %v4458_v55  ;;  %v4456_v19 = vadd.f32 %v7185_v47, %v4417_v1 }
 0x698   : > { %4551 = vst.msk [vmem:[%s7201_s17 + $0xe0] sm:$0xff] %vm280_vm0, %v4519_v0  ;;  %v4522_v33 = vmax.f32 %v4490_v37, 0.0  ;;  %v4488_v52 = vadd.f32 %v7667_v21, %v4456_v19 }
 0x69a   : > { %4554 = vst.msk [vmem:[%s7201_s17 + $0xf8] sm:$0xff] %vm280_vm0, %v4522_v33  ;;  %v4520_v4 = vmax.f32 %v4488_v52, 0.0 }
 0x69c   : > { %4552 = vst.msk [vmem:[%s7201_s17 + $0xe8] sm:$0xff] %vm280_vm0, %v4520_v4 }
 0x69d PF: > { %s17_s24 = sadd.s32 1, %s4889_s24  }
 0x69e   : > { %p14_p4 = scmp.ge.s32.totalorder %s17_s24, 4  }
 0x6a0   :  { %16 = sbr.rel (!%p14_p4) target bundleno = 1 (0x1), region = 84 }

</bundles_post_ra>
